<compile_context>
chip_gen: v5e
topology: v5e:2x2
jax: 0.10.0
libtpu: 0.0.40
codegen_flags: <defaults>
</compile_context>

<pallas_src>
import jax
import jax.numpy as jnp
from jax import lax
from jax.experimental import pallas as pl
from jax.experimental.pallas import tpu as pltpu

LANE = 128


def _round_up(x, m):
    return ((x + m - 1) // m) * m


def _conv_block_kernel(x_ref, w1_ref, w2_ref, bss1_ref, bss2_ref, o_ref,
                       xpad_ref, ypad_ref):
    """Fused conv3x3+ReLU+BN (x2) for one batch element.

    x_ref:    (1, H, W, Cin_p)       bf16 input (channel-padded, no spatial halo)
    w1_ref:   (3, 3*Cin_p, C1_p)     bf16 layer-1 weights; row index = dx*Cin_p + cin
    w2_ref:   (3, 3*C1_p,  C2_p)     bf16 layer-2 weights
    bss1_ref: (3, C1_p) f32          rows = [conv bias, BN scale, BN shift]
    bss2_ref: (3, C2_p) f32
    o_ref:    (1, H, W, C2_p)        lane-dense output block (C2_p multiple of 128)
    xpad_ref: (H+2, W+2, Cin_p) bf16 VMEM halo buffer for layer-1 input
    ypad_ref: (H+2, W+2, C1_p)  bf16 VMEM halo buffer for the fused intermediate
    """
    H = x_ref.shape[1]
    W = x_ref.shape[2]

    def conv3x3_relu_bn(src_ref, w_ref, bss_ref):
        # Per-dy im2col: one lane-aligned concat over dx gives contraction K = 3*C,
        # so the 3x3 conv is 3 fat MXU matmuls instead of 9 thin ones.
        xcat = jnp.concatenate(
            [src_ref[:, 0:W, :], src_ref[:, 1:W + 1, :], src_ref[:, 2:W + 2, :]],
            axis=-1)                                           # (H+2, W, 3*C) bf16
        cout = w_ref.shape[2]
        acc = jnp.zeros((H * W, cout), jnp.float32)
        for dy in range(3):
            patch = xcat[dy:dy + H].reshape(H * W, xcat.shape[-1])
            acc = acc + jnp.dot(patch, w_ref[dy],
                                preferred_element_type=jnp.float32)
        acc = jnp.maximum(acc + bss_ref[0], 0.0)               # conv bias + ReLU (f32)
        return acc * bss_ref[1] + bss_ref[2]                   # eval-mode BN (folded)

    # Stage the input into a zero-halo VMEM buffer: 'same' padding is done on-chip,
    # no padded copy of the activation goes through HBM.
    xpad_ref[...] = jnp.zeros_like(xpad_ref)
    xpad_ref[1:H + 1, 1:W + 1, :] = x_ref[0]

    # Layer 1; keep the intermediate entirely in VMEM (bf16) with its own halo.
    y1 = conv3x3_relu_bn(xpad_ref, w1_ref, bss1_ref)           # (H*W, C1_p) f32
    ypad_ref[...] = jnp.zeros_like(ypad_ref)
    ypad_ref[1:H + 1, 1:W + 1, :] = (
        y1.reshape(H, W, ypad_ref.shape[-1]).astype(ypad_ref.dtype))

    # Layer 2 straight out of VMEM; lane-dense store to HBM.
    y2 = conv3x3_relu_bn(ypad_ref, w2_ref, bss2_ref)           # (H*W, C2_p) f32
    o_ref[0] = y2.reshape(H, W, o_ref.shape[-1]).astype(o_ref.dtype)


def _prep_layer_params(p, cin_p, cout_p):
    """Pad channels to lane multiples, flatten weights per-dy, pack bias/scale/shift."""
    w = p["w"]                                   # (3, 3, cin, cout) HWIO, f32
    cin, cout = w.shape[2], w.shape[3]
    wp = jnp.zeros((3, 3, cin_p, cout_p), jnp.float32)
    wp = wp.at[:, :, :cin, :cout].set(w)
    wp = wp.reshape(3, 3 * cin_p, cout_p).astype(jnp.bfloat16)
    bss = jnp.zeros((3, cout_p), jnp.float32)    # rows: bias, scale, shift
    bss = bss.at[0, :cout].set(p["b"])
    bss = bss.at[1, :cout].set(p["scale"])
    bss = bss.at[2, :cout].set(p["shift"])       # padded shift = 0 -> padded channels stay 0
    return wp, bss


def conv_block_pallas(x_nhwc, p1, p2):
    """Fused _ConvBlock forward in NHWC: (N,H,W,Cin) -> (N,H,W,Cout)."""
    N, H, W, cin = x_nhwc.shape
    c1 = p1["w"].shape[3]
    c2 = p2["w"].shape[3]
    cin_p = _round_up(cin, LANE)
    c1_p = _round_up(c1, LANE)
    c2_p = _round_up(c2, LANE)

    w1p, bss1 = _prep_layer_params(p1, cin_p, c1_p)
    w2p, bss2 = _prep_layer_params(p2, c1_p, c2_p)

    # bf16 activations for the MXU; channel pad to a lane multiple (a no-op for
    # lane-aligned channel counts). The spatial halo is built in VMEM inside the kernel.
    xp = x_nhwc.astype(jnp.bfloat16)
    if cin_p != cin:
        xp = jnp.pad(xp, ((0, 0), (0, 0), (0, 0), (0, cin_p - cin)))

    flops = 2 * N * H * W * 9 * (cin * c1 + c1 * c2)
    bytes_accessed = (xp.size * 2 + w1p.size * 2 + w2p.size * 2
                      + bss1.size * 4 + bss2.size * 4 + N * H * W * c2_p * 4)

    out = pl.pallas_call(
        _conv_block_kernel,
        out_shape=jax.ShapeDtypeStruct((N, H, W, c2_p), x_nhwc.dtype),
        grid=(N,),
        in_specs=[
            pl.BlockSpec((1, H, W, cin_p), lambda n: (n, 0, 0, 0)),
            pl.BlockSpec((3, 3 * cin_p, c1_p), lambda n: (0, 0, 0)),
            pl.BlockSpec((3, 3 * c1_p, c2_p), lambda n: (0, 0, 0)),
            pl.BlockSpec((3, c1_p), lambda n: (0, 0)),
            pl.BlockSpec((3, c2_p), lambda n: (0, 0)),
        ],
        out_specs=pl.BlockSpec((1, H, W, c2_p), lambda n: (n, 0, 0, 0)),
        scratch_shapes=[
            pltpu.VMEM((H + 2, W + 2, cin_p), jnp.bfloat16),
            pltpu.VMEM((H + 2, W + 2, c1_p), jnp.bfloat16),
        ],
        compiler_params=pltpu.CompilerParams(
            dimension_semantics=("parallel",),
            vmem_limit_bytes=32 * 1024 * 1024,
        ),
        cost_estimate=pl.CostEstimate(
            flops=flops, transcendentals=0, bytes_accessed=bytes_accessed),
    )(xp, w1p, w2p, bss1, bss2)

    return out[..., :c2]                       # strip padded output channels


def conv_block_forward(x_nchw, p1, p2):
    """_ConvBlock.forward with PyTorch NCHW in/out.

    NOTE: in a full UNet3+ keep activations NHWC end-to-end and transpose only at the
    model boundary; the transposes here exist to honour this block's NCHW interface.
    """
    x = jnp.transpose(x_nchw, (0, 2, 3, 1))    # NCHW -> NHWC
    y = conv_block_pallas(x, p1, p2)
    return jnp.transpose(y, (0, 3, 1, 2))      # NHWC -> NCHW


def make_conv_relu_bn_params(key, cin, cout, eps=1e-5):
    """Deterministic synthetic parameters for one conv_relu_bn layer."""
    kw, kb = jax.random.split(key)
    fan_in = cin * 9
    w = jax.random.normal(kw, (3, 3, cin, cout), jnp.float32) / jnp.sqrt(fan_in)
    b = 0.01 * jax.random.normal(kb, (cout,), jnp.float32)
    gamma = 1.0 + 0.1 * jnp.arange(cout, dtype=jnp.float32)
    beta = 0.05 * jnp.arange(cout, dtype=jnp.float32)
    running_mean = 0.01 * jnp.arange(cout, dtype=jnp.float32)
    running_var = 1.0 + 0.02 * jnp.arange(cout, dtype=jnp.float32)
    scale = gamma / jnp.sqrt(running_var + eps)
    shift = beta - running_mean * scale
    return dict(w=w, b=b, scale=scale, shift=shift,
                gamma=gamma, beta=beta, mean=running_mean, var=running_var)


def _reference_conv_relu_bn(x_nhwc, p, eps=1e-5):
    """Pure-JAX reference mirroring the kernel's bf16-matmul / f32-accumulate numerics."""
    y = lax.conv_general_dilated(
        x_nhwc.astype(jnp.bfloat16), p["w"].astype(jnp.bfloat16),
        window_strides=(1, 1), padding="SAME",
        dimension_numbers=("NHWC", "HWIO", "NHWC"),
        preferred_element_type=jnp.float32,
    ) + p["b"]
    y = jnp.maximum(y, 0.0)
    return p["gamma"] * (y - p["mean"]) / jnp.sqrt(p["var"] + eps) + p["beta"]


if __name__ == "__main__":
    N, Cin, Cout, H, W = 2, 4, 8, 16, 16

    key = jax.random.PRNGKey(0)
    kx, k1, k2 = jax.random.split(key, 3)

    x_nchw = jax.random.normal(kx, (N, Cin, H, W), jnp.float32)
    p1 = make_conv_relu_bn_params(k1, Cin, Cout)
    p2 = make_conv_relu_bn_params(k2, Cout, Cout)

    out = conv_block_forward(x_nchw, p1, p2)
    out = jax.block_until_ready(out)
    assert out.shape == (N, Cout, H, W), out.shape

    # Sanity-check against a pure-JAX reference (bf16 matmul inputs, like the kernel;
    # tolerance covers the bf16-rounded intermediate between the two fused layers).
    x_nhwc = jnp.transpose(x_nchw, (0, 2, 3, 1))
    ref = _reference_conv_relu_bn(_reference_conv_relu_bn(x_nhwc, p1), p2)
    ref = jnp.transpose(ref, (0, 3, 1, 2))
    max_err = float(jnp.max(jnp.abs(out - ref)))
    assert jnp.allclose(out, ref, atol=1e-2, rtol=1e-2), max_err

    print("KERNEL_OK")
</pallas_src>

<mosaic_0001>
module attributes {stable_mosaic.version = 11 : i64} {
  func.func @_conv_block_kernel(%arg0: i32, %arg1: memref<1x16x16x128xbf16, #tpu.memory_space<vmem>>, %arg2: memref<3x384x128xbf16, #tpu.memory_space<vmem>>, %arg3: memref<3x384x128xbf16, #tpu.memory_space<vmem>>, %arg4: memref<3x128xf32, #tpu.memory_space<vmem>>, %arg5: memref<3x128xf32, #tpu.memory_space<vmem>>, %arg6: memref<1x16x16x128xf32, #tpu.memory_space<vmem>>, %arg7: memref<18x18x128xbf16, #tpu.memory_space<vmem>>, %arg8: memref<18x18x128xbf16, #tpu.memory_space<vmem>>) attributes {dimension_semantics = [#tpu.dimension_semantics<parallel>], iteration_bounds = array<i64: 2>, scalar_prefetch = 0 : i64, scratch_operands = 2 : i64, tpu.core_type = #tpu.core_type<tc>, window_params = [{transform_indices = @transform_0, window_bounds = array<i64: 1, 16, 16, 128>}, {pipeline_mode = #tpu.pipeline_mode<synchronous>, transform_indices = @transform_1, window_bounds = array<i64: 3, 384, 128>}, {pipeline_mode = #tpu.pipeline_mode<synchronous>, transform_indices = @transform_2, window_bounds = array<i64: 3, 384, 128>}, {pipeline_mode = #tpu.pipeline_mode<synchronous>, transform_indices = @transform_3, window_bounds = array<i64: 3, 128>}, {pipeline_mode = #tpu.pipeline_mode<synchronous>, transform_indices = @transform_4, window_bounds = array<i64: 3, 128>}, {transform_indices = @transform_5, window_bounds = array<i64: 1, 16, 16, 128>}]} {
    %cst = arith.constant 0.000000e+00 : bf16
    %0 = vector.broadcast %cst : bf16 to vector<18x18x128xbf16>
    %c0 = arith.constant 0 : index
    %c0_0 = arith.constant 0 : index
    %c0_1 = arith.constant 0 : index
    %1 = vector.load %arg7[%c0, %c0_0, %c0_1] : memref<18x18x128xbf16, #tpu.memory_space<vmem>>, vector<18x18x128xbf16>
    tpu.vector_store %arg7[%c0, %c0_0, %c0_1], %0 {strides = array<i32>} : memref<18x18x128xbf16, #tpu.memory_space<vmem>>, vector<18x18x128xbf16>,
    %c0_2 = arith.constant 0 : index
    %c0_3 = arith.constant 0 : index
    %c0_4 = arith.constant 0 : index
    %c0_5 = arith.constant 0 : index
    %2 = vector.load %arg1[%c0_2, %c0_3, %c0_4, %c0_5] : memref<1x16x16x128xbf16, #tpu.memory_space<vmem>>, vector<1x16x16x128xbf16>
    %3 = vector.shape_cast %2 : vector<1x16x16x128xbf16> to vector<16x16x128xbf16>
    %c1 = arith.constant 1 : index
    %c1_6 = arith.constant 1 : index
    %c0_7 = arith.constant 0 : index
    %4 = vector.load %arg7[%c1, %c1_6, %c0_7] : memref<18x18x128xbf16, #tpu.memory_space<vmem>>, vector<16x16x128xbf16>
    tpu.vector_store %arg7[%c1, %c1_6, %c0_7], %3 {strides = array<i32>} : memref<18x18x128xbf16, #tpu.memory_space<vmem>>, vector<16x16x128xbf16>,
    %c0_8 = arith.constant 0 : index
    %c0_9 = arith.constant 0 : index
    %c0_10 = arith.constant 0 : index
    %5 = vector.load %arg7[%c0_8, %c0_9, %c0_10] : memref<18x18x128xbf16, #tpu.memory_space<vmem>>, vector<18x16x128xbf16>
    %c0_11 = arith.constant 0 : index
    %c1_12 = arith.constant 1 : index
    %c0_13 = arith.constant 0 : index
    %6 = vector.load %arg7[%c0_11, %c1_12, %c0_13] : memref<18x18x128xbf16, #tpu.memory_space<vmem>>, vector<18x16x128xbf16>
    %c0_14 = arith.constant 0 : index
    %c2 = arith.constant 2 : index
    %c0_15 = arith.constant 0 : index
    %7 = vector.load %arg7[%c0_14, %c2, %c0_15] : memref<18x18x128xbf16, #tpu.memory_space<vmem>>, vector<18x16x128xbf16>
    %8 = tpu.concatenate %5, %6, %7 in 2 : vector<18x16x128xbf16>, vector<18x16x128xbf16>, vector<18x16x128xbf16> -> vector<18x16x384xbf16>
    %cst_16 = arith.constant 0.000000e+00 : f32
    %9 = vector.broadcast %cst_16 : f32 to vector<256x128xf32>
    %10 = vector.extract_strided_slice %8 {offsets = [0, 0, 0], sizes = [16, 16, 384], strides = [1, 1, 1]} : vector<18x16x384xbf16> to vector<16x16x384xbf16>
    %11 = vector.shape_cast %10 : vector<16x16x384xbf16> to vector<256x384xbf16>
    %c0_17 = arith.constant 0 : index
    %c0_18 = arith.constant 0 : index
    %c0_19 = arith.constant 0 : index
    %12 = vector.load %arg2[%c0_17, %c0_18, %c0_19] : memref<3x384x128xbf16, #tpu.memory_space<vmem>>, vector<1x384x128xbf16>
    %13 = vector.shape_cast %12 : vector<1x384x128xbf16> to vector<384x128xbf16>
    %cst_20 = arith.constant dense<0.000000e+00> : vector<256x128xf32>
    %14 = tpu.matmul %11, %13, %cst_20 {dimension_numbers = #tpu.dot_dimension_numbers<[1], [0], [0], [1], [0, 0, 1, 1], [], []>} : vector<256x384xbf16>, vector<384x128xbf16>, vector<256x128xf32> -> vector<256x128xf32>
    %15 = arith.addf %9, %14 : vector<256x128xf32>
    %16 = vector.extract_strided_slice %8 {offsets = [1, 0, 0], sizes = [16, 16, 384], strides = [1, 1, 1]} : vector<18x16x384xbf16> to vector<16x16x384xbf16>
    %17 = vector.shape_cast %16 : vector<16x16x384xbf16> to vector<256x384xbf16>
    %c1_21 = arith.constant 1 : index
    %c0_22 = arith.constant 0 : index
    %c0_23 = arith.constant 0 : index
    %18 = vector.load %arg2[%c1_21, %c0_22, %c0_23] : memref<3x384x128xbf16, #tpu.memory_space<vmem>>, vector<1x384x128xbf16>
    %19 = vector.shape_cast %18 : vector<1x384x128xbf16> to vector<384x128xbf16>
    %cst_24 = arith.constant dense<0.000000e+00> : vector<256x128xf32>
    %20 = tpu.matmul %17, %19, %cst_24 {dimension_numbers = #tpu.dot_dimension_numbers<[1], [0], [0], [1], [0, 0, 1, 1], [], []>} : vector<256x384xbf16>, vector<384x128xbf16>, vector<256x128xf32> -> vector<256x128xf32>
    %21 = arith.addf %15, %20 : vector<256x128xf32>
    %22 = vector.extract_strided_slice %8 {offsets = [2, 0, 0], sizes = [16, 16, 384], strides = [1, 1, 1]} : vector<18x16x384xbf16> to vector<16x16x384xbf16>
    %23 = vector.shape_cast %22 : vector<16x16x384xbf16> to vector<256x384xbf16>
    %c2_25 = arith.constant 2 : index
    %c0_26 = arith.constant 0 : index
    %c0_27 = arith.constant 0 : index
    %24 = vector.load %arg2[%c2_25, %c0_26, %c0_27] : memref<3x384x128xbf16, #tpu.memory_space<vmem>>, vector<1x384x128xbf16>
    %25 = vector.shape_cast %24 : vector<1x384x128xbf16> to vector<384x128xbf16>
    %cst_28 = arith.constant dense<0.000000e+00> : vector<256x128xf32>
    %26 = tpu.matmul %23, %25, %cst_28 {dimension_numbers = #tpu.dot_dimension_numbers<[1], [0], [0], [1], [0, 0, 1, 1], [], []>} : vector<256x384xbf16>, vector<384x128xbf16>, vector<256x128xf32> -> vector<256x128xf32>
    %27 = arith.addf %21, %26 : vector<256x128xf32>
    %c0_29 = arith.constant 0 : index
    %c0_30 = arith.constant 0 : index
    %28 = vector.load %arg4[%c0_29, %c0_30] : memref<3x128xf32, #tpu.memory_space<vmem>>, vector<1x128xf32>
    %29 = vector.shape_cast %28 : vector<1x128xf32> to vector<128xf32>
    %30 = vector.shape_cast %29 : vector<128xf32> to vector<1x128xf32>
    %31 = vector.broadcast %30 : vector<1x128xf32> to vector<256x128xf32>
    %32 = arith.addf %27, %31 : vector<256x128xf32>
    %cst_31 = arith.constant 0.000000e+00 : f32
    %33 = vector.broadcast %cst_31 : f32 to vector<256x128xf32>
    %34 = arith.maximumf %32, %33 : vector<256x128xf32>
    %c1_32 = arith.constant 1 : index
    %c0_33 = arith.constant 0 : index
    %35 = vector.load %arg4[%c1_32, %c0_33] : memref<3x128xf32, #tpu.memory_space<vmem>>, vector<1x128xf32>
    %36 = vector.shape_cast %35 : vector<1x128xf32> to vector<128xf32>
    %37 = vector.shape_cast %36 : vector<128xf32> to vector<1x128xf32>
    %38 = vector.broadcast %37 : vector<1x128xf32> to vector<256x128xf32>
    %39 = arith.mulf %34, %38 : vector<256x128xf32>
    %c2_34 = arith.constant 2 : index
    %c0_35 = arith.constant 0 : index
    %40 = vector.load %arg4[%c2_34, %c0_35] : memref<3x128xf32, #tpu.memory_space<vmem>>, vector<1x128xf32>
    %41 = vector.shape_cast %40 : vector<1x128xf32> to vector<128xf32>
    %42 = vector.shape_cast %41 : vector<128xf32> to vector<1x128xf32>
    %43 = vector.broadcast %42 : vector<1x128xf32> to vector<256x128xf32>
    %44 = arith.addf %39, %43 : vector<256x128xf32>
    %cst_36 = arith.constant 0.000000e+00 : bf16
    %45 = vector.broadcast %cst_36 : bf16 to vector<18x18x128xbf16>
    %c0_37 = arith.constant 0 : index
    %c0_38 = arith.constant 0 : index
    %c0_39 = arith.constant 0 : index
    %46 = vector.load %arg8[%c0_37, %c0_38, %c0_39] : memref<18x18x128xbf16, #tpu.memory_space<vmem>>, vector<18x18x128xbf16>
    tpu.vector_store %arg8[%c0_37, %c0_38, %c0_39], %45 {strides = array<i32>} : memref<18x18x128xbf16, #tpu.memory_space<vmem>>, vector<18x18x128xbf16>,
    %47 = vector.shape_cast %44 : vector<256x128xf32> to vector<16x16x128xf32>
    %48 = arith.truncf %47 : vector<16x16x128xf32> to vector<16x16x128xbf16>
    %c1_40 = arith.constant 1 : index
    %c1_41 = arith.constant 1 : index
    %c0_42 = arith.constant 0 : index
    %49 = vector.load %arg8[%c1_40, %c1_41, %c0_42] : memref<18x18x128xbf16, #tpu.memory_space<vmem>>, vector<16x16x128xbf16>
    tpu.vector_store %arg8[%c1_40, %c1_41, %c0_42], %48 {strides = array<i32>} : memref<18x18x128xbf16, #tpu.memory_space<vmem>>, vector<16x16x128xbf16>,
    %c0_43 = arith.constant 0 : index
    %c0_44 = arith.constant 0 : index
    %c0_45 = arith.constant 0 : index
    %50 = vector.load %arg8[%c0_43, %c0_44, %c0_45] : memref<18x18x128xbf16, #tpu.memory_space<vmem>>, vector<18x16x128xbf16>
    %c0_46 = arith.constant 0 : index
    %c1_47 = arith.constant 1 : index
    %c0_48 = arith.constant 0 : index
    %51 = vector.load %arg8[%c0_46, %c1_47, %c0_48] : memref<18x18x128xbf16, #tpu.memory_space<vmem>>, vector<18x16x128xbf16>
    %c0_49 = arith.constant 0 : index
    %c2_50 = arith.constant 2 : index
    %c0_51 = arith.constant 0 : index
    %52 = vector.load %arg8[%c0_49, %c2_50, %c0_51] : memref<18x18x128xbf16, #tpu.memory_space<vmem>>, vector<18x16x128xbf16>
    %53 = tpu.concatenate %50, %51, %52 in 2 : vector<18x16x128xbf16>, vector<18x16x128xbf16>, vector<18x16x128xbf16> -> vector<18x16x384xbf16>
    %cst_52 = arith.constant 0.000000e+00 : f32
    %54 = vector.broadcast %cst_52 : f32 to vector<256x128xf32>
    %55 = vector.extract_strided_slice %53 {offsets = [0, 0, 0], sizes = [16, 16, 384], strides = [1, 1, 1]} : vector<18x16x384xbf16> to vector<16x16x384xbf16>
    %56 = vector.shape_cast %55 : vector<16x16x384xbf16> to vector<256x384xbf16>
    %c0_53 = arith.constant 0 : index
    %c0_54 = arith.constant 0 : index
    %c0_55 = arith.constant 0 : index
    %57 = vector.load %arg3[%c0_53, %c0_54, %c0_55] : memref<3x384x128xbf16, #tpu.memory_space<vmem>>, vector<1x384x128xbf16>
    %58 = vector.shape_cast %57 : vector<1x384x128xbf16> to vector<384x128xbf16>
    %cst_56 = arith.constant dense<0.000000e+00> : vector<256x128xf32>
    %59 = tpu.matmul %56, %58, %cst_56 {dimension_numbers = #tpu.dot_dimension_numbers<[1], [0], [0], [1], [0, 0, 1, 1], [], []>} : vector<256x384xbf16>, vector<384x128xbf16>, vector<256x128xf32> -> vector<256x128xf32>
    %60 = arith.addf %54, %59 : vector<256x128xf32>
    %61 = vector.extract_strided_slice %53 {offsets = [1, 0, 0], sizes = [16, 16, 384], strides = [1, 1, 1]} : vector<18x16x384xbf16> to vector<16x16x384xbf16>
    %62 = vector.shape_cast %61 : vector<16x16x384xbf16> to vector<256x384xbf16>
    %c1_57 = arith.constant 1 : index
    %c0_58 = arith.constant 0 : index
    %c0_59 = arith.constant 0 : index
    %63 = vector.load %arg3[%c1_57, %c0_58, %c0_59] : memref<3x384x128xbf16, #tpu.memory_space<vmem>>, vector<1x384x128xbf16>
    %64 = vector.shape_cast %63 : vector<1x384x128xbf16> to vector<384x128xbf16>
    %cst_60 = arith.constant dense<0.000000e+00> : vector<256x128xf32>
    %65 = tpu.matmul %62, %64, %cst_60 {dimension_numbers = #tpu.dot_dimension_numbers<[1], [0], [0], [1], [0, 0, 1, 1], [], []>} : vector<256x384xbf16>, vector<384x128xbf16>, vector<256x128xf32> -> vector<256x128xf32>
    %66 = arith.addf %60, %65 : vector<256x128xf32>
    %67 = vector.extract_strided_slice %53 {offsets = [2, 0, 0], sizes = [16, 16, 384], strides = [1, 1, 1]} : vector<18x16x384xbf16> to vector<16x16x384xbf16>
    %68 = vector.shape_cast %67 : vector<16x16x384xbf16> to vector<256x384xbf16>
    %c2_61 = arith.constant 2 : index
    %c0_62 = arith.constant 0 : index
    %c0_63 = arith.constant 0 : index
    %69 = vector.load %arg3[%c2_61, %c0_62, %c0_63] : memref<3x384x128xbf16, #tpu.memory_space<vmem>>, vector<1x384x128xbf16>
    %70 = vector.shape_cast %69 : vector<1x384x128xbf16> to vector<384x128xbf16>
    %cst_64 = arith.constant dense<0.000000e+00> : vector<256x128xf32>
    %71 = tpu.matmul %68, %70, %cst_64 {dimension_numbers = #tpu.dot_dimension_numbers<[1], [0], [0], [1], [0, 0, 1, 1], [], []>} : vector<256x384xbf16>, vector<384x128xbf16>, vector<256x128xf32> -> vector<256x128xf32>
    %72 = arith.addf %66, %71 : vector<256x128xf32>
    %c0_65 = arith.constant 0 : index
    %c0_66 = arith.constant 0 : index
    %73 = vector.load %arg5[%c0_65, %c0_66] : memref<3x128xf32, #tpu.memory_space<vmem>>, vector<1x128xf32>
    %74 = vector.shape_cast %73 : vector<1x128xf32> to vector<128xf32>
    %75 = vector.shape_cast %74 : vector<128xf32> to vector<1x128xf32>
    %76 = vector.broadcast %75 : vector<1x128xf32> to vector<256x128xf32>
    %77 = arith.addf %72, %76 : vector<256x128xf32>
    %cst_67 = arith.constant 0.000000e+00 : f32
    %78 = vector.broadcast %cst_67 : f32 to vector<256x128xf32>
    %79 = arith.maximumf %77, %78 : vector<256x128xf32>
    %c1_68 = arith.constant 1 : index
    %c0_69 = arith.constant 0 : index
    %80 = vector.load %arg5[%c1_68, %c0_69] : memref<3x128xf32, #tpu.memory_space<vmem>>, vector<1x128xf32>
    %81 = vector.shape_cast %80 : vector<1x128xf32> to vector<128xf32>
    %82 = vector.shape_cast %81 : vector<128xf32> to vector<1x128xf32>
    %83 = vector.broadcast %82 : vector<1x128xf32> to vector<256x128xf32>
    %84 = arith.mulf %79, %83 : vector<256x128xf32>
    %c2_70 = arith.constant 2 : index
    %c0_71 = arith.constant 0 : index
    %85 = vector.load %arg5[%c2_70, %c0_71] : memref<3x128xf32, #tpu.memory_space<vmem>>, vector<1x128xf32>
    %86 = vector.shape_cast %85 : vector<1x128xf32> to vector<128xf32>
    %87 = vector.shape_cast %86 : vector<128xf32> to vector<1x128xf32>
    %88 = vector.broadcast %87 : vector<1x128xf32> to vector<256x128xf32>
    %89 = arith.addf %84, %88 : vector<256x128xf32>
    %90 = vector.shape_cast %89 : vector<256x128xf32> to vector<16x16x128xf32>
    %c0_72 = arith.constant 0 : index
    %c0_73 = arith.constant 0 : index
    %c0_74 = arith.constant 0 : index
    %c0_75 = arith.constant 0 : index
    %91 = vector.load %arg6[%c0_72, %c0_73, %c0_74, %c0_75] : memref<1x16x16x128xf32, #tpu.memory_space<vmem>>, vector<1x16x16x128xf32>
    %92 = vector.shape_cast %91 : vector<1x16x16x128xf32> to vector<16x16x128xf32>
    %93 = vector.shape_cast %90 : vector<16x16x128xf32> to vector<1x16x16x128xf32>
    tpu.vector_store %arg6[%c0_72, %c0_73, %c0_74, %c0_75], %93 {strides = array<i32>} : memref<1x16x16x128xf32, #tpu.memory_space<vmem>>, vector<1x16x16x128xf32>,
    return
  }
  func.func @transform_0(%arg0: i32) -> (i32, i32, i32, i32) {
    %c0_i32 = arith.constant 0 : i32
    %c0_i32_0 = arith.constant 0 : i32
    %c0_i32_1 = arith.constant 0 : i32
    %c0_i32_2 = arith.constant 0 : i32
    return %arg0, %c0_i32, %c0_i32_0, %c0_i32_1 : i32, i32, i32, i32
  }
  func.func @transform_1(%arg0: i32) -> (i32, i32, i32) {
    %c0_i32 = arith.constant 0 : i32
    %c0_i32_0 = arith.constant 0 : i32
    %c0_i32_1 = arith.constant 0 : i32
    %c0_i32_2 = arith.constant 0 : i32
    return %c0_i32, %c0_i32_0, %c0_i32_1 : i32, i32, i32
  }
  func.func @transform_2(%arg0: i32) -> (i32, i32, i32) {
    %c0_i32 = arith.constant 0 : i32
    %c0_i32_0 = arith.constant 0 : i32
    %c0_i32_1 = arith.constant 0 : i32
    %c0_i32_2 = arith.constant 0 : i32
    return %c0_i32, %c0_i32_0, %c0_i32_1 : i32, i32, i32
  }
  func.func @transform_3(%arg0: i32) -> (i32, i32) {
    %c0_i32 = arith.constant 0 : i32
    %c0_i32_0 = arith.constant 0 : i32
    %c0_i32_1 = arith.constant 0 : i32
    return %c0_i32, %c0_i32_0 : i32, i32
  }
  func.func @transform_4(%arg0: i32) -> (i32, i32) {
    %c0_i32 = arith.constant 0 : i32
    %c0_i32_0 = arith.constant 0 : i32
    %c0_i32_1 = arith.constant 0 : i32
    return %c0_i32, %c0_i32_0 : i32, i32
  }
  func.func @transform_5(%arg0: i32) -> (i32, i32, i32, i32) {
    %c0_i32 = arith.constant 0 : i32
    %c0_i32_0 = arith.constant 0 : i32
    %c0_i32_1 = arith.constant 0 : i32
    %c0_i32_2 = arith.constant 0 : i32
    return %arg0, %c0_i32, %c0_i32_0, %c0_i32_1 : i32, i32, i32, i32
  }
}

</mosaic_0001>

<bundles_post_ra>
// kernel: tpu_custom_call.1
= control target key start
LH: loop header
LB: loop body
LE: loop exit
PB: predicated region body
PF: predicated region fallthrough
CT: control target
= control target key end

     0   :  { %10 = vsyncpa [#allocation5], 0  ;;  %s9452_s0 = inlined_call_operand.hbm [shape: bf16[2,16,16,128], index: 0, kind: input, shape index: {}]   ;;  %s9453_s1 = inlined_call_operand.hbm [shape: bf16[3,384,128], index: 1, kind: input, shape index: {}]   ;;  %s9454_s2 = inlined_call_operand.hbm [shape: bf16[3,384,128], index: 2, kind: input, shape index: {}]   ;;  %s9455_s3 = inlined_call_operand.hbm [shape: f32[3,128], index: 3, kind: input, shape index: {}]   ;;  %s9456_s4 = inlined_call_operand.hbm [shape: f32[3,128], index: 4, kind: input, shape index: {}]   ;;  %s9457_s5 = inlined_call_operand.hbm [shape: f32[2,16,16,128], index: 5, kind: output, shape index: {}]  }
   0x1   :  { %12 = vsyncpa [#allocation5 + $0x1], 0 }
   0x2   :  { %13 = vsyncpa [#allocation8], 0 }
   0x3   :  { %14 = vsyncpa [#allocation11], 0 }
   0x4   :  { %15 = vsyncpa [#allocation6], 0 }
   0x5   :  { %17 = vsyncpa [#allocation6 + $0x1], 0  ;;  %s7131_s18 = smov 0   ;;  %s7133_s19 = smov 0  }
   0x6   :  { %s7135_s20 = smov 0   ;;  %s7137_s21 = smov 0  }
   0x7 LB: > { %s7152_s22 = sadd.s32 4294967295, %s7090_s21   ;;  %s5793_s23 = sadd.s32 4294967294, %s7090_s21   ;;  %s7090_s21 = sphi %s7137_s21, %s9680_s21   ;;  %s7086_s20 = sphi %s7135_s20, %s9679_s20   ;;  %s7082_s19 = sphi %s7133_s19, %s9678_s19   ;;  %s7078_s18 = sphi %s7131_s18, %s9677_s18  }
   0x8   : > { %p43_p0 = scmp.ne.s32.totalorder %s7082_s19, %s7078_s18  ;;  %p44_p1 = scmp.eq.s32.totalorder %s7152_s22, 0 }
   0x9   : > { %p151_p2 = scmp.eq.s32.totalorder %s7152_s22, 1  ;;  %p157_p3 = scmp.eq.s32.totalorder %s5793_s23, 1 }
   0xa   : > { %p7161_p4 = por %p44_p1, %p43_p0  ;;  %p5794_p5 = scmp.ge.s32.totalorder %s7090_s21, 1 }
   0xb   : > { %p7166_p6 = por %p157_p3, %p43_p0  ;;  %p164_p7 = scmp.lt.s32.totalorder %s7090_s21, 3 }
   0xc   : > { %s175_s28 = sshll.u32 %s9453_s1, 4  ;;  %s7092_s30 = smov [#allocation7]   ;;  %s176_s28 = int_to_ptr.hbm [resolvable:$true] %s175_s28 }
   0xd   : > { %p7174_p8 = pnand %p5794_p5, %p164_p7  ;;  %s177_s6 = sshll.u32 %s7092_s30, 4  ;;  %s178_s6 = int_to_ptr.vmem [resolvable:$true] %s177_s6 }
   0xe   : > { %s204_s10 = sshll.u32 %s9455_s3, 4  ;;  %s9458_s11 = smov 64   ;;  %s205_s10 = int_to_ptr.hbm [resolvable:$true] %s204_s10 }
   0xf   : > { %p6715_p9 = pneg %p7174_p8  ;;  %s7094_s12 = smov 4  }
  0x10   : > { %s7095_s13 = smov [#allocation10]   ;;  %s189_s17 = sshll.u32 %s9454_s2, 4  ;;  %s190_s17 = int_to_ptr.hbm [resolvable:$true] %s189_s17 }
  0x11   : > { %p7182_p10 = pnand %p6715_p9, %p44_p1  ;;  %s206_s14 = sshll.u32 %s7095_s13, 4  ;;  %s207_s14 = int_to_ptr.vmem [resolvable:$true] %s206_s14 }
  0x12   : > { %s216_s27 = sshll.u32 %s9456_s4, 4  ;;  %s7211_s9 = sadd.s32 1, %s7090_s21   ;;  %s217_s27 = int_to_ptr.hbm [resolvable:$true] %s216_s27 }
  0x13   : > { %6718 = dma.hbm_to_vmem [thread:$0]  (!%p7182_p10), %s176_s28, 9216, %s178_s6, [#allocation8], %s9458_s11, %s9458_s11, %s7094_s12  }
  0x14   : > { %6724 = dma.hbm_to_vmem [thread:$0]  (!%p7182_p10), %s205_s10, 64, %s207_s14, [#allocation11]  }
  0x15   : > { %s7096_s28 = smov [#allocation9]   ;;  %s7097_s6 = smov [#allocation12]  }
  0x16   : > { %s191_s30 = sshll.u32 %s7096_s28, 4  ;;  %s218_s8 = sshll.u32 %s7097_s6, 4  ;;  %s192_s30 = int_to_ptr.vmem [resolvable:$true] %s191_s30  ;;  %s219_s8 = int_to_ptr.vmem [resolvable:$true] %s218_s8 }
  0x17   : > { %6721 = dma.hbm_to_vmem [thread:$0]  (!%p7182_p10), %s190_s17, 9216, %s192_s30, [#allocation8], %s9458_s11, %s9458_s11, %s7094_s12  }
  0x18   : > { %6727 = dma.hbm_to_vmem [thread:$0]  (!%p7182_p10), %s217_s27, 64, %s219_s8, [#allocation11]  }
  0x19   : > { %s30_s10 = sadd.s32 1, %s7086_s20  ;;  %s27_s13 = ssub.s32 %s7090_s21, %s7211_s9 }
  0x1a   : > { %p37_p12 = scmp.ne.s32.totalorder %s7086_s20, %s7082_s19  ;;  %p28_p13 = scmp.eq.s32.totalorder %s27_s13, 0 }
  0x1b   : > { %p38_p0 = scmp.eq.s32.totalorder %s7090_s21, 0  ;;  %p6740_p5 = scmp.lt.s32.totalorder %s7090_s21, 2 }
  0x1c   : > { %p7221_p3 = por %p151_p2, %p37_p12  ;;  %s229_s16 = sand.u32 1, %s7086_s20  }
  0x1d   : > { %s7227_s15 = scalar_select %p28_p13, %s7086_s20, %s30_s10  }
  0x1e   : > { %p39_p7 = por %p38_p0, %p37_p12  ;;  %s5800_s7 = sshll.u32 %s229_s16, 7 }
  0x1f   : > { %s6391_s17 = sshll.u32 %s7090_s21, 7  ;;  %s233_s28 = scalar_lea.vmem [#allocation4], %s5800_s7 }
  0x20   : > { %s238_s27 = scalar_lea.hbm %s9452_s0, %s6391_s17  ;;  %s241_s30 = sshll.u32 %s233_s28, 4  ;;  %s242_s30 = int_to_ptr.vmem [resolvable:$true] %s241_s30 }
  0x21   : > { %s239_s6 = sshll.u32 %s238_s27, 4  ;;  %p7234_p2 = pnand %p6740_p5, %p39_p7  ;;  %s240_s6 = int_to_ptr.hbm [resolvable:$true] %s239_s6 }
  0x22   : > { %s230_s10 = scalar_lea.sflag [#allocation5], %s229_s16  ;;  %s6983_s13 = sshra.s32 %s240_s6, 4  ;;  %s6984_s13 = int_to_ptr.hbm [resolvable:$true] %s6983_s13 }
  0x23   : > { %s6985_s11 = scalar_lea.hbm %s6984_s13, 128  ;;  %p6987_p10 = pneg %p7234_p2 }
  0x24   : > { %p6986_p9 = scmp.ne.s32.totalorder %s6984_s13, %s6985_s11  ;;  %s6990_s23 = scalar_lea.hbm %s9452_s0, 256 }
  0x25   : > { %p6991_p0 = scmp.lt.s32.totalorder %s6984_s13, %s9452_s0  ;;  %p6992_p5 = scmp.lt.s32.totalorder %s6990_s23, %s6985_s11 }
  0x26   : > { %p6988_p12 = pnand %p6987_p10, %p6986_p9 }
  0x27   : > { %p6993_p7 = por %p6992_p5, %p6991_p0 }
  0x28   : > { %p6989_p13 = pneg %p6988_p12 }
  0x2a   : > { %p6994_p11 = pnand %p6993_p7, %p6989_p13 }
  0x2c   : > { %6997 = shalt.err (!%p6994_p11)
}
  0x2d   : > { %s9529_s16 = smov 64   ;;  %253 = sbr.rel (%p7174_p8) target bundleno = 1650 (0x672), region = 40 }
  0x2e   : > { %6731 = dma.hbm_to_vmem [thread:$0]  (!%p7234_p2), %s240_s6, 2048, %s242_s30, %s230_s10, %s9529_s16, %s9529_s16, %s7094_s12  }
  0x32   : > { %s7254_s28 = sand.u32 1, %s7082_s19  }
  0x33   : > { %s5804_s13 = sshll.u32 %s7254_s28, 7  ;;  %s256_s11 = scalar_lea.sflag [#allocation5], %s7254_s28 }
  0x34   : > { %s7258_s17 = scalar_lea.vmem [#allocation4], %s5804_s13 }
  0x35   : > { %7058 = dma.done.wait (%p7161_p4), %s256_s11, 2048  }
  0x36   : > { %7060 = vsyncadd (%p7161_p4), %s256_s11, 4294965248 }
  0x37   : > { %7062 = dma.done.wait (%p44_p1), [#allocation8], 18432  }
  0x38   : > { %7064 = vsyncadd (%p44_p1), [#allocation8], 4294948864 }
  0x39   : > { %7066 = dma.done.wait (%p44_p1), [#allocation11], 128  }
  0x3a   : > { %7068 = vsyncadd (%p44_p1), [#allocation11], 4294967168  ;;  %v7098_v0 = vmov 0   ;;  %v6423_v1 = vld [vmem:[#allocation7 + $0xf8] sm:$0xff]  ;;  %v6422_v3 = vld [vmem:[#allocation7 + $0xf0] sm:$0xff]  ;;  %vm718_vm2 = vcmask 1043456  }
  0x3b   : > { %311 = vst [vmem:[#allocation2 + $0xc] sm:$0xf] %v7098_v0  ;;  %v6431_v2 = vld [vmem:[#allocation7 + $0x138] sm:$0xff]  ;;  %1672 = vmatpush.bf16.msra.mxu0 %v6423_v1  ;;  %6679 = vmatpush.bf16.msra.mxu2 %v6423_v1  ;;  %v6430_v4 = vld [vmem:[#allocation7 + $0x130] sm:$0xff]  ;;  %vm394_vm0 = vsmask.f32 256 }
  0x3c   : > { %312 = vst [vmem:[#allocation2 + $0x10] sm:$0xf] %v7098_v0  ;;  %1761 = vmatpush.bf16.msra.mxu1 %v6431_v2  ;;  %6687 = vmatpush.bf16.msra.mxu3 %v6431_v2  ;;  %vm395_vm1 = vsmask.f32 4368  ;;  %v362_v5 = vld [vmem:[%s7258_s17] sm:$0xf] }
  0x3d   : > { %308 = vst [vmem:[#allocation2] sm:$0xf] %v7098_v0  ;;  %v363_v6 = vld [vmem:[%s7258_s17 + $0x4] sm:$0xf]  ;;  %vm719_vm3 = vsmask.f32 7938  ;;  %vm7288_vm4 = vmor %vm394_vm0, %vm395_vm1 }
  0x3e   : > { %309 = vst [vmem:[#allocation2 + $0x4] sm:$0xf] %v7098_v0  ;;  %v6421_v7 = vld [vmem:[#allocation7 + $0xe8] sm:$0xff]  ;;  %v398_v8 = vshrl.u32 %v362_v5, 16  ;;  %v401_v9 = vshll.u32 %v362_v5, 16  ;;  %v406_v10 = vshrl.u32 %v363_v6, 16  ;;  %vm7297_vm5 = vmand %vm718_vm2, %vm719_vm3 }
  0x3f   : > { %310 = vst [vmem:[#allocation2 + $0x8] sm:$0x1] %v7098_v0  ;;  %1673 = vmatpush.bf16.msra.mxu0 %v6422_v3  ;;  %6680 = vmatpush.bf16.msra.mxu2 %v6422_v3  ;;  %v409_v11 = vshll.u32 %v363_v6, 16  ;;  %v6429_v12 = vld [vmem:[#allocation7 + $0x128] sm:$0xff]  ;;  %v9530_v13 = vmov 0  ;;  %v9533_v16 = vmov 0 }
  0x40   : > { %313 = vst [vmem:[#allocation2 + $0x14] sm:$0x1] %v7098_v0  ;;  %1762 = vmatpush.bf16.msra.mxu1 %v6430_v4  ;;  %6688 = vmatpush.bf16.msra.mxu3 %v6430_v4  ;;  %v9531_v13 = vsel %vm7288_vm4, 4294967295, %v9530_v13  ;;  %v400_v14 = vrot.slane %v398_v8, 7  ;;  %v7292_v15 = vrot.slane %v406_v10, 7  ;;  %v9534_v16 = vsel %vm7297_vm5, 4294967295, %v9533_v16 }
  0x41   : > { %314 = vst [vmem:[#allocation2 + $0x18] sm:$0xf] %v7098_v0  ;;  %v6420_v18 = vld [vmem:[#allocation7 + $0xe0] sm:$0xff]  ;;  %v6419_v25 = vld [vmem:[#allocation7 + $0xd8] sm:$0xff]  ;;  %v6418_v27 = vld [vmem:[#allocation7 + $0xd0] sm:$0xff]  ;;  %vm725_vm6 = vcmask 1040384  }
  0x42   : > { %315 = vst [vmem:[#allocation2 + $0x1c] sm:$0xf] %v7098_v0  ;;  %v721_v17 = vld [vmem:[#allocation2 + $0xc] sm:$0xf]  ;;  %v403_v19 = vor.u32 %v401_v9, %v400_v14  ;;  %v404_v20 = vrot.slane %v400_v14, 4  ;;  %v411_v21 = vor.u32 %v409_v11, %v7292_v15  ;;  %v6428_v22 = vld [vmem:[#allocation7 + $0x120] sm:$0xff]  ;;  %vm7427_vm7 = vmand %vm725_vm6, %vm394_vm0 }
  0x43   : > { %316 = vst [vmem:[#allocation2 + $0x20] sm:$0x1] %v7098_v0  ;;  %1674 = vmatpush.bf16.msra.mxu0 %v6421_v7  ;;  %6681 = vmatpush.bf16.msra.mxu2 %v6421_v7  ;;  %v6427_v26 = vld [vmem:[#allocation7 + $0x118] sm:$0xff]  ;;  %v6426_v28 = vld [vmem:[#allocation7 + $0x110] sm:$0xff]  ;;  %v6417_v29 = vld [vmem:[#allocation7 + $0xc8] sm:$0xff]  ;;  %v413_v56 = vrot.slane %v7292_v15, 4 }
  0x44   : > { %317 = vst [vmem:[#allocation2 + $0x24] sm:$0xf] %v7098_v0  ;;  %1763 = vmatpush.bf16.msra.mxu1 %v6429_v12  ;;  %6689 = vmatpush.bf16.msra.mxu3 %v6429_v12  ;;  %v412_v23 = vsel %vm7288_vm4, %v404_v20, %v411_v21  ;;  %v722_v24 = vsel %vm7297_vm5, %v403_v19, %v721_v17  ;;  %v6425_v30 = vld [vmem:[#allocation7 + $0x108] sm:$0xff]  ;;  %v6416_v33 = vld [vmem:[#allocation7 + $0xc0] sm:$0xff]  ;;  %v6439_v47 = vld [vmem:[#allocation7 + $0x178] sm:$0xff]  ;;  %v9536_v7 = vmov 0 }
  0x45   : > { %318 = vst [vmem:[#allocation2 + $0x28] sm:$0xf] %v7098_v0  ;;  %v6424_v34 = vld [vmem:[#allocation7 + $0x100] sm:$0xff]  ;;  %v7394_v39 = vld [vmem:[%s7258_s17 + $0xc] sm:$0xf]  ;;  %v6399_v48 = vld [vmem:[#allocation7 + $0x38] sm:$0xff] }
  0x46   : > { %319 = vst [vmem:[#allocation2 + $0x2c] sm:$0x1] %v7098_v0  ;;  %v378_v35 = vld [vmem:[%s7258_s17 + $0x40] sm:$0xf]  ;;  %v379_v36 = vld [vmem:[%s7258_s17 + $0x44] sm:$0xf] }
  0x47   : > { %9532 = vst [vmem:[#allocation18_spill] sm:$0xff] %v9531_v13  ;;  %1675 = vmatpush.bf16.msra.mxu0 %v6420_v18  ;;  %6682 = vmatpush.bf16.msra.mxu2 %v6420_v18  ;;  %v534_v37 = vshrl.u32 %v378_v35, 16  ;;  %v542_v38 = vshrl.u32 %v379_v36, 16  ;;  %v364_v40 = vld [vmem:[%s7258_s17 + $0x8] sm:$0xf]  ;;  %v537_v42 = vshll.u32 %v378_v35, 16 }
  0x48   : > { %320 = vst [vmem:[#allocation2 + $0x30] sm:$0xf] %v7098_v0  ;;  %1764 = vmatpush.bf16.msra.mxu1 %v6428_v22  ;;  %6690 = vmatpush.bf16.msra.mxu3 %v6428_v22  ;;  %v545_v43 = vshll.u32 %v379_v36, 16  ;;  %v423_v45 = vshrl.u32 %v7394_v39, 16  ;;  %v380_v46 = vld [vmem:[%s7258_s17 + $0x48] sm:$0xf] }
  0x49   : > { %9535 = vst [vmem:[#allocation19_spill] sm:$0xff] %v9534_v16  ;;  %v536_v41 = vrot.slane %v534_v37, 7  ;;  %v7400_v44 = vrot.slane %v542_v38, 7  ;;  %v6407_v49 = vld [vmem:[#allocation7 + $0x78] sm:$0xff]  ;;  %v415_v50 = vshrl.u32 %v364_v40, 16  ;;  %v551_v57 = vshrl.u32 %v380_v46, 16 }
  0x4a   : > { %321 = vst [vmem:[#allocation2 + $0x34] sm:$0xf] %v7098_v0  ;;  %v381_v51 = vld [vmem:[%s7258_s17 + $0x4c] sm:$0xf]  ;;  %v418_v59 = vshll.u32 %v364_v40, 16  ;;  %v7412_v60 = vrot.slane %v423_v45, 7 }
  0x4b   : > { %322 = vst [vmem:[#allocation2 + $0x38] sm:$0x1] %v7098_v0  ;;  %1676 = vmatpush.bf16.msra.mxu0 %v6419_v25  ;;  %6683 = vmatpush.bf16.msra.mxu2 %v6419_v25  ;;  %v539_v52 = vor.u32 %v537_v42, %v536_v41  ;;  %v540_v53 = vrot.slane %v536_v41, 4  ;;  %v547_v55 = vor.u32 %v545_v43, %v7400_v44  ;;  %v417_v58 = vrot.slane %v415_v50, 7  ;;  %v727_v62 = vld [vmem:[#allocation2 + $0x14] sm:$0x1] }
  0x4c   : > { %323 = vst [vmem:[#allocation2 + $0x3c] sm:$0xf] %v7098_v0  ;;  %1765 = vmatpush.bf16.msra.mxu1 %v6427_v26  ;;  %6691 = vmatpush.bf16.msra.mxu3 %v6427_v26  ;;  %v559_v61 = vshrl.u32 %v381_v51, 16  ;;  %v366_v63 = vld [vmem:[%s7258_s17 + $0x10] sm:$0xf]  ;;  %v426_v2 = vshll.u32 %v7394_v39, 16  ;;  %v728_v22 = vsel %vm7427_vm7, %v413_v56, %v727_v62 }
  0x4d   : > { %324 = vst [vmem:[#allocation2 + $0x40] sm:$0xf] %v7098_v0  ;;  %v367_v1 = vld [vmem:[%s7258_s17 + $0x14] sm:$0xf]  ;;  %v554_v3 = vshll.u32 %v380_v46, 16  ;;  %v548_v5 = vsel %vm7288_vm4, %v540_v53, %v547_v55  ;;  %v9537_v7 = vsel %vm7427_vm7, 4294967295, %v9536_v7  ;;  %v420_v18 = vor.u32 %v418_v59, %v417_v58 }
  0x4e   : > { %723 = vst [vmem:[#allocation2 + $0xc] sm:$0xf] %v722_v24  ;;  %v382_v4 = vld [vmem:[%s7258_s17 + $0x50] sm:$0xf]  ;;  %v553_v9 = vrot.slane %v551_v57, 7  ;;  %v432_v10 = vshrl.u32 %v366_v63, 16  ;;  %v428_v24 = vor.u32 %v426_v2, %v7412_v60 }
  0x4f   : > { %724 = vst [vmem:[#allocation2 + $0x10] sm:$0xf] %v412_v23  ;;  %1677 = vmatpush.bf16.msra.mxu0 %v6418_v27  ;;  %6684 = vmatpush.bf16.msra.mxu2 %v6418_v27  ;;  %v383_v11 = vld [vmem:[%s7258_s17 + $0x54] sm:$0xf]  ;;  %v549_v14 = vrot.slane %v7400_v44, 4  ;;  %v562_v15 = vshll.u32 %v381_v51, 16 }
  0x50   : > { %325 = vst [vmem:[#allocation2 + $0x44] sm:$0x1] %v7098_v0  ;;  %1766 = vmatpush.bf16.msra.mxu1 %v6426_v28  ;;  %6692 = vmatpush.bf16.msra.mxu3 %v6426_v28  ;;  %v440_v17 = vshrl.u32 %v367_v1, 16  ;;  %v430_v19 = vrot.slane %v7412_v60, 4  ;;  %v561_v20 = vrot.slane %v559_v61, 7  ;;  %v568_v21 = vshrl.u32 %v382_v4, 16 }
  0x51   : > { %326 = vst [vmem:[#allocation2 + $0x48] sm:$0xf] %v7098_v0  ;;  %v421_v23 = vrot.slane %v417_v58, 4  ;;  %v730_v25 = vld [vmem:[#allocation2 + $0x18] sm:$0xf]  ;;  %v576_v26 = vshrl.u32 %v383_v11, 16  ;;  %v556_v27 = vor.u32 %v554_v3, %v553_v9 }
  0x52   : > { %327 = vst [vmem:[#allocation2 + $0x4c] sm:$0xf] %v7098_v0  ;;  %v557_v28 = vrot.slane %v553_v9, 4  ;;  %v442_v36 = vrot.slane %v440_v17, 7  ;;  %v443_v37 = vshll.u32 %v367_v1, 16  ;;  %v731_v38 = vsel %vm7297_vm5, %v420_v18, %v730_v25  ;;  %v6438_v50 = vld [vmem:[#allocation7 + $0x170] sm:$0xff] }
  0x53   : > { %328 = vst [vmem:[#allocation2 + $0x50] sm:$0x1] %v7098_v0  ;;  %1678 = vmatpush.bf16.msra.mxu0 %v6417_v29  ;;  %6685 = vmatpush.bf16.msra.mxu2 %v6417_v29  ;;  %v434_v29 = vrot.slane %v432_v10, 7  ;;  %v566_v39 = vrot.slane %v561_v20, 4  ;;  %v570_v40 = vrot.slane %v568_v21, 7  ;;  %v571_v41 = vshll.u32 %v382_v4, 16 }
  0x54   : > { %329 = vst [vmem:[#allocation2 + $0x54] sm:$0xf] %v7098_v0  ;;  %1767 = vmatpush.bf16.msra.mxu1 %v6425_v30  ;;  %6693 = vmatpush.bf16.msra.mxu3 %v6425_v30  ;;  %v435_v30 = vshll.u32 %v366_v63, 16  ;;  %v734_v42 = vld [vmem:[#allocation2 + $0x20] sm:$0x1]  ;;  %v578_v43 = vrot.slane %v576_v26, 7 }
  0x55   : > { %330 = vst [vmem:[#allocation2 + $0x58] sm:$0xf] %v7098_v0  ;;  %v579_v44 = vshll.u32 %v383_v11, 16  ;;  %v6398_v51 = vld [vmem:[#allocation7 + $0x30] sm:$0xff]  ;;  %v438_v53 = vrot.slane %v434_v29, 4  ;;  %v735_v55 = vsel %vm7427_vm7, %v430_v19, %v734_v42  ;;  %v573_v56 = vor.u32 %v571_v41, %v570_v40  ;;  %s5809_s24 = sshll.u32 %s7254_s28, 8 }
  0x56   : > { %331 = vst [vmem:[#allocation2 + $0x5c] sm:$0x1] %v7098_v0  ;;  %v7319_v31 = vld [vmem:[#allocation2 + $0xc] sm:$0xff]   ;;  %v574_v58 = vrot.slane %v570_v40, 4  ;;  %v447_v63 = vrot.slane %v442_v36, 4  ;;  %v583_v9 = vrot.slane %v578_v43, 4 }
  0x57   : > { %332 = vst [vmem:[#allocation2 + $0x60] sm:$0xf] %v7098_v0  ;;  %v7321_v32 = vld [vmem:[#allocation2 + $0xc] sm:$0xf0]  ;;  %1679 = vmatpush.bf16.msra.mxu0 %v6416_v33  ;;  %6686 = vmatpush.bf16.msra.mxu2 %v6416_v33  ;;  %v1085_v12 = vshll.u32 %v7319_v31, 16  ;;  %v581_v59 = vor.u32 %v579_v44, %v578_v43  ;;  %v1083_v61 = vshrl.u32 %v7319_v31, 16 }
  0x58   : > { %333 = vst [vmem:[#allocation2 + $0x64] sm:$0xf] %v7098_v0  ;;  %1768 = vmatpush.bf16.msra.mxu1 %v6424_v34  ;;  %6694 = vmatpush.bf16.msra.mxu3 %v6424_v34  ;;  %v564_v34 = vor.u32 %v562_v15, %v561_v20  ;;  %vm1069_vm8 = vsmask.f32 7424  ;;  %v369_v26 = vld [vmem:[%s7258_s17 + $0x1c] sm:$0xf] }
  0x59   : > { %334 = vst [vmem:[#allocation2 + $0x68] sm:$0x1] %v7098_v0  ;;  %v1087_v3 = vrot.slane %v1085_v12, 1  ;;  %v368_v40 = vld [vmem:[%s7258_s17 + $0x18] sm:$0xf]  ;;  %v457_v41 = vshrl.u32 %v369_v26, 16 }
  0x5a   : > { %335 = vst [vmem:[#allocation2 + $0x6c] sm:$0xf] %v7098_v0  ;;  %1680 = vmatmul.bf16.vlgmr.msra.gmra.mxu0 %v7319_v31  ;;  %vm1358_vm9 = vcmask 1046528   ;;  %s9175_s29 = scalar_lea.vmem [#allocation13], %s5809_s24  ;;  %s6536_s12 = sshll.u32 %s7152_s22, 8 }
  0x5b   : > { %336 = vst [vmem:[#allocation2 + $0x70] sm:$0xf] %v7098_v0  ;;  %1850 = vmatpush.bf16.msrb.mxu2 %v6439_v47  ;;  %2172 = vmatpush.bf16.msrb.mxu0 %v6407_v49  ;;  %v437_v47 = vor.u32 %v435_v30, %v434_v29  ;;  %v565_v49 = vsel %vm7288_vm4, %v557_v28, %v564_v34  ;;  %s5678_s8 = scalar_lea.hbm %s9457_s5, %s6536_s12  ;;  %s5679_s10 = sshll.u32 %s9175_s29, 4  ;;  %s5680_s10 = int_to_ptr.vmem [resolvable:$true] %s5679_s10 }
  0x5c   : > { %337 = vst [vmem:[#allocation2 + $0x74] sm:$0x1] %v7098_v0  ;;  %2083 = vmatpush.bf16.msrb.mxu3 %v6399_v48  ;;  %v737_v48 = vld [vmem:[#allocation2 + $0x24] sm:$0xf]  ;;  %s5681_s7 = sshll.u32 %s5678_s8, 4  ;;  %s5667_s22 = scalar_lea.sflag [#allocation6], %s7254_s28  ;;  %s5682_s7 = int_to_ptr.hbm [resolvable:$true] %s5681_s7 }
  0x5d   : > { %338 = vst [vmem:[#allocation2 + $0x78] sm:$0xf] %v7098_v0  ;;  %v738_v62 = vsel %vm7297_vm5, %v437_v47, %v737_v48  ;;  %s7027_s23 = sshra.s32 %s5682_s7, 4  ;;  %s7033_s13 = scalar_lea.hbm %s9457_s5, 512  ;;  %s7028_s23 = int_to_ptr.hbm [resolvable:$true] %s7027_s23 }
  0x5e   : > { %339 = vst [vmem:[#allocation2 + $0x7c] sm:$0xf] %v7098_v0  ;;  %s7029_s26 = scalar_lea.hbm %s7028_s23, 256  ;;  %p7034_p11 = scmp.lt.s32.totalorder %s7028_s23, %s9457_s5 }
  0x5f   : > { %340 = vst [vmem:[#allocation2 + $0x80] sm:$0x1] %v7098_v0  ;;  %1851 = vmatpush.bf16.msrb.mxu2 %v6438_v50  ;;  %v385_v50 = vld [vmem:[%s7258_s17 + $0x5c] sm:$0xf]  ;;  %p7030_p1 = scmp.ne.s32.totalorder %s7028_s23, %s7029_s26  ;;  %p7035_p2 = scmp.lt.s32.totalorder %s7033_s13, %s7029_s26 }
  0x60   : > { %341 = vst [vmem:[#allocation2 + $0x84] sm:$0xf] %v7098_v0  ;;  %2084 = vmatpush.bf16.msrb.mxu3 %v6398_v51 }
  0x61   : > { %342 = vst [vmem:[#allocation2 + $0x88] sm:$0xf] %v7098_v0  ;;  %v779_v54 = vld [vmem:[#allocation2 + $0x6c] sm:$0xf]  ;;  %p7031_p4 = pnand %p7030_p1, %p7221_p3  ;;  %p7036_p9 = por %p7035_p2, %p7034_p11 }
  0x62   : > { %343 = vst [vmem:[#allocation2 + $0x8c] sm:$0x1] %v7098_v0  ;;  %v780_v6 = vsel %vm7297_vm5, %v539_v52, %v779_v54  ;;  %v6406_v52 = vld [vmem:[#allocation7 + $0x70] sm:$0xff]  ;;  %v445_v54 = vor.u32 %v443_v37, %v442_v36 }
  0x63   : > { %344 = vst [vmem:[#allocation2 + $0x90] sm:$0xf] %v7098_v0  ;;  %v783_v8 = vld [vmem:[#allocation2 + $0x74] sm:$0x1]  ;;  %2173 = vmatpush.bf16.msrb.mxu0 %v6406_v52  ;;  %p7032_p8 = pneg %p7031_p4 }
  0x64   : > { %345 = vst [vmem:[#allocation2 + $0x94] sm:$0xf] %v7098_v0  ;;  %v784_v33 = vsel %vm7427_vm7, %v549_v14, %v783_v8  ;;  %v786_v35 = vld [vmem:[#allocation2 + $0x78] sm:$0xf]  ;;  %v446_v4 = vsel %vm7288_vm4, %v438_v53, %v445_v54  ;;  %v582_v14 = vsel %vm7288_vm4, %v574_v58, %v581_v59 }
  0x65   : > { %346 = vst [vmem:[#allocation2 + $0x98] sm:$0x1] %v7098_v0  ;;  %v787_v45 = vsel %vm7297_vm5, %v556_v27, %v786_v35  ;;  %v6437_v53 = vld [vmem:[#allocation7 + $0x168] sm:$0xff]  ;;  %p7037_p10 = pnand %p7036_p9, %p7032_p8 }
  0x66   : > { %347 = vst [vmem:[#allocation2 + $0x9c] sm:$0xf] %v7098_v0  ;;  %v790_v46 = vld [vmem:[#allocation2 + $0x80] sm:$0x1]  ;;  %v6397_v54 = vld [vmem:[#allocation7 + $0x28] sm:$0xff]  ;;  %1852 = vmatpush.bf16.msrb.mxu2 %v6437_v53 }
  0x67   : > { %348 = vst [vmem:[#allocation2 + $0xa0] sm:$0xf] %v7098_v0  ;;  %v791_v57 = vsel %vm7427_vm7, %v566_v39, %v790_v46  ;;  %v793_v60 = vld [vmem:[#allocation2 + $0x84] sm:$0xf]  ;;  %v449_v46 = vshrl.u32 %v368_v40, 16  ;;  %v6405_v59 = vld [vmem:[#allocation7 + $0x68] sm:$0xff]  ;;  %2085 = vmatpush.bf16.msrb.mxu3 %v6397_v54 }
  0x68   : > { %349 = vst [vmem:[#allocation2 + $0xa4] sm:$0x1] %v7098_v0  ;;  %v794_v8 = vsel %vm7297_vm5, %v573_v56, %v793_v60  ;;  %v452_v56 = vshll.u32 %v368_v40, 16  ;;  %v459_v60 = vrot.slane %v457_v41, 7  ;;  %2174 = vmatpush.bf16.msrb.mxu0 %v6405_v59  ;;  %v386_v54 = vld [vmem:[%s7258_s17 + $0x60] sm:$0xf] }
  0x69   : > { %350 = vst [vmem:[#allocation2 + $0xa8] sm:$0xf] %v7098_v0  ;;  %v797_v15 = vld [vmem:[#allocation2 + $0x8c] sm:$0x1] }
  0x6a   : > { %351 = vst [vmem:[#allocation2 + $0xac] sm:$0xf] %v7098_v0 }
  0x6b   : > { %352 = vst [vmem:[#allocation2 + $0xb0] sm:$0x1] %v7098_v0 }
  0x6c   : > { %353 = vst [vmem:[#allocation2 + $0xb4] sm:$0xf] %v7098_v0 }
  0x6d   : > { %354 = vst [vmem:[#allocation2 + $0xb8] sm:$0xf] %v7098_v0 }
  0x6e   : > { %355 = vst [vmem:[#allocation2 + $0xbc] sm:$0x1] %v7098_v0 }
  0x6f   : > { %356 = vst [vmem:[#allocation2 + $0xc0] sm:$0xf] %v7098_v0 }
  0x70   : > { %357 = vst [vmem:[#allocation2 + $0xc4] sm:$0xf] %v7098_v0 }
  0x71   : > { %358 = vst [vmem:[#allocation2 + $0xc8] sm:$0x1] %v7098_v0 }
  0x72   : > { %359 = vst [vmem:[#allocation2 + $0xcc] sm:$0xf] %v7098_v0 }
  0x73   : > { %360 = vst [vmem:[#allocation2 + $0xd0] sm:$0xf] %v7098_v0 }
  0x74   : > { %361 = vst [vmem:[#allocation2 + $0xd4] sm:$0x1] %v7098_v0 }
  0x75   : > { %2976 = vst [vmem:[#allocation3] sm:$0xf] %v7098_v0 }
  0x76   : > { %2977 = vst [vmem:[#allocation3 + $0x4] sm:$0xf] %v7098_v0 }
  0x77   : > { %2978 = vst [vmem:[#allocation3 + $0x8] sm:$0x1] %v7098_v0 }
  0x78   : > { %2979 = vst [vmem:[#allocation3 + $0xc] sm:$0xf] %v7098_v0 }
  0x79   : > { %2980 = vst [vmem:[#allocation3 + $0x10] sm:$0xf] %v7098_v0 }
  0x7a   : > { %2981 = vst [vmem:[#allocation3 + $0x14] sm:$0x1] %v7098_v0 }
  0x7b   : > { %2982 = vst [vmem:[#allocation3 + $0x18] sm:$0xf] %v7098_v0 }
  0x7c   : > { %2983 = vst [vmem:[#allocation3 + $0x1c] sm:$0xf] %v7098_v0 }
  0x7d   : > { %2984 = vst [vmem:[#allocation3 + $0x20] sm:$0x1] %v7098_v0 }
  0x7e   : > { %2985 = vst [vmem:[#allocation3 + $0x24] sm:$0xf] %v7098_v0 }
  0x7f   : > { %2986 = vst [vmem:[#allocation3 + $0x28] sm:$0xf] %v7098_v0 }
  0x80   : > { %2987 = vst [vmem:[#allocation3 + $0x2c] sm:$0x1] %v7098_v0 }
  0x81   : > { %2988 = vst [vmem:[#allocation3 + $0x30] sm:$0xf] %v7098_v0 }
  0x82   : > { %2989 = vst [vmem:[#allocation3 + $0x34] sm:$0xf] %v7098_v0 }
  0x83   : > { %2990 = vst [vmem:[#allocation3 + $0x38] sm:$0x1] %v7098_v0 }
  0x84   : > { %2991 = vst [vmem:[#allocation3 + $0x3c] sm:$0xf] %v7098_v0 }
  0x85   : > { %2992 = vst [vmem:[#allocation3 + $0x40] sm:$0xf] %v7098_v0 }
  0x86   : > { %2993 = vst [vmem:[#allocation3 + $0x44] sm:$0x1] %v7098_v0 }
  0x87   : > { %2994 = vst [vmem:[#allocation3 + $0x48] sm:$0xf] %v7098_v0 }
  0x88   : > { %2995 = vst [vmem:[#allocation3 + $0x4c] sm:$0xf] %v7098_v0 }
  0x89   : > { %2996 = vst [vmem:[#allocation3 + $0x50] sm:$0x1] %v7098_v0 }
  0x8a   : > { %2997 = vst [vmem:[#allocation3 + $0x54] sm:$0xf] %v7098_v0 }
  0x8b   : > { %2998 = vst [vmem:[#allocation3 + $0x58] sm:$0xf] %v7098_v0 }
  0x8c   : > { %2999 = vst [vmem:[#allocation3 + $0x5c] sm:$0x1] %v7098_v0 }
  0x8d   : > { %3000 = vst [vmem:[#allocation3 + $0x60] sm:$0xf] %v7098_v0 }
  0x8e   : > { %3001 = vst [vmem:[#allocation3 + $0x64] sm:$0xf] %v7098_v0 }
  0x8f   : > { %3002 = vst [vmem:[#allocation3 + $0x68] sm:$0x1] %v7098_v0 }
  0x90   : > { %3003 = vst [vmem:[#allocation3 + $0x6c] sm:$0xf] %v7098_v0 }
  0x91   : > { %3004 = vst [vmem:[#allocation3 + $0x70] sm:$0xf] %v7098_v0 }
  0x92   : > { %3005 = vst [vmem:[#allocation3 + $0x74] sm:$0x1] %v7098_v0 }
  0x93   : > { %3006 = vst [vmem:[#allocation3 + $0x78] sm:$0xf] %v7098_v0 }
  0x94   : > { %3007 = vst [vmem:[#allocation3 + $0x7c] sm:$0xf] %v7098_v0 }
  0x95   : > { %3008 = vst [vmem:[#allocation3 + $0x80] sm:$0x1] %v7098_v0 }
  0x96   : > { %3009 = vst [vmem:[#allocation3 + $0x84] sm:$0xf] %v7098_v0 }
  0x97   : > { %3010 = vst [vmem:[#allocation3 + $0x88] sm:$0xf] %v7098_v0 }
  0x98   : > { %3011 = vst [vmem:[#allocation3 + $0x8c] sm:$0x1] %v7098_v0 }
  0x99   : > { %3012 = vst [vmem:[#allocation3 + $0x90] sm:$0xf] %v7098_v0 }
  0x9a   : > { %3013 = vst [vmem:[#allocation3 + $0x94] sm:$0xf] %v7098_v0 }
  0x9b   : > { %3014 = vst [vmem:[#allocation3 + $0x98] sm:$0x1] %v7098_v0 }
  0x9c   : > { %3015 = vst [vmem:[#allocation3 + $0x9c] sm:$0xf] %v7098_v0 }
  0x9d   : > { %3016 = vst [vmem:[#allocation3 + $0xa0] sm:$0xf] %v7098_v0 }
  0x9e   : > { %3017 = vst [vmem:[#allocation3 + $0xa4] sm:$0x1] %v7098_v0 }
  0x9f   : > { %3018 = vst [vmem:[#allocation3 + $0xa8] sm:$0xf] %v7098_v0 }
  0xa0   : > { %3019 = vst [vmem:[#allocation3 + $0xac] sm:$0xf] %v7098_v0 }
  0xa1   : > { %3020 = vst [vmem:[#allocation3 + $0xb0] sm:$0x1] %v7098_v0 }
  0xa2   : > { %3021 = vst [vmem:[#allocation3 + $0xb4] sm:$0xf] %v7098_v0 }
  0xa3   : > { %3022 = vst [vmem:[#allocation3 + $0xb8] sm:$0xf] %v7098_v0 }
  0xa4   : > { %3023 = vst [vmem:[#allocation3 + $0xbc] sm:$0x1] %v7098_v0 }
  0xa5   : > { %3024 = vst [vmem:[#allocation3 + $0xc0] sm:$0xf] %v7098_v0 }
  0xa6   : > { %3025 = vst [vmem:[#allocation3 + $0xc4] sm:$0xf] %v7098_v0 }
  0xa7   : > { %9538 = vst [vmem:[#allocation20_spill] sm:$0xff] %v9537_v7 }
  0xa8   : > { %3026 = vst [vmem:[#allocation3 + $0xc8] sm:$0x1] %v7098_v0 }
  0xa9   : > { %3027 = vst [vmem:[#allocation3 + $0xcc] sm:$0xf] %v7098_v0 }
  0xaa   : > { %3028 = vst [vmem:[#allocation3 + $0xd0] sm:$0xf] %v7098_v0 }
  0xab   : > { %3029 = vst [vmem:[#allocation3 + $0xd4] sm:$0x1] %v7098_v0  ;;  %v429_v0 = vsel %vm7288_vm4, %v421_v23, %v428_v24  ;;  %v798_v23 = vsel %vm7427_vm7, %v583_v9, %v797_v15  ;;  %v1088_v24 = vor.u32 %v1087_v3, %v1083_v61  ;;  %v460_v61 = vshll.u32 %v369_v26, 16  ;;  %v384_v15 = vld [vmem:[%s7258_s17 + $0x58] sm:$0xf] }
  0xac   : > { %781 = vst [vmem:[#allocation2 + $0x6c] sm:$0xf] %v780_v6  ;;  %v593_v9 = vshrl.u32 %v385_v50, 16  ;;  %v804_v26 = vld [vmem:[#allocation2 + $0x98] sm:$0x1] }
  0xad   : > { %782 = vst [vmem:[#allocation2 + $0x70] sm:$0xf] %v548_v5  ;;  %v741_v5 = vld [vmem:[#allocation2 + $0x2c] sm:$0x1] }
  0xae   : > { %729 = vst [vmem:[#allocation2 + $0x14] sm:$0x1] %v728_v22  ;;  %v742_v12 = vsel %vm7427_vm7, %v447_v63, %v741_v5 }
  0xaf   : > { %785 = vst [vmem:[#allocation2 + $0x74] sm:$0x1] %v784_v33 }
  0xb0   : > { %732 = vst [vmem:[#allocation2 + $0x18] sm:$0xf] %v731_v38 }
  0xb1   : > { %733 = vst [vmem:[#allocation2 + $0x1c] sm:$0xf] %v429_v0 }
  0xb2   : > { %788 = vst [vmem:[#allocation2 + $0x78] sm:$0xf] %v787_v45 }
  0xb3   : > { %789 = vst [vmem:[#allocation2 + $0x7c] sm:$0xf] %v565_v49 }
  0xb4   : > { %v7459_v1 = vld [vmem:[#allocation2 + $0x6c] sm:$0xff]   ;;  %736 = vst [vmem:[#allocation2 + $0x20] sm:$0x1] %v735_v55  ;;  %v451_v55 = vrot.slane %v449_v46, 7 }
  0xb5   : > { %v7461_v2 = vld [vmem:[#allocation2 + $0x6c] sm:$0xf0]  ;;  %v872_v6 = vld [vmem:[#allocation2 + $0x14] sm:$0x1]  ;;  %792 = vst [vmem:[#allocation2 + $0x80] sm:$0x1] %v791_v57  ;;  %1720 = vmatmul.bf16.vlgmr.msra.gmra.mxu2 %v7459_v1 }
  0xb6   : > { %v1034_v10 = vunpack.c.l.b16 %v872_v6  ;;  %v880_v11 = vld [vmem:[#allocation2 + $0x74] sm:$0x1]  ;;  %739 = vst [vmem:[#allocation2 + $0x24] sm:$0xf] %v738_v62  ;;  %v1179_v21 = vshrl.u32 %v7459_v1, 16  ;;  %v1181_v22 = vshll.u32 %v7459_v1, 16  ;;  %v454_v5 = vor.u32 %v452_v56, %v451_v55 }
  0xb7   : > { %v1042_v17 = vunpack.c.l.b16 %v880_v11  ;;  %740 = vst [vmem:[#allocation2 + $0x28] sm:$0xf] %v446_v4  ;;  %v455_v6 = vrot.slane %v451_v55, 4 }
  0xb8   : > { %v7473_v18 = vpack.c.b16 %v1034_v10, %v1034_v10  ;;  %v6609_v19 = vld [vmem:[#allocation2 + $0x18] sm:$0xff]   ;;  %795 = vst [vmem:[#allocation2 + $0x84] sm:$0xf] %v794_v8  ;;  %v1183_v27 = vrot.slane %v1181_v22, 1  ;;  %v462_v8 = vor.u32 %v460_v61, %v459_v60  ;;  %v464_v22 = vrot.slane %v459_v60, 4 }
  0xb9   : > { %v7476_v20 = vpack.c.b16 %v1042_v17, %v1042_v17  ;;  %1685 = vmatmul.bf16.gmra.mxu0 %v6609_v19  ;;  %796 = vst [vmem:[#allocation2 + $0x88] sm:$0xf] %v582_v14  ;;  %v1097_v35 = vshll.u32 %v6609_v19, 16  ;;  %v1095_v48 = vshrl.u32 %v6609_v19, 16  ;;  %v744_v14 = vld [vmem:[#allocation2 + $0x30] sm:$0xf] }
  0xba   : > { %v1090_v25 = vshll.u32 %v7473_v18, 16  ;;  %743 = vst [vmem:[#allocation2 + $0x2c] sm:$0x1] %v742_v12  ;;  %v7485_v29 = vld [vmem:[#allocation2 + $0x78] sm:$0xff]   ;;  %v1184_v37 = vor.u32 %v1183_v27, %v1179_v21  ;;  %v463_v21 = vsel %vm7288_vm4, %v455_v6, %v462_v8  ;;  %v370_v27 = vld [vmem:[%s7258_s17 + $0x20] sm:$0xf] }
  0xbb   : > { %v1186_v28 = vshll.u32 %v7476_v20, 16  ;;  %v873_v30 = vld [vmem:[#allocation2 + $0x20] sm:$0x1]  ;;  %799 = vst [vmem:[#allocation2 + $0x8c] sm:$0x1] %v798_v23  ;;  %v1193_v43 = vshll.u32 %v7485_v29, 16 }
  0xbc   : > { %v1092_v33 = vrot.slane %v1090_v25, 1  ;;  %v1035_v34 = vunpack.c.l.b16 %v873_v30  ;;  %v881_v36 = vld [vmem:[#allocation2 + $0x80] sm:$0x1]  ;;  %v1099_v51 = vrot.slane %v1097_v35, 1  ;;  %v1191_v62 = vshrl.u32 %v7485_v29, 16 }
  0xbd   : > { %v1188_v38 = vrot.slane %v1186_v28, 1  ;;  %v1043_v39 = vunpack.c.l.b16 %v881_v36  ;;  %v1195_v63 = vrot.slane %v1193_v43, 1  ;;  %v748_v23 = vld [vmem:[#allocation2 + $0x38] sm:$0x1]  ;;  %747 = vst [vmem:[#allocation2 + $0x34] sm:$0xf] %v463_v21 }
  0xbe   : > { %v7489_v0 = vsel %vm1069_vm8, %v1088_v24, %v1092_v33  ;;  %v7491_v42 = vpack.c.b16 %v1035_v34, %v1035_v34  ;;  %v7494_v44 = vld [vmem:[#allocation2 + $0x24] sm:$0xff]   ;;  %v1100_v10 = vor.u32 %v1099_v51, %v1095_v48  ;;  %v745_v24 = vsel %vm7297_vm5, %v454_v5, %v744_v14  ;;  %v800_v43 = vld [vmem:[#allocation2 + $0x90] sm:$0xf]  ;;  %v387_v60 = vld [vmem:[%s7258_s17 + $0x64] sm:$0xf] }
  0xbf   : > { %v7496_v45 = vld [vmem:[#allocation2 + $0x24] sm:$0xf0]  ;;  %1769 = vmatmul.bf16.vlgmr.msra.gmra.mxu1 %v7489_v0  ;;  %v7500_v47 = vsel %vm1069_vm8, %v1184_v37, %v1188_v38  ;;  %v7502_v49 = vpack.c.b16 %v1043_v39, %v1043_v39  ;;  %v1196_v12 = vor.u32 %v1195_v63, %v1191_v62  ;;  %v585_v25 = vshrl.u32 %v384_v15, 16  ;;  %746 = vst [vmem:[#allocation2 + $0x30] sm:$0xf] %v745_v24  ;;  %v6436_v21 = vld [vmem:[#allocation7 + $0x160] sm:$0xff] }
  0xc0   : > { %9539 = vst [vmem:[#allocation21_spill] sm:$0xff] %v7500_v47  ;;  %1809 = vmatmul.bf16.vlgmr.msra.gmra.mxu3 %v7500_v47  ;;  %v1102_v52 = vshll.u32 %v7491_v42, 16  ;;  %v7507_v57 = vld [vmem:[#allocation2 + $0x84] sm:$0xff]   ;;  %v588_v33 = vshll.u32 %v384_v15, 16  ;;  %v595_v34 = vrot.slane %v593_v9, 7  ;;  %v1109_v36 = vshll.u32 %v7494_v44, 16  ;;  %1853 = vmatpush.bf16.msrb.mxu2 %v6436_v21 }
  0xc1   : > { %9540 = vst [vmem:[#allocation22_spill] sm:$0xff] %v7507_v57  ;;  %v7509_v58 = vld [vmem:[#allocation2 + $0x84] sm:$0xf0]  ;;  %v1198_v3 = vshll.u32 %v7502_v49, 16  ;;  %v874_v4 = vld [vmem:[#allocation2 + $0x2c] sm:$0x1]  ;;  %v749_v46 = vsel %vm7427_vm7, %v464_v22, %v748_v23 }
  0xc2   : > { %v1104_v11 = vrot.slane %v1102_v52, 1  ;;  %v1036_v17 = vunpack.c.l.b16 %v874_v4  ;;  %v882_v30 = vld [vmem:[#allocation2 + $0x8c] sm:$0x1]  ;;  %v587_v37 = vrot.slane %v585_v25, 7  ;;  %v596_v38 = vshll.u32 %v385_v50, 16  ;;  %v6396_v22 = vld [vmem:[#allocation7 + $0x20] sm:$0xff] }
  0xc3   : > { %v1200_v19 = vrot.slane %v1198_v3, 1  ;;  %v371_v39 = vld [vmem:[%s7258_s17 + $0x24] sm:$0xf]  ;;  %v600_v41 = vrot.slane %v595_v34, 4  ;;  %v1044_v48 = vunpack.c.l.b16 %v882_v30  ;;  %750 = vst [vmem:[#allocation2 + $0x38] sm:$0x1] %v749_v46  ;;  %2086 = vmatpush.bf16.msrb.mxu3 %v6396_v22 }
  0xc4   : > { %v7520_v28 = vsel %vm1069_vm8, %v1100_v10, %v1104_v11  ;;  %v7524_v35 = vpack.c.b16 %v1036_v17, %v1036_v17  ;;  %v590_v51 = vor.u32 %v588_v33, %v587_v37  ;;  %v591_v52 = vrot.slane %v587_v37, 4  ;;  %v751_v4 = vld [vmem:[#allocation2 + $0x3c] sm:$0xf]  ;;  %v755_v17 = vld [vmem:[#allocation2 + $0x44] sm:$0x1]  ;;  %v6404_v23 = vld [vmem:[#allocation7 + $0x60] sm:$0xff] }
  0xc5   : > { %1725 = vmatmul.bf16.gmra.mxu2 %v7485_v29  ;;  %v7529_v40 = vsel %vm1069_vm8, %v1196_v12, %v1200_v19  ;;  %v466_v29 = vshrl.u32 %v370_v27, 16  ;;  %v598_v53 = vor.u32 %v596_v38, %v595_v34  ;;  %v805_v50 = vsel %vm7427_vm7, %v600_v41, %v804_v26  ;;  %v807_v41 = vld [vmem:[#allocation2 + $0x9c] sm:$0xf]  ;;  %2175 = vmatpush.bf16.msrb.mxu0 %v6404_v23 }
  0xc6   : > { %v469_v56 = vshll.u32 %v370_v27, 16  ;;  %v474_v59 = vshrl.u32 %v371_v39, 16  ;;  %v1205_v61 = vshll.u32 %v7507_v57, 16  ;;  %v801_v63 = vsel %vm7297_vm5, %v590_v51, %v800_v43  ;;  %806 = vst [vmem:[#allocation2 + $0x98] sm:$0x1] %v805_v50  ;;  %v7554_v51 = vld [vmem:[#allocation2 + $0x30] sm:$0xff]  }
  0xc7   : > { %v468_v55 = vrot.slane %v466_v29, 7  ;;  %v599_v62 = vsel %vm7288_vm4, %v591_v52, %v598_v53  ;;  %v477_v3 = vshll.u32 %v371_v39, 16  ;;  %802 = vst [vmem:[#allocation2 + $0x90] sm:$0xf] %v801_v63  ;;  %v602_v9 = vshrl.u32 %v386_v54, 16 }
  0xc8   : > { %v476_v8 = vrot.slane %v474_v59, 7  ;;  %v7543_v10 = vpack.c.b16 %v1044_v48, %v1044_v48  ;;  %803 = vst [vmem:[#allocation2 + $0x94] sm:$0xf] %v599_v62  ;;  %v605_v11 = vshll.u32 %v386_v54, 16  ;;  %v610_v14 = vshrl.u32 %v387_v60, 16 }
  0xc9   : > { %1690 = vmatmul.bf16.gmra.mxu0 %v7494_v44  ;;  %v471_v5 = vor.u32 %v469_v56, %v468_v55  ;;  %v472_v6 = vrot.slane %v468_v55, 4  ;;  %v613_v15 = vshll.u32 %v387_v60, 16  ;;  %v1107_v12 = vshrl.u32 %v7494_v44, 16  ;;  %v811_v48 = vld [vmem:[#allocation2 + $0xa4] sm:$0x1] }
  0xca   : > { %v1203_v19 = vshrl.u32 %v7507_v57, 16  ;;  %v479_v24 = vor.u32 %v477_v3, %v476_v8  ;;  %v1111_v26 = vrot.slane %v1109_v36, 1  ;;  %v604_v27 = vrot.slane %v602_v9, 7  ;;  %v875_v38 = vld [vmem:[#allocation2 + $0x38] sm:$0x1] }
  0xcb   : > { %v752_v25 = vsel %vm7297_vm5, %v471_v5, %v751_v4  ;;  %v612_v30 = vrot.slane %v610_v14, 7  ;;  %v481_v33 = vrot.slane %v476_v8, 4  ;;  %v1114_v34 = vshll.u32 %v7524_v35, 16  ;;  %v373_v5 = vld [vmem:[%s7258_s17 + $0x2c] sm:$0xf] }
  0xcc   : > { %753 = vst [vmem:[#allocation2 + $0x3c] sm:$0xf] %v752_v25  ;;  %v1207_v37 = vrot.slane %v1205_v61, 1  ;;  %v480_v39 = vsel %vm7288_vm4, %v472_v6, %v479_v24  ;;  %v1210_v43 = vshll.u32 %v7543_v10, 16  ;;  %v607_v46 = vor.u32 %v605_v11, %v604_v27  ;;  %v372_v9 = vld [vmem:[%s7258_s17 + $0x28] sm:$0xf] }
  0xcd   : > { %754 = vst [vmem:[#allocation2 + $0x40] sm:$0xf] %v480_v39  ;;  %v608_v36 = vrot.slane %v604_v27, 4  ;;  %v615_v29 = vor.u32 %v613_v15, %v612_v30  ;;  %v1037_v52 = vunpack.c.l.b16 %v875_v38  ;;  %v756_v53 = vsel %vm7427_vm7, %v481_v33, %v755_v17  ;;  %v883_v59 = vld [vmem:[#allocation2 + $0x98] sm:$0x1] }
  0xce   : > { %v617_v54 = vrot.slane %v612_v30, 4  ;;  %v808_v55 = vsel %vm7297_vm5, %v607_v46, %v807_v41  ;;  %757 = vst [vmem:[#allocation2 + $0x44] sm:$0x1] %v756_v53  ;;  %v1112_v56 = vor.u32 %v1111_v26, %v1107_v12  ;;  %v1116_v61 = vrot.slane %v1114_v34, 1  ;;  %v388_v15 = vld [vmem:[%s7258_s17 + $0x68] sm:$0xf] }
  0xcf   : > { %1774 = vmatmul.bf16.gmra.mxu1 %v7520_v28  ;;  %v616_v50 = vsel %vm7288_vm4, %v608_v36, %v615_v29  ;;  %809 = vst [vmem:[#allocation2 + $0x9c] sm:$0xf] %v808_v55  ;;  %v1208_v62 = vor.u32 %v1207_v37, %v1203_v19  ;;  %v1212_v63 = vrot.slane %v1210_v43, 1  ;;  %v1121_v3 = vshll.u32 %v7554_v51, 16  ;;  %v7570_v6 = vld [vmem:[#allocation2 + $0x90] sm:$0xff]   ;;  %v6403_v55 = vld [vmem:[#allocation7 + $0x58] sm:$0xff] }
  0xd0   : > { %1814 = vmatmul.bf16.gmra.mxu3 %v7529_v40  ;;  %v812_v60 = vsel %vm7427_vm7, %v617_v54, %v811_v48  ;;  %810 = vst [vmem:[#allocation2 + $0xa0] sm:$0xf] %v616_v50  ;;  %v7565_v4 = vpack.c.b16 %v1037_v52, %v1037_v52  ;;  %v1045_v8 = vunpack.c.l.b16 %v883_v59  ;;  %v491_v11 = vshrl.u32 %v373_v5, 16  ;;  %v389_v22 = vld [vmem:[%s7258_s17 + $0x6c] sm:$0xf]  ;;  %v6435_v54 = vld [vmem:[#allocation7 + $0x158] sm:$0xff]  ;;  %2176 = vmatpush.bf16.msrb.mxu0 %v6403_v55 }
  0xd1   : > { %813 = vst [vmem:[#allocation2 + $0xa4] sm:$0x1] %v812_v60  ;;  %v483_v14 = vshrl.u32 %v372_v9, 16  ;;  %v7575_v17 = vsel %vm1069_vm8, %v1112_v56, %v1116_v61  ;;  %v7578_v12 = vsel %vm1069_vm8, %v1208_v62, %v1212_v63  ;;  %v1119_v19 = vshrl.u32 %v7554_v51, 16  ;;  %v758_v29 = vld [vmem:[#allocation2 + $0x48] sm:$0xf]  ;;  %1854 = vmatpush.bf16.msrb.mxu2 %v6435_v54 }
  0xd2   : > { %v1123_v21 = vrot.slane %v1121_v3, 1  ;;  %v1126_v23 = vshll.u32 %v7565_v4, 16  ;;  %v1217_v24 = vshll.u32 %v7570_v6, 16  ;;  %v486_v26 = vshll.u32 %v372_v9, 16  ;;  %v6395_v50 = vld [vmem:[#allocation7 + $0x18] sm:$0xff] }
  0xd3   : > { %v485_v25 = vrot.slane %v483_v14, 7  ;;  %v7584_v27 = vpack.c.b16 %v1045_v8, %v1045_v8  ;;  %v493_v30 = vrot.slane %v491_v11, 7  ;;  %v494_v33 = vshll.u32 %v373_v5, 16  ;;  %2087 = vmatpush.bf16.msrb.mxu3 %v6395_v50  ;;  %v762_v5 = vld [vmem:[#allocation2 + $0x50] sm:$0x1] }
  0xd4   : > { %v619_v34 = vshrl.u32 %v388_v15, 16  ;;  %v627_v39 = vshrl.u32 %v389_v22, 16  ;;  %v1124_v41 = vor.u32 %v1123_v21, %v1119_v19  ;;  %v7587_v43 = vld [vmem:[#allocation2 + $0x3c] sm:$0xff]   ;;  %v1128_v48 = vrot.slane %v1126_v23, 1  ;;  %v814_v8 = vld [vmem:[#allocation2 + $0xa8] sm:$0xf] }
  0xd5   : > { %1730 = vmatmul.bf16.gmra.mxu2 %v7507_v57  ;;  %v488_v37 = vor.u32 %v486_v26, %v485_v25  ;;  %v489_v38 = vrot.slane %v485_v25, 4  ;;  %v7589_v46 = vld [vmem:[#allocation2 + $0x3c] sm:$0xf0]  ;;  %v496_v36 = vor.u32 %v494_v33, %v493_v30  ;;  %v1215_v52 = vshrl.u32 %v7570_v6, 16  ;;  %v818_v23 = vld [vmem:[#allocation2 + $0xb0] sm:$0x1] }
  0xd6   : > { %v1219_v53 = vrot.slane %v1217_v24, 1  ;;  %v1222_v59 = vshll.u32 %v7584_v27, 16  ;;  %v498_v61 = vrot.slane %v493_v30, 4  ;;  %v621_v62 = vrot.slane %v619_v34, 7  ;;  %v374_v30 = vld [vmem:[%s7258_s17 + $0x30] sm:$0xf] }
  0xd7   : > { %v759_v56 = vsel %vm7297_vm5, %v488_v37, %v758_v29  ;;  %v497_v60 = vsel %vm7288_vm4, %v489_v38, %v496_v36  ;;  %v622_v63 = vshll.u32 %v388_v15, 16  ;;  %v629_v3 = vrot.slane %v627_v39, 7  ;;  %v7598_v9 = vld [vmem:[#allocation2 + $0x9c] sm:$0xff]   ;;  %v375_v33 = vld [vmem:[%s7258_s17 + $0x34] sm:$0xf] }
  0xd8   : > { %760 = vst [vmem:[#allocation2 + $0x48] sm:$0xf] %v759_v56  ;;  %v7600_v11 = vld [vmem:[#allocation2 + $0x9c] sm:$0xf0]  ;;  %v625_v19 = vrot.slane %v621_v62, 4  ;;  %v630_v21 = vshll.u32 %v389_v22, 16  ;;  %v7603_v24 = vsel %vm1069_vm8, %v1124_v41, %v1128_v48  ;;  %v763_v26 = vsel %vm7427_vm7, %v498_v61, %v762_v5 }
  0xd9   : > { %1695 = vmatmul.bf16.gmra.mxu0 %v7554_v51  ;;  %761 = vst [vmem:[#allocation2 + $0x4c] sm:$0xf] %v497_v60  ;;  %v624_v14 = vor.u32 %v622_v63, %v621_v62  ;;  %v1224_v25 = vrot.slane %v1222_v59, 1  ;;  %v634_v15 = vrot.slane %v629_v3, 4  ;;  %v1220_v34 = vor.u32 %v1219_v53, %v1215_v52  ;;  %v876_v37 = vld [vmem:[#allocation2 + $0x44] sm:$0x1] }
  0xda   : > { %9541 = vst [vmem:[#allocation23_spill] sm:$0xff] %v7598_v9  ;;  %v632_v38 = vor.u32 %v630_v21, %v629_v3  ;;  %v390_v22 = vld [vmem:[%s7258_s17 + $0x70] sm:$0xf]  ;;  %v884_v36 = vld [vmem:[#allocation2 + $0xa4] sm:$0x1]  ;;  %v500_v29 = vshrl.u32 %v374_v30, 16  ;;  %v1038_v62 = vunpack.c.l.b16 %v876_v37 }
  0xdb   : > { %9542 = vst [vmem:[#allocation24_spill] sm:$0xff] %v7600_v11  ;;  %v815_v39 = vsel %vm7297_vm5, %v624_v14, %v814_v8  ;;  %v819_v41 = vsel %vm7427_vm7, %v634_v15, %v818_v23  ;;  %v508_v48 = vshrl.u32 %v375_v33, 16  ;;  %v391_v54 = vld [vmem:[%s7258_s17 + $0x74] sm:$0xf]  ;;  %v503_v52 = vshll.u32 %v374_v30, 16 }
  0xdc   : > { %9543 = vst [vmem:[#allocation25_spill] sm:$0xff] %v7603_v24  ;;  %v633_v50 = vsel %vm7288_vm4, %v625_v19, %v632_v38  ;;  %v511_v53 = vshll.u32 %v375_v33, 16  ;;  %v636_v55 = vshrl.u32 %v390_v22, 16  ;;  %v502_v56 = vrot.slane %v500_v29, 7  ;;  %v765_v19 = vld [vmem:[#allocation2 + $0x54] sm:$0xf] }
  0xdd   : > { %764 = vst [vmem:[#allocation2 + $0x50] sm:$0x1] %v763_v26  ;;  %v510_v59 = vrot.slane %v508_v48, 7  ;;  %v639_v60 = vshll.u32 %v390_v22, 16  ;;  %v7620_v61 = vsel %vm1069_vm8, %v1220_v34, %v1224_v25  ;;  %v644_v3 = vshrl.u32 %v391_v54, 16 }
  0xde   : > { %816 = vst [vmem:[#allocation2 + $0xa8] sm:$0xf] %v815_v39  ;;  %v638_v63 = vrot.slane %v636_v55, 7  ;;  %v505_v5 = vor.u32 %v503_v52, %v502_v56  ;;  %v506_v8 = vrot.slane %v502_v56, 4  ;;  %v647_v21 = vshll.u32 %v391_v54, 16  ;;  %v6434_v54 = vld [vmem:[#allocation7 + $0x150] sm:$0xff] }
  0xdf   : > { %1779 = vmatmul.bf16.gmra.mxu1 %v7575_v17  ;;  %820 = vst [vmem:[#allocation2 + $0xb0] sm:$0x1] %v819_v41  ;;  %v513_v14 = vor.u32 %v511_v53, %v510_v59  ;;  %v821_v23 = vld [vmem:[#allocation2 + $0xb4] sm:$0xf]  ;;  %v1046_v15 = vunpack.c.l.b16 %v884_v36  ;;  %v646_v30 = vrot.slane %v644_v3, 7  ;;  %v515_v34 = vrot.slane %v510_v59, 4  ;;  %1855 = vmatpush.bf16.msrb.mxu2 %v6434_v54 }
  0xe0   : > { %1819 = vmatmul.bf16.gmra.mxu3 %v7578_v12  ;;  %817 = vst [vmem:[#allocation2 + $0xac] sm:$0xf] %v633_v50  ;;  %v642_v26 = vrot.slane %v638_v63, 4  ;;  %v766_v25 = vsel %vm7297_vm5, %v505_v5, %v765_v19  ;;  %v769_v37 = vld [vmem:[#allocation2 + $0x5c] sm:$0x1]  ;;  %v7629_v36 = vpack.c.b16 %v1038_v62, %v1038_v62  ;;  %v1133_v41 = vshll.u32 %v7587_v43, 16 }
  0xe1   : > { %9544 = vst [vmem:[#allocation26_spill] sm:$0xff] %v7620_v61  ;;  %v514_v33 = vsel %vm7288_vm4, %v506_v8, %v513_v14  ;;  %v649_v38 = vor.u32 %v647_v21, %v646_v30  ;;  %v825_v22 = vld [vmem:[#allocation2 + $0xbc] sm:$0x1]  ;;  %v770_v29 = vsel %vm7427_vm7, %v515_v34, %v769_v37  ;;  %v651_v48 = vrot.slane %v646_v30, 4  ;;  %v6394_v50 = vld [vmem:[#allocation7 + $0x10] sm:$0xff] }
  0xe2   : > { %767 = vst [vmem:[#allocation2 + $0x54] sm:$0xf] %v766_v25  ;;  %v7637_v53 = vpack.c.b16 %v1046_v15, %v1046_v15  ;;  %v1229_v55 = vshll.u32 %v7598_v9, 16  ;;  %v6402_v56 = vld [vmem:[#allocation7 + $0x50] sm:$0xff]  ;;  %2088 = vmatpush.bf16.msrb.mxu3 %v6394_v50  ;;  %v1135_v62 = vrot.slane %v1133_v41, 1  ;;  %v1227_v3 = vshrl.u32 %v7598_v9, 16 }
  0xe3   : > { %768 = vst [vmem:[#allocation2 + $0x58] sm:$0xf] %v514_v33  ;;  %v650_v52 = vsel %vm7288_vm4, %v642_v26, %v649_v38  ;;  %v826_v59 = vsel %vm7427_vm7, %v651_v48, %v825_v22  ;;  %2177 = vmatpush.bf16.msrb.mxu0 %v6402_v56  ;;  %v377_v21 = vld [vmem:[%s7258_s17 + $0x3c] sm:$0xf]  ;;  %v376_v33 = vld [vmem:[%s7258_s17 + $0x38] sm:$0xf] }
  0xe4   : > { %9545 = vst [vmem:[#allocation27_spill] sm:$0xff] %v7637_v53  ;;  %v1231_v5 = vrot.slane %v1229_v55, 1  ;;  %v1234_v8 = vshll.u32 %v7637_v53, 16  ;;  %v877_v15 = vld [vmem:[#allocation2 + $0x50] sm:$0x1]  ;;  %v517_v37 = vshrl.u32 %v376_v33, 16 }
  0xe5   : > { %1735 = vmatmul.bf16.gmra.mxu2 %v7570_v6  ;;  %v641_v6 = vor.u32 %v639_v60, %v638_v63  ;;  %824 = vst [vmem:[#allocation2 + $0xb8] sm:$0xf] %v650_v52  ;;  %v1131_v60 = vshrl.u32 %v7587_v43, 16  ;;  %v1138_v63 = vshll.u32 %v7629_v36, 16  ;;  %v392_v25 = vld [vmem:[%s7258_s17 + $0x78] sm:$0xf]  ;;  %v1039_v22 = vunpack.c.l.b16 %v877_v15 }
  0xe6   : > { %771 = vst [vmem:[#allocation2 + $0x5c] sm:$0x1] %v770_v29  ;;  %v1232_v26 = vor.u32 %v1231_v5, %v1227_v3  ;;  %v1236_v30 = vrot.slane %v1234_v8, 1  ;;  %v885_v34 = vld [vmem:[#allocation2 + $0xb0] sm:$0x1]  ;;  %v519_v29 = vrot.slane %v517_v37, 7 }
  0xe7   : > { %v822_v39 = vsel %vm7297_vm5, %v641_v6, %v821_v23  ;;  %827 = vst [vmem:[#allocation2 + $0xbc] sm:$0x1] %v826_v59  ;;  %v1136_v14 = vor.u32 %v1135_v62, %v1131_v60  ;;  %v1140_v19 = vrot.slane %v1138_v63, 1  ;;  %v7647_v23 = vld [vmem:[#allocation2 + $0x48] sm:$0xff]   ;;  %v525_v6 = vshrl.u32 %v377_v21, 16 }
  0xe8   : > { %823 = vst [vmem:[#allocation2 + $0xb4] sm:$0xf] %v822_v39  ;;  %v393_v38 = vld [vmem:[%s7258_s17 + $0x7c] sm:$0xf]  ;;  %v520_v48 = vshll.u32 %v376_v33, 16  ;;  %v528_v54 = vshll.u32 %v377_v21, 16  ;;  %v7658_v52 = vsel %vm1069_vm8, %v1232_v26, %v1236_v30  ;;  %v1047_v56 = vunpack.c.l.b16 %v885_v34 }
  0xe9   : > { %1700 = vmatmul.bf16.gmra.mxu0 %v7587_v43  ;;  %v7655_v39 = vsel %vm1069_vm8, %v1136_v14, %v1140_v19  ;;  %v527_v41 = vrot.slane %v525_v6, 7  ;;  %v653_v50 = vshrl.u32 %v392_v25, 16  ;;  %9547 = vst [vmem:[#allocation29_spill] sm:$0xff] %v7658_v52  ;;  %v1143_v55 = vshrl.u32 %v7647_v23, 16  ;;  %v6615_v60 = vld [vmem:[#allocation2 + $0xa8] sm:$0xff]   ;;  %v6433_v26 = vld [vmem:[#allocation7 + $0x148] sm:$0xff] }
  0xea   : > { %9546 = vst [vmem:[#allocation28_spill] sm:$0xff] %v7655_v39  ;;  %v661_v59 = vshrl.u32 %v393_v38, 16  ;;  %v1145_v62 = vshll.u32 %v7647_v23, 16  ;;  %v522_v63 = vor.u32 %v520_v48, %v519_v29  ;;  %v523_v3 = vrot.slane %v519_v29, 4  ;;  %v7663_v8 = vld [vmem:[#allocation2 + $0x54] sm:$0xff]   ;;  %1856 = vmatpush.bf16.msrb.mxu2 %v6433_v26 }
  0xeb   : > { %v530_v5 = vor.u32 %v528_v54, %v527_v41  ;;  %9548 = vst [vmem:[#allocation30_spill] sm:$0xff] %v7663_v8  ;;  %v7665_v14 = vld [vmem:[#allocation2 + $0x54] sm:$0xf0]  ;;  %v532_v19 = vrot.slane %v527_v41, 4  ;;  %v772_v21 = vld [vmem:[#allocation2 + $0x60] sm:$0xf]  ;;  %v7668_v6 = vpack.c.b16 %v1039_v22, %v1039_v22  ;;  %v7674_v54 = vpack.c.b16 %v1047_v56, %v1047_v56 }
  0xec   : > { %v776_v15 = vld [vmem:[#allocation2 + $0x68] sm:$0x1]  ;;  %v6393_v30 = vld [vmem:[#allocation7 + $0x8] sm:$0xff]  ;;  %v773_v37 = vsel %vm7297_vm5, %v522_v63, %v772_v21  ;;  %v655_v29 = vrot.slane %v653_v50, 7  ;;  %v1241_v41 = vshll.u32 %v6615_v60, 16  ;;  %v656_v53 = vshll.u32 %v392_v25, 16 }
  0xed   : > { %v6401_v33 = vld [vmem:[#allocation7 + $0x48] sm:$0xff]  ;;  %v531_v34 = vsel %vm7288_vm4, %v523_v3, %v530_v5  ;;  %v832_v48 = vld [vmem:[#allocation2 + $0xc8] sm:$0x1]  ;;  %774 = vst [vmem:[#allocation2 + $0x60] sm:$0xf] %v773_v37  ;;  %2089 = vmatpush.bf16.msrb.mxu3 %v6393_v30  ;;  %v664_v57 = vshll.u32 %v393_v38, 16  ;;  %v777_v3 = vsel %vm7427_vm7, %v532_v19, %v776_v15 }
  0xee   : > { %775 = vst [vmem:[#allocation2 + $0x64] sm:$0xf] %v531_v34  ;;  %v659_v22 = vrot.slane %v655_v29, 4  ;;  %v828_v11 = vld [vmem:[#allocation2 + $0xc0] sm:$0xf]  ;;  %2178 = vmatpush.bf16.msrb.mxu0 %v6401_v33  ;;  %v658_v50 = vor.u32 %v656_v53, %v655_v29  ;;  %v1147_v56 = vrot.slane %v1145_v62, 1 }
  0xef   : > { %1784 = vmatmul.bf16.gmra.mxu1 %v7603_v24  ;;  %778 = vst [vmem:[#allocation2 + $0x68] sm:$0x1] %v777_v3  ;;  %v1150_v5 = vshll.u32 %v7668_v6, 16  ;;  %v1239_v21 = vshrl.u32 %v6615_v60, 16  ;;  %v1246_v26 = vshll.u32 %v7674_v54, 16  ;;  %v7684_v19 = vld [vmem:[#allocation2 + $0xb4] sm:$0xff]  }
  0xf0   : > { %1824 = vmatmul.bf16.gmra.mxu3 %v7620_v61  ;;  %v829_v38 = vsel %vm7297_vm5, %v658_v50, %v828_v11  ;;  %9549 = vst [vmem:[#allocation31_spill] sm:$0xff] %v7684_v19  ;;  %v1148_v62 = vor.u32 %v1147_v56, %v1143_v55  ;;  %v878_v11 = vld [vmem:[#allocation2 + $0x5c] sm:$0x1]  ;;  %v6414_v55 = vld [vmem:[#allocation7 + $0xb0] sm:$0xff]  ;;  %v6392_v3 = vld [vmem:[#allocation7] sm:$0xff] }
  0xf1   : > { %830 = vst [vmem:[#allocation2 + $0xc0] sm:$0xf] %v829_v38  ;;  %v1248_v15 = vrot.slane %v1246_v26, 1  ;;  %v886_v33 = vld [vmem:[#allocation2 + $0xbc] sm:$0x1]  ;;  %v1040_v37 = vunpack.c.l.b16 %v878_v11  ;;  %2090 = vmatpush.bf16.msrb.mxu3 %v6392_v3  ;;  %v1251_v26 = vshrl.u32 %v7684_v19, 16 }
  0xf2   : > { %v6413_v56 = vld [vmem:[#allocation7 + $0xa8] sm:$0xff] }
  0xf5   : > { %1740 = vmatmul.bf16.gmra.mxu2 %v7598_v9  ;;  %v6415_v9 = vld [vmem:[#allocation7 + $0xb8] sm:$0xff]  ;;  %v7709_v11 = vld [vmem:[#allocation2 + $0x60] sm:$0xff]  }
  0xf6   : > { %2261 = vmatpush.bf16.msrb.mxu1 %v6415_v9  ;;  %v7686_v9 = vld [vmem:[#allocation2 + $0xb4] sm:$0xf0]  ;;  %v1167_v7 = vshrl.u32 %v7709_v11, 16 }
  0xf7   : > { %9550 = vst [vmem:[#allocation32_spill] sm:$0xff] %v7686_v9  ;;  %v6813_v9 = vld [vmem:[#allocation2 + $0xc] sm:$0xe] }
  0xf9   : > { %1705 = vmatmul.bf16.gmra.mxu0 %v7647_v23 }
  0xfa   : > { %2262 = vmatpush.bf16.msrb.mxu1 %v6414_v55  ;;  %v879_v55 = vld [vmem:[#allocation2 + $0x68] sm:$0x1] }
  0xfe   : > { %2263 = vmatpush.bf16.msrb.mxu1 %v6413_v56 }
  0xff   : > { %1789 = vmatmul.bf16.gmra.mxu1 %v7655_v39 }
 0x100   : > { %1829 = vmatmul.bf16.gmra.mxu3 %v7658_v52  ;;  %v663_v52 = vrot.slane %v661_v59, 7  ;;  %v1243_v59 = vrot.slane %v1241_v41, 1  ;;  %v1157_v41 = vshll.u32 %v7663_v8, 16 }
 0x102   : > { %v668_v63 = vrot.slane %v663_v52, 4  ;;  %v666_v25 = vor.u32 %v664_v57, %v663_v52  ;;  %v1152_v57 = vrot.slane %v1150_v5, 1  ;;  %v1244_v52 = vor.u32 %v1243_v59, %v1239_v21  ;;  %v6400_v5 = vld [vmem:[#allocation7 + $0x40] sm:$0xff] }
 0x103   : > { %2179 = vmatpush.bf16.msrb.mxu0 %v6400_v5  ;;  %v1155_v21 = vshrl.u32 %v7663_v8, 16  ;;  %v1041_v5 = vunpack.c.l.b16 %v879_v55  ;;  %v1681_v55 = vpop.f32.mrf.mxu0 }
 0x104   : > { %v833_v30 = vsel %vm7427_vm7, %v668_v63, %v832_v48  ;;  %v667_v53 = vsel %vm7288_vm4, %v659_v22, %v666_v25  ;;  %v7692_v34 = vsel %vm1069_vm8, %v1148_v62, %v1152_v57  ;;  %v7695_v29 = vsel %vm1069_vm8, %v1244_v52, %v1248_v15  ;;  %v6432_v22 = vld [vmem:[#allocation7 + $0x140] sm:$0xff]  ;;  %v871_v62 = vld [vmem:[#allocation2 + $0x8] sm:$0x1] }
 0x105   : > { %831 = vst [vmem:[#allocation2 + $0xc4] sm:$0xf] %v667_v53  ;;  %1745 = vmatmul.bf16.gmra.mxu2 %v6615_v60  ;;  %v1048_v48 = vunpack.c.l.b16 %v886_v33  ;;  %v7699_v60 = vpack.c.b16 %v1040_v37, %v1040_v37  ;;  %v1253_v63 = vshll.u32 %v7684_v19, 16  ;;  %v1159_v25 = vrot.slane %v1157_v41, 1  ;;  %v6412_v53 = vld [vmem:[#allocation7 + $0xa0] sm:$0xff]  ;;  %v7711_v33 = vld [vmem:[#allocation2] sm:$0xff]  }
 0x106   : > { %834 = vst [vmem:[#allocation2 + $0xc8] sm:$0x1] %v833_v30  ;;  %1857 = vmatpush.bf16.msrb.mxu2 %v6432_v22  ;;  %v1033_v57 = vunpack.c.l.b16 %v871_v62  ;;  %2264 = vmatpush.bf16.msrb.mxu1 %v6412_v53  ;;  %v1073_v22 = vshll.u32 %v7711_v33, 16  ;;  %v6410_v53 = vld [vmem:[#allocation7 + $0x90] sm:$0xff]  ;;  %v7728_v62 = vpack.c.b16 %v1041_v5, %v1041_v5 }
 0x107   : > { %9551 = vst [vmem:[#allocation33_spill] sm:$0xff] %v7692_v34  ;;  %v7702_v50 = vpack.c.b16 %v1048_v48, %v1048_v48  ;;  %v1162_v59 = vshll.u32 %v7699_v60, 16  ;;  %v1255_v38 = vrot.slane %v1253_v63, 1  ;;  %v1160_v52 = vor.u32 %v1159_v25, %v1155_v21  ;;  %v6411_v63 = vld [vmem:[#allocation7 + $0x98] sm:$0xff] }
 0x108   : > { %v7716_v3 = vpack.c.b16 %v1033_v57, %v1033_v57  ;;  %v1169_v57 = vshll.u32 %v7709_v11, 16  ;;  %v1174_v5 = vshll.u32 %v7728_v62, 16 }
 0x109   : > { %1710 = vmatmul.bf16.gmra.mxu0 %v7663_v8  ;;  %9552 = vst [vmem:[#allocation34_spill] sm:$0xff] %v7702_v50  ;;  %v1258_v30 = vshll.u32 %v7702_v50, 16  ;;  %v1164_v15 = vrot.slane %v1162_v59, 1  ;;  %v1256_v37 = vor.u32 %v1255_v38, %v1251_v26  ;;  %v1071_v26 = vshrl.u32 %v7711_v33, 16  ;;  %v6463_v50 = vld [vmem:[#allocation7 + $0x238] sm:$0xff] }
 0x10a   : > { %2265 = vmatpush.bf16.msrb.mxu1 %v6411_v63  ;;  %v1075_v38 = vrot.slane %v1073_v22, 1  ;;  %v6409_v22 = vld [vmem:[#allocation7 + $0x88] sm:$0xff]  ;;  %v1171_v13 = vrot.slane %v1169_v57, 1  ;;  %2721 = vmatpush.bf16.msra.mxu0 %v6463_v50 }
 0x10b   : > { %v1260_v48 = vrot.slane %v1258_v30, 1  ;;  %v7719_v56 = vsel %vm1069_vm8, %v1160_v52, %v1164_v15  ;;  %v1078_v30 = vshll.u32 %v7716_v3, 16  ;;  %v6447_v52 = vld [vmem:[#allocation7 + $0x1b8] sm:$0xff] }
 0x10c   : > { %9553 = vst [vmem:[#allocation35_spill] sm:$0xff] %v7719_v56  ;;  %v6616_v59 = vld [vmem:[#allocation2 + $0xc0] sm:$0xff]   ;;  %v6455_v15 = vld [vmem:[#allocation7 + $0x1f8] sm:$0xff]  ;;  %2543 = vmatpush.bf16.msra.mxu2 %v6447_v52 }
 0x10d   : > { %v887_v41 = vld [vmem:[#allocation2 + $0xc8] sm:$0x1]  ;;  %v7722_v21 = vsel %vm1069_vm8, %v1256_v37, %v1260_v48  ;;  %v1265_v48 = vshll.u32 %v6616_v59, 16  ;;  %v1080_v63 = vrot.slane %v1078_v30, 1  ;;  %2632 = vmatpush.bf16.msra.mxu3 %v6455_v15  ;;  %v1263_v16 = vshrl.u32 %v6616_v59, 16  ;;  %v1683_v15 = vpop.f32.mrf.mxu0 }
 0x10e   : > { %9554 = vst [vmem:[#allocation36_spill] sm:$0xff] %v7722_v21  ;;  %v1049_v25 = vunpack.c.l.b16 %v887_v41  ;;  %v1076_v41 = vor.u32 %v1075_v38, %v1071_v26  ;;  %2266 = vmatpush.bf16.msrb.mxu1 %v6410_v53  ;;  %v6408_v26 = vld [vmem:[#allocation7 + $0x80] sm:$0xff]  ;;  %v1172_v38 = vor.u32 %v1171_v13, %v1167_v7  ;;  %v1176_v30 = vrot.slane %v1174_v5, 1  ;;  %v6617_v13 = vld [vmem:[#allocation2] sm:$0xf0] }
 0x10f   : > { %1794 = vmatmul.bf16.gmra.mxu1 %v7692_v34  ;;  %v6618_v7 = vld [vmem:[#allocation2] sm:$0xe] }
 0x110   : > { %1834 = vmatmul.bf16.gmra.mxu3 %v7695_v29  ;;  %v7731_v37 = vpack.c.b16 %v1049_v25, %v1049_v25  ;;  %v1081_v25 = vsel %vm1069_vm8, %v1076_v41, %v1080_v63  ;;  %v7738_v57 = vsel %vm1069_vm8, %v1172_v38, %v1176_v30  ;;  %v6814_v41 = vor.u32 %v6813_v9, %v7321_v32  ;;  %v6620_v32 = vld [vmem:[#allocation2 + $0x18] sm:$0xf0]  ;;  %v6621_v9 = vld [vmem:[#allocation2 + $0x18] sm:$0xe] }
 0x111   : > { %9555 = vst [vmem:[#allocation37_spill] sm:$0xff] %v7738_v57 }
 0x112   : > { %2267 = vmatpush.bf16.msrb.mxu1 %v6409_v22  ;;  %v1362_v50 = vrot.slane %v6814_v41, 1  ;;  %v1360_v22 = vrot.slane %v7716_v3, 1  ;;  %v1366_v3 = vrot.slane %v7491_v42, 1 }
 0x115   : > { %1750 = vmatmul.bf16.gmra.mxu2 %v7684_v19  ;;  %v1267_v19 = vrot.slane %v1265_v48, 1 }
 0x116   : > { %2268 = vmatpush.bf16.msrb.mxu1 %v6408_v26 }
 0x117   : > { %v1268_v53 = vor.u32 %v1267_v19, %v1263_v16  ;;  %v1363_v16 = vrot.slane %v7473_v18, 1  ;;  %v6619_v19 = vor.u32 %v6618_v7, %v6617_v13  ;;  %v6622_v18 = vor.u32 %v6621_v9, %v6620_v32 }
 0x119   : > { %1715 = vmatmul.bf16.gmra.mxu0 %v7709_v11  ;;  %v1359_v63 = vrot.slane %v6619_v19, 1  ;;  %v1365_v41 = vrot.slane %v6622_v18, 1  ;;  %v1369_v18 = vrot.slane %v7524_v35, 1 }
 0x11b   : > { %v1361_v26 = vsel %vm1358_vm9, %v1359_v63, %v1360_v22  ;;  %v7760_v19 = vsel %vm1358_vm9, %v1365_v41, %v1366_v3 }
 0x11f   : > { %1799 = vmatmul.bf16.gmra.mxu1 %v7719_v56 }
 0x120   : > { %1839 = vmatmul.bf16.gmra.mxu3 %v7722_v21  ;;  %v1270_v21 = vshll.u32 %v7731_v37, 16 }
 0x122   : > { %v1272_v52 = vrot.slane %v1270_v21, 1  ;;  %v1364_v21 = vsel %vm1358_vm9, %v1362_v50, %v1363_v16 }
 0x124   : > { %v7741_v48 = vsel %vm1069_vm8, %v1268_v53, %v1272_v52  ;;  %v6446_v53 = vld [vmem:[#allocation7 + $0x1b0] sm:$0xff] }
 0x125   : > { %1755 = vmatmul.bf16.gmra.mxu2 %v6616_v59  ;;  %9556 = vst [vmem:[#allocation38_spill] sm:$0xff] %v7741_v48  ;;  %v6454_v52 = vld [vmem:[#allocation7 + $0x1f0] sm:$0xff] }
 0x126   : > { %2544 = vmatpush.bf16.msra.mxu2 %v6446_v53  ;;  %2633 = vmatpush.bf16.msra.mxu3 %v6454_v52 }
 0x129   : > { %2180 = vmatmul.bf16.vlgmr.msrb.gmra.mxu0 %v1081_v25 }
 0x12f   : > { %1804 = vmatmul.bf16.gmra.mxu1 %v7738_v57 }
 0x130   : > { %1844 = vmatmul.bf16.gmra.mxu3 %v7741_v48  ;;  %v6819_v48 = vld [vmem:[#allocation2 + $0x3c] sm:$0xe] }
 0x135   : > { %1858 = vmatmul.bf16.vlgmr.msrb.gmra.mxu2 %v1364_v21 }
 0x136   : > { %v1686_v59 = vpop.f32.mrf.mxu0 }
 0x138   : > { %v1721_v25 = vpop.f32.mrf.mxu2 }
 0x139   : > { %2185 = vmatmul.bf16.gmra.mxu0 %v7489_v0 }
 0x13c   : > { %v1770_v5 = vpop.f32.mrf.mxu1 }
 0x13d   : > { %v7751_v38 = vadd.f32 %v1770_v5, %v1681_v55  ;;  %v6462_v55 = vld [vmem:[#allocation7 + $0x230] sm:$0xff] }
 0x13e   : > { %v1688_v30 = vpop.f32.mrf.mxu0  ;;  %2722 = vmatpush.bf16.msra.mxu0 %v6462_v55 }
 0x13f   : > { %2269 = vmatmul.bf16.vlgmr.msrb.gmra.mxu1 %v1361_v26 }
 0x140   : > { %2091 = vmatmul.bf16.vlgmr.msrb.gmra.mxu3 %v7711_v33  ;;  %v1723_v50 = vpop.f32.mrf.mxu2  ;;  %v6816_v33 = vld [vmem:[#allocation2 + $0x24] sm:$0xe] }
 0x143   : > { %v1810_v0 = vpop.f32.mrf.mxu3 }
 0x144   : > { %v7755_v13 = vadd.f32 %v1810_v0, %v1721_v25  ;;  %v1772_v7 = vpop.f32.mrf.mxu1 }
 0x145   : > { %v7757_v16 = vadd.f32 %v1772_v7, %v1683_v15  ;;  %1863 = vmatmul.bf16.gmra.mxu2 %v7760_v19  ;;  %v6817_v15 = vor.u32 %v6816_v33, %v7496_v45 }
 0x146   : > { %v1691_v63 = vpop.f32.mrf.mxu0 }
 0x147   : > { %v1368_v26 = vrot.slane %v6817_v15, 1  ;;  %v6453_v15 = vld [vmem:[#allocation7 + $0x1e8] sm:$0xff] }
 0x148   : > { %v1726_v9 = vpop.f32.mrf.mxu2  ;;  %2634 = vmatpush.bf16.msra.mxu3 %v6453_v15 }
 0x149   : > { %2190 = vmatmul.bf16.gmra.mxu0 %v7520_v28  ;;  %v7776_v7 = vsel %vm1358_vm9, %v1368_v26, %v1369_v18  ;;  %v1372_v18 = vrot.slane %v7565_v4, 1 }
 0x14b   : > { %v1812_v42 = vpop.f32.mrf.mxu3 }
 0x14c   : > { %v7764_v22 = vadd.f32 %v1812_v42, %v1723_v50  ;;  %v1775_v32 = vpop.f32.mrf.mxu1 }
 0x14d   : > { %v7766_v5 = vadd.f32 %v1775_v32, %v1686_v59  ;;  %v7785_v32 = vld [vmem:[#allocation2 + $0x18] sm:$0xff]  }
 0x14e   : > { %v1693_v25 = vpop.f32.mrf.mxu0 }
 0x14f   : > { %2274 = vmatmul.bf16.gmra.mxu1 %v1364_v21  ;;  %v6624_v21 = vld [vmem:[#allocation2 + $0x30] sm:$0xe] }
 0x150   : > { %2096 = vmatmul.bf16.gmra.mxu3 %v7319_v31  ;;  %v1728_v3 = vpop.f32.mrf.mxu2  ;;  %v6623_v31 = vld [vmem:[#allocation2 + $0x30] sm:$0xf0] }
 0x151   : > { %v6625_v42 = vor.u32 %v6624_v21, %v6623_v31  ;;  %v6461_v31 = vld [vmem:[#allocation7 + $0x228] sm:$0xff] }
 0x152   : > { %2723 = vmatpush.bf16.msra.mxu0 %v6461_v31 }
 0x153   : > { %v1815_v53 = vpop.f32.mrf.mxu3  ;;  %v1371_v26 = vrot.slane %v6625_v42, 1 }
 0x154   : > { %v7771_v52 = vadd.f32 %v1815_v53, %v1726_v9  ;;  %v1777_v41 = vpop.f32.mrf.mxu1  ;;  %v6445_v9 = vld [vmem:[#allocation7 + $0x1a8] sm:$0xff] }
 0x155   : > { %v7773_v0 = vadd.f32 %v1777_v41, %v1688_v30  ;;  %1868 = vmatmul.bf16.gmra.mxu2 %v7776_v7  ;;  %v7794_v21 = vsel %vm1358_vm9, %v1371_v26, %v1372_v18  ;;  %v1375_v18 = vrot.slane %v7629_v36, 1 }
 0x156   : > { %v1696_v59 = vpop.f32.mrf.mxu0  ;;  %2545 = vmatpush.bf16.msra.mxu2 %v6445_v9 }
 0x158   : > { %v1731_v55 = vpop.f32.mrf.mxu2 }
 0x159   : > { %2195 = vmatmul.bf16.gmra.mxu0 %v7575_v17 }
 0x15b   : > { %v1817_v45 = vpop.f32.mrf.mxu3 }
 0x15c   : > { %v7780_v50 = vadd.f32 %v1817_v45, %v1728_v3  ;;  %v1780_v35 = vpop.f32.mrf.mxu1 }
 0x15d   : > { %v7782_v33 = vadd.f32 %v1780_v35, %v1691_v63 }
 0x15e   : > { %v1698_v30 = vpop.f32.mrf.mxu0 }
 0x15f   : > { %2279 = vmatmul.bf16.gmra.mxu1 %v7760_v19 }
 0x160   : > { %2101 = vmatmul.bf16.gmra.mxu3 %v7785_v32  ;;  %v1733_v3 = vpop.f32.mrf.mxu2 }
 0x163   : > { %v1820_v53 = vpop.f32.mrf.mxu3 }
 0x164   : > { %v7789_v41 = vadd.f32 %v1820_v53, %v1731_v55  ;;  %v1782_v63 = vpop.f32.mrf.mxu1 }
 0x165   : > { %v7791_v45 = vadd.f32 %v1782_v63, %v1693_v25  ;;  %1873 = vmatmul.bf16.gmra.mxu2 %v7794_v21  ;;  %v6820_v25 = vor.u32 %v6819_v48, %v7589_v46  ;;  %v6626_v48 = vld [vmem:[#allocation2 + $0x48] sm:$0xf0] }
 0x166   : > { %9557 = vst [vmem:[#allocation39_spill] sm:$0xff] %v7789_v41  ;;  %v1701_v35 = vpop.f32.mrf.mxu0 }
 0x167   : > { %v1374_v26 = vrot.slane %v6820_v25, 1  ;;  %v6627_v25 = vld [vmem:[#allocation2 + $0x48] sm:$0xe] }
 0x168   : > { %v1736_v9 = vpop.f32.mrf.mxu2 }
 0x169   : > { %2200 = vmatmul.bf16.gmra.mxu0 %v7603_v24 }
 0x16b   : > { %v1822_v4 = vpop.f32.mrf.mxu3 }
 0x16c   : > { %v7798_v42 = vadd.f32 %v1822_v4, %v1733_v3  ;;  %v1785_v55 = vpop.f32.mrf.mxu1 }
 0x16d   : > { %v7800_v15 = vadd.f32 %v1785_v55, %v1696_v59  ;;  %v7811_v59 = vsel %vm1358_vm9, %v1374_v26, %v1375_v18  ;;  %v6452_v26 = vld [vmem:[#allocation7 + $0x1e0] sm:$0xff] }
 0x16e   : > { %9558 = vst [vmem:[#allocation40_spill] sm:$0xff] %v7798_v42  ;;  %v1703_v53 = vpop.f32.mrf.mxu0  ;;  %2635 = vmatpush.bf16.msra.mxu3 %v6452_v26 }
 0x16f   : > { %2284 = vmatmul.bf16.gmra.mxu1 %v7776_v7 }
 0x170   : > { %2106 = vmatmul.bf16.gmra.mxu3 %v7494_v44  ;;  %v1738_v3 = vpop.f32.mrf.mxu2 }
 0x173   : > { %v1825_v63 = vpop.f32.mrf.mxu3 }
 0x174   : > { %v7806_v31 = vadd.f32 %v1825_v63, %v1736_v9  ;;  %v1787_v24 = vpop.f32.mrf.mxu1 }
 0x175   : > { %v7808_v4 = vadd.f32 %v1787_v24, %v1698_v30  ;;  %1878 = vmatmul.bf16.gmra.mxu2 %v7811_v59  ;;  %v6444_v30 = vld [vmem:[#allocation7 + $0x1a0] sm:$0xff] }
 0x176   : > { %9559 = vst [vmem:[#allocation41_spill] sm:$0xff] %v7806_v31  ;;  %v1706_v55 = vpop.f32.mrf.mxu0  ;;  %v6628_v31 = vor.u32 %v6627_v25, %v6626_v48  ;;  %2546 = vmatpush.bf16.msra.mxu2 %v6444_v30  ;;  %v6460_v48 = vld [vmem:[#allocation7 + $0x220] sm:$0xff] }
 0x177   : > { %2724 = vmatpush.bf16.msra.mxu0 %v6460_v48 }
 0x178   : > { %v1741_v9 = vpop.f32.mrf.mxu2  ;;  %v1377_v18 = vrot.slane %v6628_v31, 1 }
 0x179   : > { %2205 = vmatmul.bf16.gmra.mxu0 %v7655_v39  ;;  %v1378_v39 = vrot.slane %v7668_v6, 1 }
 0x17b   : > { %v1827_v46 = vpop.f32.mrf.mxu3  ;;  %v7827_v25 = vsel %vm1358_vm9, %v1377_v18, %v1378_v39  ;;  %v1381_v18 = vrot.slane %v7699_v60, 1 }
 0x17c   : > { %v7815_v42 = vadd.f32 %v1827_v46, %v1738_v3  ;;  %v1790_v36 = vpop.f32.mrf.mxu1 }
 0x17d   : > { %v7817_v63 = vadd.f32 %v1790_v36, %v1701_v35 }
 0x17e   : > { %9560 = vst [vmem:[#allocation42_spill] sm:$0xff] %v7815_v42  ;;  %v1708_v24 = vpop.f32.mrf.mxu0 }
 0x17f   : > { %2289 = vmatmul.bf16.gmra.mxu1 %v7794_v21 }
 0x180   : > { %2111 = vmatmul.bf16.gmra.mxu3 %v7554_v51  ;;  %v1743_v42 = vpop.f32.mrf.mxu2  ;;  %v6822_v51 = vld [vmem:[#allocation2 + $0x54] sm:$0xe] }
 0x183   : > { %v1830_v41 = vpop.f32.mrf.mxu3 }
 0x184   : > { %v7822_v3 = vadd.f32 %v1830_v41, %v1741_v9  ;;  %v1792_v46 = vpop.f32.mrf.mxu1 }
 0x185   : > { %v7824_v35 = vadd.f32 %v1792_v46, %v1703_v53  ;;  %1883 = vmatmul.bf16.gmra.mxu2 %v7827_v25  ;;  %v6823_v53 = vor.u32 %v6822_v51, %v7665_v14  ;;  %v6629_v51 = vld [vmem:[#allocation2 + $0x60] sm:$0xf0] }
 0x186   : > { %9561 = vst [vmem:[#allocation43_spill] sm:$0xff] %v7822_v3  ;;  %v1711_v36 = vpop.f32.mrf.mxu0 }
 0x187   : > { %v1380_v39 = vrot.slane %v6823_v53, 1  ;;  %v6630_v53 = vld [vmem:[#allocation2 + $0x60] sm:$0xe] }
 0x188   : > { %v1746_v9 = vpop.f32.mrf.mxu2 }
 0x189   : > { %2210 = vmatmul.bf16.gmra.mxu0 %v7692_v34 }
 0x18b   : > { %v1832_v6 = vpop.f32.mrf.mxu3 }
 0x18c   : > { %v7831_v31 = vadd.f32 %v1832_v6, %v1743_v42  ;;  %v1795_v41 = vpop.f32.mrf.mxu1 }
 0x18d   : > { %v7833_v30 = vadd.f32 %v1795_v41, %v1706_v55  ;;  %v7844_v55 = vsel %vm1358_vm9, %v1380_v39, %v1381_v18  ;;  %v6451_v39 = vld [vmem:[#allocation7 + $0x1d8] sm:$0xff] }
 0x18e   : > { %9562 = vst [vmem:[#allocation44_spill] sm:$0xff] %v7831_v31  ;;  %v1713_v26 = vpop.f32.mrf.mxu0  ;;  %2636 = vmatpush.bf16.msra.mxu3 %v6451_v39 }
 0x18f   : > { %2294 = vmatmul.bf16.gmra.mxu1 %v7811_v59 }
 0x190   : > { %2116 = vmatmul.bf16.gmra.mxu3 %v7587_v43  ;;  %v1748_v42 = vpop.f32.mrf.mxu2 }
 0x193   : > { %v1835_v46 = vpop.f32.mrf.mxu3 }
 0x194   : > { %v7839_v48 = vadd.f32 %v1835_v46, %v1746_v9  ;;  %v1797_v34 = vpop.f32.mrf.mxu1 }
 0x195   : > { %v7841_v6 = vadd.f32 %v1797_v34, %v1708_v24  ;;  %1888 = vmatmul.bf16.gmra.mxu2 %v7844_v55  ;;  %v6443_v24 = vld [vmem:[#allocation7 + $0x198] sm:$0xff] }
 0x196   : > { %9563 = vst [vmem:[#allocation45_spill] sm:$0xff] %v7839_v48  ;;  %v1716_v41 = vpop.f32.mrf.mxu0  ;;  %v6631_v48 = vor.u32 %v6630_v53, %v6629_v51  ;;  %2547 = vmatpush.bf16.msra.mxu2 %v6443_v24 }
 0x198   : > { %v1751_v9 = vpop.f32.mrf.mxu2  ;;  %v1383_v18 = vrot.slane %v6631_v48, 1 }
 0x199   : > { %2215 = vmatmul.bf16.gmra.mxu0 %v7719_v56  ;;  %v1384_v56 = vrot.slane %v7728_v62, 1 }
 0x19b   : > { %v1837_v14 = vpop.f32.mrf.mxu3  ;;  %v7860_v51 = vsel %vm1358_vm9, %v1383_v18, %v1384_v56  ;;  %v1387_v18 = vrot.slane %v7476_v20, 1 }
 0x19c   : > { %v7848_v31 = vadd.f32 %v1837_v14, %v1748_v42  ;;  %v1800_v60 = vpop.f32.mrf.mxu1  ;;  %9566 = vst [vmem:[#allocation48_spill] sm:$0xff] %v7860_v51 }
 0x19d   : > { %v7850_v46 = vadd.f32 %v1800_v60, %v1711_v36  ;;  %v6459_v36 = vld [vmem:[#allocation7 + $0x218] sm:$0xff] }
 0x19e   : > { %9564 = vst [vmem:[#allocation46_spill] sm:$0xff] %v7848_v31  ;;  %v1718_v34 = vpop.f32.mrf.mxu0  ;;  %2725 = vmatpush.bf16.msra.mxu0 %v6459_v36 }
 0x19f   : > { %2299 = vmatmul.bf16.gmra.mxu1 %v7827_v25 }
 0x1a0   : > { %2121 = vmatmul.bf16.gmra.mxu3 %v7647_v23  ;;  %v1753_v31 = vpop.f32.mrf.mxu2  ;;  %v6825_v23 = vld [vmem:[#allocation2 + $0x6c] sm:$0xe] }
 0x1a3   : > { %v1840_v3 = vpop.f32.mrf.mxu3 }
 0x1a4   : > { %v7855_v42 = vadd.f32 %v1840_v3, %v1751_v9  ;;  %v1802_v14 = vpop.f32.mrf.mxu1 }
 0x1a5   : > { %v7857_v60 = vadd.f32 %v1802_v14, %v1713_v26  ;;  %1893 = vmatmul.bf16.gmra.mxu2 %v7860_v51  ;;  %v6826_v26 = vor.u32 %v6825_v23, %v7461_v2  ;;  %v6632_v23 = vld [vmem:[#allocation2 + $0x78] sm:$0xf0] }
 0x1a6   : > { %9565 = vst [vmem:[#allocation47_spill] sm:$0xff] %v7855_v42  ;;  %v2181_v53 = vpop.f32.mrf.mxu0 }
 0x1a7   : > { %v1386_v56 = vrot.slane %v6826_v26, 1  ;;  %v6633_v26 = vld [vmem:[#allocation2 + $0x78] sm:$0xe] }
 0x1a8   : > { %v1756_v9 = vpop.f32.mrf.mxu2 }
 0x1a9   : > { %2220 = vmatmul.bf16.gmra.mxu0 %v7738_v57 }
 0x1ab   : > { %v1842_v62 = vpop.f32.mrf.mxu3 }
 0x1ac   : > { %v7864_v48 = vadd.f32 %v1842_v62, %v1753_v31  ;;  %v1805_v3 = vpop.f32.mrf.mxu1 }
 0x1ad   : > { %v7866_v24 = vadd.f32 %v1805_v3, %v1716_v41  ;;  %v7877_v41 = vsel %vm1358_vm9, %v1386_v56, %v1387_v18  ;;  %v6450_v56 = vld [vmem:[#allocation7 + $0x1d0] sm:$0xff] }
 0x1ae   : > { %9567 = vst [vmem:[#allocation49_spill] sm:$0xff] %v7864_v48  ;;  %v2183_v39 = vpop.f32.mrf.mxu0  ;;  %2637 = vmatpush.bf16.msra.mxu3 %v6450_v56 }
 0x1af   : > { %2304 = vmatmul.bf16.gmra.mxu1 %v7844_v55 }
 0x1b0   : > { %2126 = vmatmul.bf16.gmra.mxu3 %v7663_v8  ;;  %v1758_v31 = vpop.f32.mrf.mxu2  ;;  %v6458_v8 = vld [vmem:[#allocation7 + $0x210] sm:$0xff] }
 0x1b1   : > { %2726 = vmatpush.bf16.msra.mxu0 %v6458_v8 }
 0x1b3   : > { %v1845_v14 = vpop.f32.mrf.mxu3 }
 0x1b4   : > { %v7872_v36 = vadd.f32 %v1845_v14, %v1756_v9  ;;  %v1807_v57 = vpop.f32.mrf.mxu1 }
 0x1b5   : > { %v7874_v62 = vadd.f32 %v1807_v57, %v1718_v34  ;;  %1898 = vmatmul.bf16.gmra.mxu2 %v7877_v41  ;;  %v6442_v34 = vld [vmem:[#allocation7 + $0x190] sm:$0xff] }
 0x1b6   : > { %9568 = vst [vmem:[#allocation50_spill] sm:$0xff] %v7872_v36  ;;  %v2186_v3 = vpop.f32.mrf.mxu0  ;;  %v6634_v36 = vor.u32 %v6633_v26, %v6632_v23  ;;  %2548 = vmatpush.bf16.msra.mxu2 %v6442_v34  ;;  %v6495_v34 = vld [vmem:[#allocation9 + $0xf8] sm:$0xff] }
 0x1b7   : > { %4330 = vmatpush.bf16.msra.mxu1 %v6495_v34 }
 0x1b8   : > { %v1859_v20 = vpop.f32.mrf.mxu2  ;;  %v1389_v18 = vrot.slane %v6634_v36, 1 }
 0x1b9   : > { %2225 = vmatmul.bf16.gmra.mxu0 %v7500_v47  ;;  %v1860_v14 = vadd.f32 %v1859_v20, %v7751_v38  ;;  %v1390_v47 = vrot.slane %v7502_v49, 1 }
 0x1bb   : > { %v1847_v2 = vpop.f32.mrf.mxu3  ;;  %v7889_v26 = vsel %vm1358_vm9, %v1389_v18, %v1390_v47  ;;  %v1393_v18 = vrot.slane %v7543_v10, 1  ;;  %v6636_v10 = vld [vmem:[#allocation2 + $0x90] sm:$0xe] }
 0x1bc   : > { %v7881_v48 = vadd.f32 %v1847_v2, %v1758_v31  ;;  %v2270_v9 = vpop.f32.mrf.mxu1 }
 0x1be   : > { %9569 = vst [vmem:[#allocation51_spill] sm:$0xff] %v7881_v48  ;;  %v2188_v57 = vpop.f32.mrf.mxu0 }
 0x1bf   : > { %2309 = vmatmul.bf16.gmra.mxu1 %v7860_v51 }
 0x1c0   : > { %2131 = vmatmul.bf16.gmra.mxu3 %v7709_v11  ;;  %v1861_v2 = vpop.f32.mrf.mxu2  ;;  %v6828_v11 = vld [vmem:[#allocation2 + $0x84] sm:$0xe] }
 0x1c1   : > { %v1862_v38 = vadd.f32 %v1861_v2, %v7757_v16  ;;  %v6829_v47 = vor.u32 %v6828_v11, %v7509_v58 }
 0x1c3   : > { %v2092_v42 = vpop.f32.mrf.mxu3 }
 0x1c4   : > { %v2093_v31 = vadd.f32 %v2092_v42, %v1860_v14  ;;  %v2272_v48 = vpop.f32.mrf.mxu1 }
 0x1c5   : > { %1903 = vmatmul.bf16.gmra.mxu2 %v7889_v26 }
 0x1c6   : > { %v2182_v23 = vadd.f32 %v2181_v53, %v2093_v31  ;;  %v2191_v20 = vpop.f32.mrf.mxu0 }
 0x1c8   : > { %v7891_v51 = vadd.f32 %v2270_v9, %v2182_v23  ;;  %v1864_v36 = vpop.f32.mrf.mxu2  ;;  %v1392_v9 = vrot.slane %v6829_v47, 1 }
 0x1c9   : > { %2230 = vmatmul.bf16.gmra.mxu0 %v7529_v40  ;;  %v1865_v16 = vadd.f32 %v1864_v36, %v7766_v5 }
 0x1ca   : > { %v7904_v58 = vsel %vm1358_vm9, %v1392_v9, %v1393_v18  ;;  %v7912_v9 = vld [vmem:[#allocation2 + $0x78] sm:$0xff]  }
 0x1cb   : > { %v2094_v49 = vpop.f32.mrf.mxu3  ;;  %v6441_v18 = vld [vmem:[#allocation7 + $0x188] sm:$0xff] }
 0x1cc   : > { %v2095_v42 = vadd.f32 %v2094_v49, %v1862_v38  ;;  %v2275_v14 = vpop.f32.mrf.mxu1  ;;  %2549 = vmatpush.bf16.msra.mxu2 %v6441_v18 }
 0x1ce   : > { %v2184_v53 = vadd.f32 %v2183_v39, %v2095_v42  ;;  %v2193_v56 = vpop.f32.mrf.mxu0  ;;  %v6635_v42 = vld [vmem:[#allocation2 + $0x90] sm:$0xf0] }
 0x1cf   : > { %2314 = vmatmul.bf16.gmra.mxu1 %v7877_v41 }
 0x1d0   : > { %2136 = vmatmul.bf16.gmra.mxu3 %v7459_v1  ;;  %v7899_v8 = vadd.f32 %v2272_v48, %v2184_v53  ;;  %v1866_v38 = vpop.f32.mrf.mxu2 }
 0x1d1   : > { %v1867_v5 = vadd.f32 %v1866_v38, %v7773_v0  ;;  %v1396_v38 = vrot.slane %v7584_v27, 1 }
 0x1d3   : > { %v2097_v31 = vpop.f32.mrf.mxu3 }
 0x1d4   : > { %v2098_v2 = vadd.f32 %v2097_v31, %v1865_v16  ;;  %v2277_v23 = vpop.f32.mrf.mxu1  ;;  %v6449_v31 = vld [vmem:[#allocation7 + $0x1c8] sm:$0xff] }
 0x1d5   : > { %1908 = vmatmul.bf16.gmra.mxu2 %v7904_v58  ;;  %2638 = vmatpush.bf16.msra.mxu3 %v6449_v31  ;;  %v6494_v31 = vld [vmem:[#allocation9 + $0xf0] sm:$0xff] }
 0x1d6   : > { %v2187_v39 = vadd.f32 %v2186_v3, %v2098_v2  ;;  %v2196_v11 = vpop.f32.mrf.mxu0  ;;  %v6637_v3 = vor.u32 %v6636_v10, %v6635_v42  ;;  %4331 = vmatpush.bf16.msra.mxu1 %v6494_v31 }
 0x1d8   : > { %v7906_v49 = vadd.f32 %v2275_v14, %v2187_v39  ;;  %v1869_v34 = vpop.f32.mrf.mxu2  ;;  %v1395_v2 = vrot.slane %v6637_v3, 1 }
 0x1d9   : > { %2235 = vmatmul.bf16.gmra.mxu0 %v7578_v12  ;;  %v1870_v53 = vadd.f32 %v1869_v34, %v7782_v33  ;;  %v6831_v34 = vld [vmem:[#allocation2 + $0x9c] sm:$0xe] }
 0x1db   : > { %v2099_v48 = vpop.f32.mrf.mxu3 }
 0x1dc   : > { %v2100_v36 = vadd.f32 %v2099_v48, %v1867_v5  ;;  %v2280_v16 = vpop.f32.mrf.mxu1  ;;  %v6457_v48 = vld [vmem:[#allocation7 + $0x208] sm:$0xff] }
 0x1dd   : > { %2727 = vmatpush.bf16.msra.mxu0 %v6457_v48  ;;  %v9573_v48 = vld [vmem:[#allocation27_spill] sm:$0xff] }
 0x1de   : > { %v2189_v0 = vadd.f32 %v2188_v57, %v2100_v36  ;;  %v2198_v47 = vpop.f32.mrf.mxu0  ;;  %v7920_v36 = vsel %vm1358_vm9, %v1395_v2, %v1396_v38 }
 0x1df   : > { %2319 = vmatmul.bf16.gmra.mxu1 %v7889_v26 }
 0x1e0   : > { %2141 = vmatmul.bf16.gmra.mxu3 %v7912_v9  ;;  %v7915_v14 = vadd.f32 %v2277_v23, %v2189_v0  ;;  %v1871_v57 = vpop.f32.mrf.mxu2 }
 0x1e1   : > { %v1872_v42 = vadd.f32 %v1871_v57, %v7791_v45 }
 0x1e3   : > { %v2102_v5 = vpop.f32.mrf.mxu3 }
 0x1e4   : > { %v2103_v33 = vadd.f32 %v2102_v5, %v1870_v53  ;;  %v2282_v39 = vpop.f32.mrf.mxu1  ;;  %v9571_v5 = vld [vmem:[#allocation24_spill] sm:$0xff] }
 0x1e5   : > { %1913 = vmatmul.bf16.gmra.mxu2 %v7920_v36  ;;  %v6832_v2 = vor.u32 %v6831_v34, %v9571_v5  ;;  %v6639_v5 = vld [vmem:[#allocation2 + $0xa8] sm:$0xe] }
 0x1e6   : > { %v2192_v10 = vadd.f32 %v2191_v20, %v2103_v33  ;;  %v2201_v23 = vpop.f32.mrf.mxu0 }
 0x1e7   : > { %v1398_v57 = vrot.slane %v6832_v2, 1 }
 0x1e8   : > { %v7922_v0 = vadd.f32 %v2280_v16, %v2192_v10  ;;  %v1874_v3 = vpop.f32.mrf.mxu2  ;;  %v9572_v16 = vld [vmem:[#allocation22_spill] sm:$0xff]  ;;  %v1399_v10 = vrot.slane %v9573_v48, 1 }
 0x1e9   : > { %2240 = vmatmul.bf16.gmra.mxu0 %v7620_v61  ;;  %v1875_v45 = vadd.f32 %v1874_v3, %v7800_v15 }
 0x1ea   : > { %9570 = vst [vmem:[#allocation52_spill] sm:$0xff] %v7922_v0  ;;  %v7935_v34 = vsel %vm1358_vm9, %v1398_v57, %v1399_v10  ;;  %v7943_v57 = vld [vmem:[#allocation2 + $0x90] sm:$0xff]  }
 0x1eb   : > { %v2104_v27 = vpop.f32.mrf.mxu3  ;;  %v6440_v10 = vld [vmem:[#allocation7 + $0x180] sm:$0xff] }
 0x1ec   : > { %v2105_v53 = vadd.f32 %v2104_v27, %v1872_v42  ;;  %v2285_v18 = vpop.f32.mrf.mxu1  ;;  %2550 = vmatpush.bf16.msra.mxu2 %v6440_v10 }
 0x1ee   : > { %v2194_v20 = vadd.f32 %v2193_v56, %v2105_v53  ;;  %v2203_v38 = vpop.f32.mrf.mxu0 }
 0x1ef   : > { %2324 = vmatmul.bf16.gmra.mxu1 %v7904_v58 }
 0x1f0   : > { %2146 = vmatmul.bf16.gmra.mxu3 %v9572_v16  ;;  %v7930_v33 = vadd.f32 %v2282_v39, %v2194_v20  ;;  %v1876_v0 = vpop.f32.mrf.mxu2  ;;  %v9575_v39 = vld [vmem:[#allocation29_spill] sm:$0xff]  ;;  %v6638_v20 = vld [vmem:[#allocation2 + $0xa8] sm:$0xf0] }
 0x1f1   : > { %v1877_v15 = vadd.f32 %v1876_v0, %v7808_v4 }
 0x1f3   : > { %v2107_v42 = vpop.f32.mrf.mxu3 }
 0x1f4   : > { %v2108_v27 = vadd.f32 %v2107_v42, %v1875_v45  ;;  %v2287_v61 = vpop.f32.mrf.mxu1 }
 0x1f5   : > { %1918 = vmatmul.bf16.gmra.mxu2 %v7935_v34 }
 0x1f6   : > { %v2197_v56 = vadd.f32 %v2196_v11, %v2108_v27  ;;  %v2206_v53 = vpop.f32.mrf.mxu0  ;;  %v6640_v11 = vor.u32 %v6639_v5, %v6638_v20  ;;  %v6448_v27 = vld [vmem:[#allocation7 + $0x1c0] sm:$0xff] }
 0x1f7   : > { %2639 = vmatpush.bf16.msra.mxu3 %v6448_v27  ;;  %v6456_v5 = vld [vmem:[#allocation7 + $0x200] sm:$0xff] }
 0x1f8   : > { %v7937_v3 = vadd.f32 %v2285_v18, %v2197_v56  ;;  %v1879_v45 = vpop.f32.mrf.mxu2  ;;  %v1401_v56 = vrot.slane %v6640_v11, 1  ;;  %2728 = vmatpush.bf16.msra.mxu0 %v6456_v5  ;;  %v9581_v5 = vld [vmem:[#allocation34_spill] sm:$0xff] }
 0x1f9   : > { %2245 = vmatmul.bf16.gmra.mxu0 %v9575_v39  ;;  %v1880_v42 = vadd.f32 %v1879_v45, %v7817_v63 }
 0x1fa   : > { %9574 = vst [vmem:[#allocation24_spill] sm:$0xff] %v7937_v3 }
 0x1fb   : > { %v2109_v31 = vpop.f32.mrf.mxu3 }
 0x1fc   : > { %v2110_v2 = vadd.f32 %v2109_v31, %v1877_v15  ;;  %v2290_v48 = vpop.f32.mrf.mxu1  ;;  %v1402_v15 = vrot.slane %v7674_v54, 1 }
 0x1fe   : > { %v2199_v4 = vadd.f32 %v2198_v47, %v2110_v2  ;;  %v2208_v0 = vpop.f32.mrf.mxu0  ;;  %v7953_v3 = vsel %vm1358_vm9, %v1401_v56, %v1402_v15  ;;  %v9579_v56 = vld [vmem:[#allocation32_spill] sm:$0xff] }
 0x1ff   : > { %2329 = vmatmul.bf16.gmra.mxu1 %v7920_v36 }
 0x200   : > { %2151 = vmatmul.bf16.gmra.mxu3 %v7943_v57  ;;  %v7946_v18 = vadd.f32 %v2287_v61, %v2199_v4  ;;  %v1881_v47 = vpop.f32.mrf.mxu2  ;;  %v6834_v4 = vld [vmem:[#allocation2 + $0xb4] sm:$0xe] }
 0x201   : > { %v1882_v2 = vadd.f32 %v1881_v47, %v7824_v35  ;;  %v6835_v15 = vor.u32 %v6834_v4, %v9579_v56 }
 0x203   : > { %v2112_v31 = vpop.f32.mrf.mxu3  ;;  %v1404_v47 = vrot.slane %v6835_v15, 1  ;;  %v6641_v15 = vld [vmem:[#allocation2 + $0xc0] sm:$0xf0] }
 0x204   : > { %v2113_v63 = vadd.f32 %v2112_v31, %v1880_v42  ;;  %v7949_v20 = vpop.f32.mrf.mxu1  ;;  %v6493_v31 = vld [vmem:[#allocation9 + $0xe8] sm:$0xff] }
 0x205   : > { %9576 = vst [vmem:[#allocation22_spill] sm:$0xff] %v7949_v20  ;;  %1923 = vmatmul.bf16.gmra.mxu2 %v7953_v3  ;;  %4332 = vmatpush.bf16.msra.mxu1 %v6493_v31  ;;  %v9583_v31 = vld [vmem:[#allocation36_spill] sm:$0xff] }
 0x206   : > { %v2202_v45 = vadd.f32 %v2201_v23, %v2113_v63  ;;  %v2211_v61 = vpop.f32.mrf.mxu0 }
 0x208   : > { %v7955_v11 = vadd.f32 %v2290_v48, %v2202_v45  ;;  %v1884_v10 = vpop.f32.mrf.mxu2  ;;  %v9580_v48 = vld [vmem:[#allocation23_spill] sm:$0xff]  ;;  %v1405_v45 = vrot.slane %v9581_v5, 1 }
 0x209   : > { %2250 = vmatmul.bf16.gmra.mxu0 %v7695_v29  ;;  %v1885_v35 = vadd.f32 %v1884_v10, %v7833_v30  ;;  %v6642_v5 = vld [vmem:[#allocation2 + $0xc0] sm:$0xe] }
 0x20a   : > { %9577 = vst [vmem:[#allocation27_spill] sm:$0xff] %v7955_v11 }
 0x20b   : > { %v2114_v54 = vpop.f32.mrf.mxu3 }
 0x20c   : > { %v2115_v42 = vadd.f32 %v2114_v54, %v1882_v2  ;;  %v2295_v27 = vpop.f32.mrf.mxu1 }
 0x20e   : > { %v7960_v23 = vadd.f32 %v2203_v38, %v2115_v42  ;;  %v2213_v63 = vpop.f32.mrf.mxu0  ;;  %v7970_v42 = vsel %vm1358_vm9, %v1404_v47, %v1405_v45 }
 0x20f   : > { %2334 = vmatmul.bf16.gmra.mxu1 %v7935_v34 }
 0x210   : > { %9578 = vst [vmem:[#allocation29_spill] sm:$0xff] %v7960_v23  ;;  %2156 = vmatmul.bf16.gmra.mxu3 %v9580_v48  ;;  %v1886_v54 = vpop.f32.mrf.mxu2 }
 0x211   : > { %v1887_v30 = vadd.f32 %v1886_v54, %v7841_v6 }
 0x213   : > { %v2117_v20 = vpop.f32.mrf.mxu3 }
 0x214   : > { %v2118_v2 = vadd.f32 %v2117_v20, %v1885_v35  ;;  %v7966_v11 = vpop.f32.mrf.mxu1 }
 0x215   : > { %9582 = vst [vmem:[#allocation32_spill] sm:$0xff] %v7966_v11  ;;  %1928 = vmatmul.bf16.gmra.mxu2 %v7970_v42 }
 0x216   : > { %v2207_v38 = vadd.f32 %v2206_v53, %v2118_v2  ;;  %v2216_v4 = vpop.f32.mrf.mxu0  ;;  %v6643_v53 = vor.u32 %v6642_v5, %v6641_v15  ;;  %v1408_v2 = vrot.slane %v7731_v37, 1 }
 0x218   : > { %v7972_v10 = vadd.f32 %v2295_v27, %v2207_v38  ;;  %v1889_v35 = vpop.f32.mrf.mxu2  ;;  %v7980_v27 = vld [vmem:[#allocation2 + $0xa8] sm:$0xff]   ;;  %v1407_v45 = vrot.slane %v6643_v53, 1 }
 0x219   : > { %2255 = vmatmul.bf16.gmra.mxu0 %v9583_v31  ;;  %v1890_v11 = vadd.f32 %v1889_v35, %v7850_v46 }
 0x21a   : > { %v7988_v15 = vsel %vm1358_vm9, %v1407_v45, %v1408_v2 }
 0x21b   : > { %v2119_v56 = vpop.f32.mrf.mxu3 }
 0x21c   : > { %v2120_v20 = vadd.f32 %v2119_v56, %v1887_v30  ;;  %v2300_v23 = vpop.f32.mrf.mxu1 }
 0x21e   : > { %v7977_v6 = vadd.f32 %v2208_v0, %v2120_v20  ;;  %v2218_v47 = vpop.f32.mrf.mxu0 }
 0x21f   : > { %2339 = vmatmul.bf16.gmra.mxu1 %v7953_v3 }
 0x220   : > { %9584 = vst [vmem:[#allocation23_spill] sm:$0xff] %v7977_v6  ;;  %2161 = vmatmul.bf16.gmra.mxu3 %v7980_v27  ;;  %v1891_v30 = vpop.f32.mrf.mxu2 }
 0x221   : > { %v1892_v46 = vadd.f32 %v1891_v30, %v7857_v60 }
 0x223   : > { %v2122_v54 = vpop.f32.mrf.mxu3 }
 0x224   : > { %v2123_v38 = vadd.f32 %v2122_v54, %v1890_v11  ;;  %v7984_v56 = vpop.f32.mrf.mxu1  ;;  %v6492_v54 = vld [vmem:[#allocation9 + $0xe0] sm:$0xff] }
 0x225   : > { %9585 = vst [vmem:[#allocation34_spill] sm:$0xff] %v7984_v56  ;;  %1933 = vmatmul.bf16.gmra.mxu2 %v7988_v15  ;;  %4333 = vmatpush.bf16.msra.mxu1 %v6492_v54 }
 0x226   : > { %v2212_v0 = vadd.f32 %v2211_v61, %v2123_v38  ;;  %v2221_v5 = vpop.f32.mrf.mxu0  ;;  %v9586_v61 = vld [vmem:[#allocation31_spill] sm:$0xff] }
 0x228   : > { %v7990_v20 = vadd.f32 %v2300_v23, %v2212_v0  ;;  %v1894_v53 = vpop.f32.mrf.mxu2 }
 0x229   : > { %2729 = vmatmul.bf16.vlgmr.msra.gmra.mxu0 %v7760_v19  ;;  %v1895_v56 = vadd.f32 %v1894_v53, %v7866_v24 }
 0x22b   : > { %v2124_v35 = vpop.f32.mrf.mxu3 }
 0x22c   : > { %v2125_v37 = vadd.f32 %v2124_v35, %v1892_v46  ;;  %v2305_v11 = vpop.f32.mrf.mxu1 }
 0x22e   : > { %v7995_v6 = vadd.f32 %v2213_v63, %v2125_v37  ;;  %v2223_v60 = vpop.f32.mrf.mxu0 }
 0x22f   : > { %2344 = vmatmul.bf16.gmra.mxu1 %v7970_v42 }
 0x230   : > { %2166 = vmatmul.bf16.gmra.mxu3 %v9586_v61  ;;  %v1896_v2 = vpop.f32.mrf.mxu2 }
 0x231   : > { %v1897_v19 = vadd.f32 %v1896_v2, %v7874_v62 }
 0x233   : > { %v2127_v23 = vpop.f32.mrf.mxu3 }
 0x234   : > { %v2128_v45 = vadd.f32 %v2127_v23, %v1895_v56  ;;  %v7999_v38 = vpop.f32.mrf.mxu1 }
 0x235   : > { %2551 = vmatmul.bf16.vlgmr.msra.gmra.mxu2 %v7785_v32 }
 0x236   : > { %v2217_v30 = vadd.f32 %v2216_v4, %v2128_v45  ;;  %v2226_v46 = vpop.f32.mrf.mxu0 }
 0x238   : > { %v8002_v0 = vadd.f32 %v2305_v11, %v2217_v30  ;;  %v1899_v35 = vpop.f32.mrf.mxu2 }
 0x239   : > { %2734 = vmatmul.bf16.gmra.mxu0 %v7776_v7  ;;  %v1900_v53 = vadd.f32 %v1899_v35, %v7755_v13 }
 0x23b   : > { %v2129_v24 = vpop.f32.mrf.mxu3 }
 0x23c   : > { %v2130_v63 = vadd.f32 %v2129_v24, %v1897_v19  ;;  %v2310_v37 = vpop.f32.mrf.mxu1 }
 0x23e   : > { %v8007_v56 = vadd.f32 %v2218_v47, %v2130_v63  ;;  %v2228_v54 = vpop.f32.mrf.mxu0 }
 0x240   : > { %2640 = vmatmul.bf16.vlgmr.msra.gmra.mxu3 %v7520_v28  ;;  %v1901_v23 = vpop.f32.mrf.mxu2  ;;  %v6491_v28 = vld [vmem:[#allocation9 + $0xd8] sm:$0xff] }
 0x241   : > { %v1902_v32 = vadd.f32 %v1901_v23, %v7764_v22  ;;  %4334 = vmatpush.bf16.msra.mxu1 %v6491_v28  ;;  %v6797_v23 = vld [vmem:[#allocation2 + $0x30] sm:$0xff]  }
 0x242   : > { %v9588_v28 = vld [vmem:[#allocation25_spill] sm:$0xff] }
 0x243   : > { %v2132_v62 = vpop.f32.mrf.mxu3 }
 0x244   : > { %v2133_v4 = vadd.f32 %v2132_v62, %v1900_v53  ;;  %v8010_v11 = vpop.f32.mrf.mxu1 }
 0x245   : > { %2556 = vmatmul.bf16.gmra.mxu2 %v7494_v44 }
 0x246   : > { %v2222_v45 = vadd.f32 %v2221_v5, %v2133_v4  ;;  %v2231_v7 = vpop.f32.mrf.mxu0 }
 0x248   : > { %v8013_v2 = vadd.f32 %v2310_v37, %v2222_v45  ;;  %v1904_v19 = vpop.f32.mrf.mxu2 }
 0x249   : > { %2739 = vmatmul.bf16.gmra.mxu0 %v7794_v21  ;;  %v1905_v24 = vadd.f32 %v1904_v19, %v7771_v52 }
 0x24b   : > { %v2134_v13 = vpop.f32.mrf.mxu3 }
 0x24c   : > { %v2135_v47 = vadd.f32 %v2134_v13, %v1902_v32  ;;  %v2315_v30 = vpop.f32.mrf.mxu1 }
 0x24e   : > { %v8018_v63 = vadd.f32 %v2223_v60, %v2135_v47  ;;  %v2233_v35 = vpop.f32.mrf.mxu0 }
 0x250   : > { %2645 = vmatmul.bf16.gmra.mxu3 %v7575_v17  ;;  %v1906_v37 = vpop.f32.mrf.mxu2  ;;  %v9587_v17 = vld [vmem:[#allocation39_spill] sm:$0xff] }
 0x251   : > { %v1907_v44 = vadd.f32 %v1906_v37, %v7780_v50 }
 0x253   : > { %v2137_v22 = vpop.f32.mrf.mxu3 }
 0x254   : > { %v2138_v5 = vadd.f32 %v2137_v22, %v1905_v24  ;;  %v8021_v53 = vpop.f32.mrf.mxu1  ;;  %v9589_v22 = vld [vmem:[#allocation40_spill] sm:$0xff] }
 0x255   : > { %2561 = vmatmul.bf16.gmra.mxu2 %v6797_v23 }
 0x256   : > { %v2227_v21 = vadd.f32 %v2226_v46, %v2138_v5  ;;  %v2236_v62 = vpop.f32.mrf.mxu0 }
 0x258   : > { %v8024_v4 = vadd.f32 %v2315_v30, %v2227_v21  ;;  %v1909_v32 = vpop.f32.mrf.mxu2 }
 0x259   : > { %2744 = vmatmul.bf16.gmra.mxu0 %v7811_v59  ;;  %v1910_v13 = vadd.f32 %v1909_v32, %v9587_v17  ;;  %v9590_v32 = vld [vmem:[#allocation41_spill] sm:$0xff] }
 0x25b   : > { %v2139_v52 = vpop.f32.mrf.mxu3 }
 0x25c   : > { %v2140_v60 = vadd.f32 %v2139_v52, %v1907_v44  ;;  %v2320_v45 = vpop.f32.mrf.mxu1 }
 0x25e   : > { %v8028_v47 = vadd.f32 %v2228_v54, %v2140_v60  ;;  %v2238_v19 = vpop.f32.mrf.mxu0  ;;  %v6490_v60 = vld [vmem:[#allocation9 + $0xd0] sm:$0xff] }
 0x25f   : > { %4335 = vmatpush.bf16.msra.mxu1 %v6490_v60 }
 0x260   : > { %2650 = vmatmul.bf16.gmra.mxu3 %v9588_v28  ;;  %v1911_v24 = vpop.f32.mrf.mxu2 }
 0x261   : > { %v1912_v5 = vadd.f32 %v1911_v24, %v9589_v22 }
 0x263   : > { %v2142_v50 = vpop.f32.mrf.mxu3 }
 0x264   : > { %v2143_v46 = vadd.f32 %v2142_v50, %v1910_v13  ;;  %v8031_v30 = vpop.f32.mrf.mxu1  ;;  %v9591_v50 = vld [vmem:[#allocation28_spill] sm:$0xff] }
 0x265   : > { %2566 = vmatmul.bf16.gmra.mxu2 %v7587_v43  ;;  %v9593_v43 = vld [vmem:[#allocation42_spill] sm:$0xff] }
 0x266   : > { %v2232_v37 = vadd.f32 %v2231_v7, %v2143_v46  ;;  %v2241_v59 = vpop.f32.mrf.mxu0 }
 0x268   : > { %v8034_v21 = vadd.f32 %v2320_v45, %v2232_v37  ;;  %v1914_v23 = vpop.f32.mrf.mxu2 }
 0x269   : > { %2749 = vmatmul.bf16.gmra.mxu0 %v7827_v25  ;;  %v1915_v17 = vadd.f32 %v1914_v23, %v9590_v32  ;;  %v9595_v32 = vld [vmem:[#allocation43_spill] sm:$0xff] }
 0x26b   : > { %v2144_v54 = vpop.f32.mrf.mxu3 }
 0x26c   : > { %v2145_v44 = vadd.f32 %v2144_v54, %v1912_v5  ;;  %v2325_v52 = vpop.f32.mrf.mxu1  ;;  %v6798_v54 = vld [vmem:[#allocation2 + $0x48] sm:$0xff]  }
 0x26e   : > { %v8039_v13 = vadd.f32 %v2233_v35, %v2145_v44  ;;  %v2243_v28 = vpop.f32.mrf.mxu0 }
 0x270   : > { %2655 = vmatmul.bf16.gmra.mxu3 %v9591_v50  ;;  %v1916_v46 = vpop.f32.mrf.mxu2 }
 0x271   : > { %v1917_v25 = vadd.f32 %v1916_v46, %v9593_v43  ;;  %v9599_v43 = vld [vmem:[#allocation44_spill] sm:$0xff] }
 0x273   : > { %v2147_v7 = vpop.f32.mrf.mxu3 }
 0x274   : > { %v2148_v45 = vadd.f32 %v2147_v7, %v1915_v17  ;;  %v8042_v24 = vpop.f32.mrf.mxu1 }
 0x275   : > { %9592 = vst [vmem:[#allocation36_spill] sm:$0xff] %v8042_v24  ;;  %2571 = vmatmul.bf16.gmra.mxu2 %v6798_v54  ;;  %v9597_v24 = vld [vmem:[#allocation33_spill] sm:$0xff] }
 0x276   : > { %v2237_v22 = vadd.f32 %v2236_v62, %v2148_v45  ;;  %v2246_v5 = vpop.f32.mrf.mxu0 }
 0x278   : > { %v8045_v37 = vadd.f32 %v2325_v52, %v2237_v22  ;;  %v1919_v23 = vpop.f32.mrf.mxu2 }
 0x279   : > { %2754 = vmatmul.bf16.gmra.mxu0 %v7844_v55  ;;  %v1920_v50 = vadd.f32 %v1919_v23, %v9595_v32  ;;  %v6489_v32 = vld [vmem:[#allocation9 + $0xc8] sm:$0xff] }
 0x27a   : > { %9594 = vst [vmem:[#allocation31_spill] sm:$0xff] %v8045_v37  ;;  %4336 = vmatpush.bf16.msra.mxu1 %v6489_v32  ;;  %v9608_v32 = vld [vmem:[#allocation47_spill] sm:$0xff] }
 0x27b   : > { %v2149_v35 = vpop.f32.mrf.mxu3 }
 0x27c   : > { %v2150_v44 = vadd.f32 %v2149_v35, %v1917_v25  ;;  %v2330_v60 = vpop.f32.mrf.mxu1  ;;  %v9601_v25 = vld [vmem:[#allocation30_spill] sm:$0xff]  ;;  %v9602_v35 = vld [vmem:[#allocation48_spill] sm:$0xff] }
 0x27e   : > { %v8049_v17 = vadd.f32 %v2238_v19, %v2150_v44  ;;  %v2248_v7 = vpop.f32.mrf.mxu0 }
 0x280   : > { %9596 = vst [vmem:[#allocation39_spill] sm:$0xff] %v8049_v17  ;;  %2660 = vmatmul.bf16.gmra.mxu3 %v9597_v24  ;;  %v1921_v45 = vpop.f32.mrf.mxu2  ;;  %v9603_v24 = vld [vmem:[#allocation45_spill] sm:$0xff] }
 0x281   : > { %v1922_v22 = vadd.f32 %v1921_v45, %v9599_v43  ;;  %v9604_v45 = vld [vmem:[#allocation35_spill] sm:$0xff]  ;;  %v9605_v43 = vld [vmem:[#allocation46_spill] sm:$0xff] }
 0x283   : > { %v2152_v46 = vpop.f32.mrf.mxu3 }
 0x284   : > { %v2153_v62 = vadd.f32 %v2152_v46, %v1920_v50  ;;  %v8052_v52 = vpop.f32.mrf.mxu1 }
 0x285   : > { %9598 = vst [vmem:[#allocation25_spill] sm:$0xff] %v8052_v52  ;;  %2576 = vmatmul.bf16.gmra.mxu2 %v9601_v25 }
 0x286   : > { %v2242_v54 = vadd.f32 %v2241_v59, %v2153_v62  ;;  %v2251_v55 = vpop.f32.mrf.mxu0 }
 0x288   : > { %v8055_v37 = vadd.f32 %v2330_v60, %v2242_v54  ;;  %v1924_v23 = vpop.f32.mrf.mxu2 }
 0x289   : > { %2759 = vmatmul.bf16.gmra.mxu0 %v9602_v35  ;;  %v1925_v17 = vadd.f32 %v1924_v23, %v9603_v24 }
 0x28a   : > { %9600 = vst [vmem:[#allocation40_spill] sm:$0xff] %v8055_v37 }
 0x28b   : > { %v2154_v19 = vpop.f32.mrf.mxu3 }
 0x28c   : > { %v2155_v44 = vadd.f32 %v2154_v19, %v1922_v22  ;;  %v2335_v50 = vpop.f32.mrf.mxu1  ;;  %v6799_v19 = vld [vmem:[#allocation2 + $0x60] sm:$0xff]  }
 0x28e   : > { %v8060_v46 = vadd.f32 %v2243_v28, %v2155_v44  ;;  %v2253_v52 = vpop.f32.mrf.mxu0 }
 0x290   : > { %2665 = vmatmul.bf16.gmra.mxu3 %v9604_v45  ;;  %v1926_v62 = vpop.f32.mrf.mxu2 }
 0x291   : > { %v1927_v54 = vadd.f32 %v1926_v62, %v9605_v43 }
 0x293   : > { %v2157_v59 = vpop.f32.mrf.mxu3 }
 0x294   : > { %v2158_v60 = vadd.f32 %v2157_v59, %v1925_v17  ;;  %v8064_v37 = vpop.f32.mrf.mxu1  ;;  %v9609_v59 = vld [vmem:[#allocation37_spill] sm:$0xff] }
 0x295   : > { %9606 = vst [vmem:[#allocation41_spill] sm:$0xff] %v8064_v37  ;;  %2581 = vmatmul.bf16.gmra.mxu2 %v6799_v19 }
 0x296   : > { %v2247_v25 = vadd.f32 %v2246_v5, %v2158_v60  ;;  %v2256_v35 = vpop.f32.mrf.mxu0 }
 0x298   : > { %v8066_v22 = vadd.f32 %v2335_v50, %v2247_v25  ;;  %v1929_v23 = vpop.f32.mrf.mxu2  ;;  %v9610_v50 = vld [vmem:[#allocation49_spill] sm:$0xff] }
 0x299   : > { %2764 = vmatmul.bf16.gmra.mxu0 %v7877_v41  ;;  %v1930_v24 = vadd.f32 %v1929_v23, %v9608_v32 }
 0x29a   : > { %9607 = vst [vmem:[#allocation28_spill] sm:$0xff] %v8066_v22 }
 0x29b   : > { %v2159_v28 = vpop.f32.mrf.mxu3 }
 0x29c   : > { %v2160_v44 = vadd.f32 %v2159_v28, %v1927_v54  ;;  %v2340_v5 = vpop.f32.mrf.mxu1 }
 0x29e   : > { %v8070_v45 = vadd.f32 %v2248_v7, %v2160_v44  ;;  %v2258_v17 = vpop.f32.mrf.mxu0  ;;  %v9611_v44 = vld [vmem:[#allocation50_spill] sm:$0xff] }
 0x2a0   : > { %2670 = vmatmul.bf16.gmra.mxu3 %v9609_v59  ;;  %v1931_v43 = vpop.f32.mrf.mxu2  ;;  %v9612_v59 = vld [vmem:[#allocation21_spill] sm:$0xff] }
 0x2a1   : > { %v1932_v25 = vadd.f32 %v1931_v43, %v9610_v50 }
 0x2a3   : > { %v2162_v60 = vpop.f32.mrf.mxu3 }
 0x2a4   : > { %v2163_v62 = vadd.f32 %v2162_v60, %v1930_v24  ;;  %v8078_v7 = vpop.f32.mrf.mxu1 }
 0x2a5   : > { %2586 = vmatmul.bf16.gmra.mxu2 %v7459_v1 }
 0x2a6   : > { %v2252_v37 = vadd.f32 %v2251_v55, %v2163_v62  ;;  %v2730_v19 = vpop.f32.mrf.mxu0  ;;  %v9613_v62 = vld [vmem:[#allocation51_spill] sm:$0xff] }
 0x2a8   : > { %v8074_v22 = vadd.f32 %v2340_v5, %v2252_v37  ;;  %v1934_v28 = vpop.f32.mrf.mxu2 }
 0x2a9   : > { %2769 = vmatmul.bf16.gmra.mxu0 %v7889_v26  ;;  %v1935_v23 = vadd.f32 %v1934_v28, %v9611_v44 }
 0x2ab   : > { %v2164_v41 = vpop.f32.mrf.mxu3 }
 0x2ac   : > { %v2165_v54 = vadd.f32 %v2164_v41, %v1932_v25  ;;  %v2345_v5 = vpop.f32.mrf.mxu1 }
 0x2ae   : > { %v8081_v32 = vadd.f32 %v2253_v52, %v2165_v54  ;;  %v2732_v24 = vpop.f32.mrf.mxu0 }
 0x2b0   : > { %2675 = vmatmul.bf16.gmra.mxu3 %v9612_v59  ;;  %v1936_v37 = vpop.f32.mrf.mxu2 }
 0x2b1   : > { %v1937_v1 = vadd.f32 %v1936_v37, %v9613_v62  ;;  %v8102_v62 = vld [vmem:[#allocation10 + $0x2] ss:$0 sm:$0xff] }
 0x2b3   : > { %v2167_v55 = vpop.f32.mrf.mxu3 }
 0x2b4   : > { %v2168_v60 = vadd.f32 %v2167_v55, %v1935_v23  ;;  %v6488_v55 = vld [vmem:[#allocation9 + $0xc0] sm:$0xff] }
 0x2b5   : > { %2591 = vmatmul.bf16.gmra.mxu2 %v7912_v9  ;;  %4337 = vmatpush.bf16.msra.mxu1 %v6488_v55 }
 0x2b6   : > { %v2257_v43 = vadd.f32 %v2256_v35, %v2168_v60  ;;  %v2735_v26 = vpop.f32.mrf.mxu0  ;;  %v8092_v60 = vld [vmem:[#allocation10] ss:$0 sm:$0xff] }
 0x2b8   : > { %v8085_v50 = vadd.f32 %v2345_v5, %v2257_v43  ;;  %v2552_v41 = vpop.f32.mrf.mxu2 }
 0x2b9   : > { %2774 = vmatmul.bf16.gmra.mxu0 %v7904_v58 }
 0x2bb   : > { %v2169_v25 = vpop.f32.mrf.mxu3 }
 0x2bc   : > { %v2170_v52 = vadd.f32 %v2169_v25, %v1937_v1 }
 0x2be   : > { %v8089_v54 = vadd.f32 %v2258_v17, %v2170_v52  ;;  %v2737_v28 = vpop.f32.mrf.mxu0  ;;  %v8100_v17 = vld [vmem:[#allocation10 + $0x1] ss:$0 sm:$0xff] }
 0x2c0   : > { %9614 = vst [vmem:[#allocation42_spill] sm:$0xff] %v8089_v54  ;;  %2680 = vmatmul.bf16.gmra.mxu3 %v7529_v40  ;;  %v2554_v59 = vpop.f32.mrf.mxu2 }
 0x2c3   : > { %v2641_v44 = vpop.f32.mrf.mxu3 }
 0x2c4   : > { %v2642_v23 = vadd.f32 %v2641_v44, %v2552_v41 }
 0x2c5   : > { %2596 = vmatmul.bf16.gmra.mxu2 %v9572_v16 }
 0x2c6   : > { %v2731_v35 = vadd.f32 %v2730_v19, %v2642_v23  ;;  %v8094_v37 = vpop.f32.mrf.mxu0 }
 0x2c8   : > { %v2810_v58 = vadd.f32 %v2731_v35, %v7891_v51  ;;  %v2557_v1 = vpop.f32.mrf.mxu2 }
 0x2c9   : > { %2779 = vmatmul.bf16.gmra.mxu0 %v7920_v36 }
 0x2ca   : > { %v2844_v9 = vadd.f32 %v8092_v60, %v2810_v58 }
 0x2cb   : > { %v2643_v40 = vpop.f32.mrf.mxu3 }
 0x2cc   : > { %v2876_v5 = vmax.f32 %v2844_v9, 0.0  ;;  %v2644_v19 = vadd.f32 %v2643_v40, %v2554_v59 }
 0x2ce   : > { %v2910_v43 = vmul.f32 %v8100_v17, %v2876_v5  ;;  %v2733_v25 = vadd.f32 %v2732_v24, %v2644_v19  ;;  %v8105_v52 = vpop.f32.mrf.mxu0  ;;  %v3383_v19 = vld [vmem:[#allocation3 + $0xc] sm:$0xf] }
 0x2d0   : > { %v2944_v51 = vadd.f32 %v8102_v62, %v2910_v43  ;;  %v2811_v16 = vadd.f32 %v2733_v25, %v7899_v8  ;;  %2685 = vmatmul.bf16.gmra.mxu3 %v7578_v12  ;;  %v2559_v59 = vpop.f32.mrf.mxu2 }
 0x2d2   : > { %v3030_v36 = vpack.c.bf16 %v2944_v51, %v2944_v51  ;;  %v2845_v41 = vadd.f32 %v8092_v60, %v2811_v16 }
 0x2d3   : > { %v2646_v44 = vpop.f32.mrf.mxu3 }
 0x2d4   : > { %v3063_v23 = vshrl.u32 %v3030_v36, 16  ;;  %v2877_v55 = vmax.f32 %v2845_v41, 0.0  ;;  %v2647_v35 = vadd.f32 %v2646_v44, %v2557_v1  ;;  %v3066_v9 = vshll.u32 %v3030_v36, 16  ;;  %v6511_v36 = vld [vmem:[#allocation9 + $0x178] sm:$0xff] }
 0x2d5   : > { %2601 = vmatmul.bf16.gmra.mxu2 %v7943_v57  ;;  %v6503_v41 = vld [vmem:[#allocation9 + $0x138] sm:$0xff]  ;;  %4508 = vmatpush.bf16.msrb.mxu3 %v6511_v36 }
 0x2d6   : > { %v3065_v58 = vrot.slane %v3063_v23, 7  ;;  %v2911_v24 = vmul.f32 %v8100_v17, %v2877_v55  ;;  %v2736_v40 = vadd.f32 %v2735_v26, %v2647_v35  ;;  %v8112_v5 = vpop.f32.mrf.mxu0  ;;  %4419 = vmatpush.bf16.msrb.mxu2 %v6503_v41 }
 0x2d8   : > { %v3068_v43 = vor.u32 %v3066_v9, %v3065_v58  ;;  %v2945_v8 = vadd.f32 %v8102_v62, %v2911_v24  ;;  %v2812_v12 = vadd.f32 %v2736_v40, %v7906_v49  ;;  %v2562_v35 = vpop.f32.mrf.mxu2  ;;  %v3069_v40 = vrot.slane %v3065_v58, 4 }
 0x2d9   : > { %2784 = vmatmul.bf16.gmra.mxu0 %v7935_v34 }
 0x2da   : > { %v3384_v1 = vsel %vm7297_vm5, %v3068_v43, %v3383_v19  ;;  %v3031_v51 = vpack.c.bf16 %v2945_v8, %v2945_v8  ;;  %v2846_v16 = vadd.f32 %v8092_v60, %v2812_v12  ;;  %v3387_v19 = vld [vmem:[#allocation3 + $0x14] sm:$0x1] }
 0x2db   : > { %3385 = vst [vmem:[#allocation3 + $0xc] sm:$0xf] %v3384_v1  ;;  %v2648_v26 = vpop.f32.mrf.mxu3 }
 0x2dc   : > { %v3071_v44 = vshrl.u32 %v3031_v51, 16  ;;  %v2878_v23 = vmax.f32 %v2846_v16, 0.0  ;;  %v2649_v55 = vadd.f32 %v2648_v26, %v2559_v59  ;;  %v3074_v57 = vshll.u32 %v3031_v51, 16  ;;  %v9616_v16 = vld [vmem:[#allocation26_spill] sm:$0xff] }
 0x2de   : > { %v3073_v49 = vrot.slane %v3071_v44, 7  ;;  %v2912_v34 = vmul.f32 %v8100_v17, %v2878_v23  ;;  %v2738_v9 = vadd.f32 %v2737_v28, %v2649_v55  ;;  %v8122_v24 = vpop.f32.mrf.mxu0 }
 0x2e0   : > { %v3076_v43 = vor.u32 %v3074_v57, %v3073_v49  ;;  %v3078_v8 = vrot.slane %v3073_v49, 4  ;;  %v2946_v12 = vadd.f32 %v8102_v62, %v2912_v34  ;;  %v2813_v1 = vadd.f32 %v2738_v9, %v7915_v14  ;;  %2690 = vmatmul.bf16.gmra.mxu3 %v9616_v16  ;;  %v2564_v49 = vpop.f32.mrf.mxu2  ;;  %v6471_v57 = vld [vmem:[#allocation9 + $0x38] sm:$0xff] }
 0x2e1   : > { %v6479_v14 = vld [vmem:[#allocation9 + $0x78] sm:$0xff]  ;;  %4741 = vmatpush.bf16.msrb.mxu0 %v6471_v57 }
 0x2e2   : > { %v3077_v26 = vsel %vm7288_vm4, %v3069_v40, %v3076_v43  ;;  %v3388_v51 = vsel %vm7427_vm7, %v3078_v8, %v3387_v19  ;;  %v3032_v41 = vpack.c.bf16 %v2946_v12, %v2946_v12  ;;  %v2847_v28 = vadd.f32 %v8092_v60, %v2813_v1  ;;  %v3390_v43 = vld [vmem:[#allocation3 + $0x18] sm:$0xf]  ;;  %4830 = vmatpush.bf16.msrb.mxu1 %v6479_v14  ;;  %v9619_v1 = vld [vmem:[#allocation52_spill] sm:$0xff] }
 0x2e3   : > { %3386 = vst [vmem:[#allocation3 + $0x10] sm:$0xf] %v3077_v26  ;;  %v2651_v58 = vpop.f32.mrf.mxu3 }
 0x2e4   : > { %3389 = vst [vmem:[#allocation3 + $0x14] sm:$0x1] %v3388_v51  ;;  %v3080_v44 = vshrl.u32 %v3032_v41, 16  ;;  %v2879_v23 = vmax.f32 %v2847_v28, 0.0  ;;  %v2652_v55 = vadd.f32 %v2651_v58, %v2562_v35  ;;  %v3083_v9 = vshll.u32 %v3032_v41, 16 }
 0x2e5   : > { %2606 = vmatmul.bf16.gmra.mxu2 %v9580_v48 }
 0x2e6   : > { %v3082_v34 = vrot.slane %v3080_v44, 7  ;;  %v2913_v16 = vmul.f32 %v8100_v17, %v2879_v23  ;;  %v2741_v40 = vadd.f32 %v8094_v37, %v2652_v55  ;;  %v8134_v19 = vpop.f32.mrf.mxu0 }
 0x2e8   : > { %v3085_v8 = vor.u32 %v3083_v9, %v3082_v34  ;;  %v2947_v12 = vadd.f32 %v8102_v62, %v2913_v16  ;;  %v2814_v26 = vadd.f32 %v2741_v40, %v9619_v1  ;;  %v2567_v57 = vpop.f32.mrf.mxu2  ;;  %v3086_v40 = vrot.slane %v3082_v34, 4 }
 0x2e9   : > { %2789 = vmatmul.bf16.gmra.mxu0 %v7953_v3 }
 0x2ea   : > { %v3391_v35 = vsel %vm7297_vm5, %v3085_v8, %v3390_v43  ;;  %v3033_v51 = vpack.c.bf16 %v2947_v12, %v2947_v12  ;;  %v2848_v37 = vadd.f32 %v8092_v60, %v2814_v26  ;;  %v8143_v41 = vld [vmem:[#allocation3 + $0xc] sm:$0xff]   ;;  %v3394_v43 = vld [vmem:[#allocation3 + $0x20] sm:$0x1] }
 0x2eb   : > { %v8145_v28 = vld [vmem:[#allocation3 + $0xc] sm:$0xf0]  ;;  %3392 = vst [vmem:[#allocation3 + $0x18] sm:$0xf] %v3391_v35  ;;  %v2653_v58 = vpop.f32.mrf.mxu3  ;;  %4338 = vmatmul.bf16.vlgmr.msra.gmra.mxu1 %v8143_v41 }
 0x2ec   : > { %v3088_v44 = vshrl.u32 %v3033_v51, 16  ;;  %v2880_v23 = vmax.f32 %v2848_v37, 0.0  ;;  %v2654_v55 = vadd.f32 %v2653_v58, %v2564_v49  ;;  %v3091_v48 = vshll.u32 %v3033_v51, 16 }
 0x2ee   : > { %v3090_v14 = vrot.slane %v3088_v44, 7  ;;  %v2914_v3 = vmul.f32 %v8100_v17, %v2880_v23  ;;  %v2743_v9 = vadd.f32 %v8105_v52, %v2654_v55  ;;  %v8149_v16 = vpop.f32.mrf.mxu0 }
 0x2f0   : > { %v3093_v8 = vor.u32 %v3091_v48, %v3090_v14  ;;  %v3095_v12 = vrot.slane %v3090_v14, 4  ;;  %v2948_v1 = vadd.f32 %v8102_v62, %v2914_v3  ;;  %v2815_v26 = vadd.f32 %v2743_v9, %v7930_v33  ;;  %2695 = vmatmul.bf16.gmra.mxu3 %v9575_v39  ;;  %v2569_v23 = vpop.f32.mrf.mxu2  ;;  %v3397_v3 = vld [vmem:[#allocation3 + $0x24] sm:$0xf] }
 0x2f2   : > { %v3094_v49 = vsel %vm7288_vm4, %v3086_v40, %v3093_v8  ;;  %v3395_v52 = vsel %vm7427_vm7, %v3095_v12, %v3394_v43  ;;  %v3034_v35 = vpack.c.bf16 %v2948_v1, %v2948_v1  ;;  %v2849_v34 = vadd.f32 %v8092_v60, %v2815_v26  ;;  %v9620_v43 = vld [vmem:[#allocation24_spill] sm:$0xff]  ;;  %v6510_v26 = vld [vmem:[#allocation9 + $0x170] sm:$0xff] }
 0x2f3   : > { %3393 = vst [vmem:[#allocation3 + $0x1c] sm:$0xf] %v3094_v49  ;;  %v2656_v51 = vpop.f32.mrf.mxu3  ;;  %v6502_v49 = vld [vmem:[#allocation9 + $0x130] sm:$0xff]  ;;  %4509 = vmatpush.bf16.msrb.mxu3 %v6510_v26 }
 0x2f4   : > { %3396 = vst [vmem:[#allocation3 + $0x20] sm:$0x1] %v3395_v52  ;;  %v3097_v37 = vshrl.u32 %v3034_v35, 16  ;;  %v2881_v58 = vmax.f32 %v2849_v34, 0.0  ;;  %v2657_v44 = vadd.f32 %v2656_v51, %v2567_v57  ;;  %v3100_v33 = vshll.u32 %v3034_v35, 16  ;;  %4420 = vmatpush.bf16.msrb.mxu2 %v6502_v49  ;;  %v6470_v49 = vld [vmem:[#allocation9 + $0x30] sm:$0xff] }
 0x2f5   : > { %2611 = vmatmul.bf16.gmra.mxu2 %v7980_v27  ;;  %4742 = vmatpush.bf16.msrb.mxu0 %v6470_v49 }
 0x2f6   : > { %v3099_v55 = vrot.slane %v3097_v37, 7  ;;  %v2915_v39 = vmul.f32 %v8100_v17, %v2881_v58  ;;  %v2746_v14 = vadd.f32 %v8112_v5, %v2657_v44  ;;  %v8162_v48 = vpop.f32.mrf.mxu0 }
 0x2f8   : > { %v3102_v9 = vor.u32 %v3100_v33, %v3099_v55  ;;  %v2949_v40 = vadd.f32 %v8102_v62, %v2915_v39  ;;  %v2816_v8 = vadd.f32 %v2746_v14, %v9620_v43  ;;  %v2572_v51 = vpop.f32.mrf.mxu2  ;;  %v3103_v39 = vrot.slane %v3099_v55, 4  ;;  %v3401_v14 = vld [vmem:[#allocation3 + $0x2c] sm:$0x1] }
 0x2f9   : > { %2794 = vmatmul.bf16.gmra.mxu0 %v7970_v42 }
 0x2fa   : > { %v3398_v57 = vsel %vm7297_vm5, %v3102_v9, %v3397_v3  ;;  %v3035_v12 = vpack.c.bf16 %v2949_v40, %v2949_v40  ;;  %v2850_v1 = vadd.f32 %v8092_v60, %v2816_v8  ;;  %v8173_v44 = vld [vmem:[#allocation3 + $0x18] sm:$0xff]  }
 0x2fb   : > { %3399 = vst [vmem:[#allocation3 + $0x24] sm:$0xf] %v3398_v57  ;;  %v2658_v5 = vpop.f32.mrf.mxu3  ;;  %4343 = vmatmul.bf16.gmra.mxu1 %v8173_v44 }
 0x2fc   : > { %v3105_v52 = vshrl.u32 %v3035_v12, 16  ;;  %v2882_v35 = vmax.f32 %v2850_v1, 0.0  ;;  %v2659_v34 = vadd.f32 %v2658_v5, %v2569_v23  ;;  %v3108_v27 = vshll.u32 %v3035_v12, 16 }
 0x2fe   : > { %v3107_v37 = vrot.slane %v3105_v52, 7  ;;  %v2916_v42 = vmul.f32 %v8100_v17, %v2882_v35  ;;  %v2748_v58 = vadd.f32 %v8122_v24, %v2659_v34  ;;  %v8175_v33 = vpop.f32.mrf.mxu0 }
 0x300   : > { %v3110_v3 = vor.u32 %v3108_v27, %v3107_v37  ;;  %v3112_v9 = vrot.slane %v3107_v37, 4  ;;  %v2950_v23 = vadd.f32 %v8102_v62, %v2916_v42  ;;  %v2817_v40 = vadd.f32 %v2748_v58, %v7946_v18  ;;  %2700 = vmatmul.bf16.gmra.mxu3 %v7695_v29  ;;  %v2574_v26 = vpop.f32.mrf.mxu2  ;;  %v6478_v18 = vld [vmem:[#allocation9 + $0x70] sm:$0xff]  ;;  %v3404_v27 = vld [vmem:[#allocation3 + $0x30] sm:$0xf] }
 0x301   : > { %4831 = vmatpush.bf16.msrb.mxu1 %v6478_v18 }
 0x302   : > { %v3111_v43 = vsel %vm7288_vm4, %v3103_v39, %v3110_v3  ;;  %v3402_v24 = vsel %vm7427_vm7, %v3112_v9, %v3401_v14  ;;  %v3036_v8 = vpack.c.bf16 %v2950_v23, %v2950_v23  ;;  %v2851_v55 = vadd.f32 %v8092_v60, %v2817_v40  ;;  %v6509_v14 = vld [vmem:[#allocation9 + $0x168] sm:$0xff]  ;;  %v888_v9 = vld [vmem:[#allocation2 + $0xd4] sm:$0x1]  ;;  %v7073_v40 = vld [vmem:[#allocation2 + $0xcc] sm:$0xf0] }
 0x303   : > { %3400 = vst [vmem:[#allocation3 + $0x28] sm:$0xf] %v3111_v43  ;;  %v2661_v57 = vpop.f32.mrf.mxu3  ;;  %v6501_v3 = vld [vmem:[#allocation9 + $0x128] sm:$0xff]  ;;  %v7074_v43 = vld [vmem:[#allocation2 + $0xcc] sm:$0xe]  ;;  %4510 = vmatpush.bf16.msrb.mxu3 %v6509_v14 }
 0x304   : > { %3403 = vst [vmem:[#allocation3 + $0x2c] sm:$0x1] %v3402_v24  ;;  %v3114_v12 = vshrl.u32 %v3036_v8, 16  ;;  %v2883_v1 = vmax.f32 %v2851_v55, 0.0  ;;  %v2662_v5 = vadd.f32 %v2661_v57, %v2572_v51  ;;  %v3117_v29 = vshll.u32 %v3036_v8, 16  ;;  %v9621_v51 = vld [vmem:[#allocation27_spill] sm:$0xff]  ;;  %4421 = vmatpush.bf16.msrb.mxu2 %v6501_v3 }
 0x305   : > { %2616 = vmatmul.bf16.gmra.mxu2 %v9586_v61  ;;  %v6469_v23 = vld [vmem:[#allocation9 + $0x28] sm:$0xff] }
 0x306   : > { %v8186_v52 = vrot.slane %v3114_v12, 7  ;;  %v2917_v35 = vmul.f32 %v8100_v17, %v2883_v1  ;;  %v2751_v34 = vadd.f32 %v8134_v19, %v2662_v5  ;;  %v8190_v37 = vpop.f32.mrf.mxu0  ;;  %v8197_v19 = vld [vmem:[#allocation2 + $0xcc] sm:$0xff]   ;;  %4743 = vmatpush.bf16.msrb.mxu0 %v6469_v23 }
 0x307   : > { %v3408_v23 = vld [vmem:[#allocation3 + $0x38] sm:$0x1] }
 0x308   : > { %v3119_v42 = vor.u32 %v3117_v29, %v8186_v52  ;;  %v2951_v58 = vadd.f32 %v8102_v62, %v2917_v35  ;;  %v2818_v39 = vadd.f32 %v2751_v34, %v9621_v51  ;;  %v2577_v18 = vpop.f32.mrf.mxu2  ;;  %v6500_v29 = vld [vmem:[#allocation9 + $0x120] sm:$0xff] }
 0x309   : > { %2799 = vmatmul.bf16.gmra.mxu0 %v7988_v15  ;;  %v1050_v15 = vunpack.c.l.b16 %v888_v9  ;;  %v6508_v35 = vld [vmem:[#allocation9 + $0x160] sm:$0xff]  ;;  %4422 = vmatpush.bf16.msrb.mxu2 %v6500_v29  ;;  %v7075_v9 = vor.u32 %v7074_v43, %v7073_v40 }
 0x30a   : > { %v3405_v24 = vsel %vm7297_vm5, %v3119_v42, %v3404_v27  ;;  %v3037_v8 = vpack.c.bf16 %v2951_v58, %v2951_v58  ;;  %v2852_v55 = vadd.f32 %v8092_v60, %v2818_v39  ;;  %v8202_v57 = vld [vmem:[#allocation3 + $0x24] sm:$0xff]   ;;  %v6468_v34 = vld [vmem:[#allocation9 + $0x20] sm:$0xff]  ;;  %4511 = vmatpush.bf16.msrb.mxu3 %v6508_v35 }
 0x30b   : > { %v8204_v12 = vld [vmem:[#allocation3 + $0x24] sm:$0xf0]  ;;  %3406 = vst [vmem:[#allocation3 + $0x30] sm:$0xf] %v3405_v24  ;;  %v2663_v61 = vpop.f32.mrf.mxu3  ;;  %v9622_v27 = vld [vmem:[#allocation29_spill] sm:$0xff]  ;;  %v9623_v42 = vld [vmem:[#allocation22_spill] sm:$0xff]  ;;  %4348 = vmatmul.bf16.gmra.mxu1 %v8202_v57  ;;  %4744 = vmatpush.bf16.msrb.mxu0 %v6468_v34  ;;  %v8214_v24 = vpack.c.b16 %v1050_v15, %v1050_v15 }
 0x30c   : > { %v3122_v1 = vshrl.u32 %v3037_v8, 16  ;;  %v2884_v5 = vmax.f32 %v2852_v55, 0.0  ;;  %v2664_v49 = vadd.f32 %v2663_v61, %v2574_v26  ;;  %v2293_v58 = vadd.f32 %v9623_v42, %v9622_v27 }
 0x30d   : > { %v3125_v51 = vshll.u32 %v3037_v8, 16  ;;  %v3120_v26 = vrot.slane %v8186_v52, 4  ;;  %v1410_v29 = vrot.slane %v7075_v9, 1  ;;  %v1411_v40 = vrot.slane %v8214_v24, 1 }
 0x30e   : > { %v3124_v39 = vrot.slane %v3122_v1, 7  ;;  %v2918_v54 = vmul.f32 %v8100_v17, %v2884_v5  ;;  %v2753_v14 = vadd.f32 %v8149_v16, %v2664_v49  ;;  %v8210_v3 = vpop.f32.mrf.mxu0  ;;  %v6499_v16 = vld [vmem:[#allocation9 + $0x118] sm:$0xff] }
 0x30f   : > { %v6507_v5 = vld [vmem:[#allocation9 + $0x158] sm:$0xff]  ;;  %4423 = vmatpush.bf16.msrb.mxu2 %v6499_v16 }
 0x310   : > { %v3127_v55 = vor.u32 %v3125_v51, %v3124_v39  ;;  %v3129_v8 = vrot.slane %v3124_v39, 4  ;;  %v2952_v61 = vadd.f32 %v8102_v62, %v2918_v54  ;;  %v2819_v1 = vadd.f32 %v2753_v14, %v2293_v58  ;;  %2705 = vmatmul.bf16.gmra.mxu3 %v9583_v31  ;;  %v6467_v49 = vld [vmem:[#allocation9 + $0x18] sm:$0xff]  ;;  %v2579_v42 = vpop.f32.mrf.mxu2  ;;  %v6498_v58 = vld [vmem:[#allocation9 + $0x110] sm:$0xff] }
 0x311   : > { %4512 = vmatpush.bf16.msrb.mxu3 %v6507_v5  ;;  %4745 = vmatpush.bf16.msrb.mxu0 %v6467_v49  ;;  %v1412_v51 = vsel %vm1358_vm9, %v1410_v29, %v1411_v40  ;;  %v6506_v39 = vld [vmem:[#allocation9 + $0x150] sm:$0xff]  ;;  %v6497_v5 = vld [vmem:[#allocation9 + $0x108] sm:$0xff] }
 0x312   : > { %v3128_v52 = vsel %vm7288_vm4, %v3120_v26, %v3127_v55  ;;  %v3409_v43 = vsel %vm7427_vm7, %v3129_v8, %v3408_v23  ;;  %v3038_v15 = vpack.c.bf16 %v2952_v61, %v2952_v61  ;;  %v2853_v35 = vadd.f32 %v8092_v60, %v2819_v1  ;;  %v6466_v14 = vld [vmem:[#allocation9 + $0x10] sm:$0xff]  ;;  %v3411_v61 = vld [vmem:[#allocation3 + $0x3c] sm:$0xf]  ;;  %v6505_v49 = vld [vmem:[#allocation9 + $0x148] sm:$0xff] }
 0x313   : > { %3407 = vst [vmem:[#allocation3 + $0x34] sm:$0xf] %v3128_v52  ;;  %v2666_v54 = vpop.f32.mrf.mxu3  ;;  %4424 = vmatpush.bf16.msrb.mxu2 %v6498_v58  ;;  %v6800_v29 = vld [vmem:[#allocation2 + $0xc0] sm:$0xff]   ;;  %v6465_v40 = vld [vmem:[#allocation9 + $0x8] sm:$0xff]  ;;  %v6464_v58 = vld [vmem:[#allocation9] sm:$0xff] }
 0x314   : > { %3410 = vst [vmem:[#allocation3 + $0x38] sm:$0x1] %v3409_v43  ;;  %v3131_v31 = vshrl.u32 %v3038_v15, 16  ;;  %v2885_v34 = vmax.f32 %v2853_v35, 0.0  ;;  %v2667_v27 = vadd.f32 %v2666_v54, %v2577_v18  ;;  %v3134_v26 = vshll.u32 %v3038_v15, 16 }
 0x315   : > { %4513 = vmatpush.bf16.msrb.mxu3 %v6506_v39  ;;  %4746 = vmatpush.bf16.msrb.mxu0 %v6466_v14  ;;  %v9625_v39 = vld [vmem:[#allocation32_spill] sm:$0xff] }
 0x316   : > { %v3133_v9 = vrot.slane %v3131_v31, 7  ;;  %v2919_v23 = vmul.f32 %v8100_v17, %v2885_v34  ;;  %v2756_v55 = vadd.f32 %v8162_v48, %v2667_v27  ;;  %v8227_v8 = vpop.f32.mrf.mxu0  ;;  %2621 = vmatmul.bf16.gmra.mxu2 %v6800_v29  ;;  %v6496_v34 = vld [vmem:[#allocation9 + $0x100] sm:$0xff] }
 0x317   : > { %4425 = vmatpush.bf16.msrb.mxu2 %v6497_v5  ;;  %v6504_v27 = vld [vmem:[#allocation9 + $0x140] sm:$0xff] }
 0x318   : > { %v3136_v1 = vor.u32 %v3134_v26, %v3133_v9  ;;  %v2953_v18 = vadd.f32 %v8102_v62, %v2919_v23  ;;  %v2820_v16 = vadd.f32 %v2756_v55, %v7972_v10  ;;  %v2582_v31 = vpop.f32.mrf.mxu2 }
 0x319   : > { %2804 = vmatmul.bf16.gmra.mxu0 %v1412_v51  ;;  %4514 = vmatpush.bf16.msrb.mxu3 %v6505_v49  ;;  %v9624_v51 = vld [vmem:[#allocation23_spill] sm:$0xff] }
 0x31a   : > { %v3412_v48 = vsel %vm7297_vm5, %v3136_v1, %v3411_v61  ;;  %v3039_v52 = vpack.c.bf16 %v2953_v18, %v2953_v18  ;;  %v2854_v43 = vadd.f32 %v8092_v60, %v2820_v16  ;;  %4747 = vmatpush.bf16.msrb.mxu0 %v6465_v40  ;;  %v2298_v14 = vadd.f32 %v9625_v39, %v9624_v51  ;;  %v8238_v1 = vld [vmem:[#allocation3 + $0x30] sm:$0xff]   ;;  %v6477_v51 = vld [vmem:[#allocation9 + $0x68] sm:$0xff] }
 0x31b   : > { %3413 = vst [vmem:[#allocation3 + $0x3c] sm:$0xf] %v3412_v48  ;;  %v2668_v15 = vpop.f32.mrf.mxu3  ;;  %4426 = vmatpush.bf16.msrb.mxu2 %v6496_v34  ;;  %v3137_v16 = vrot.slane %v3133_v9, 4  ;;  %4353 = vmatmul.bf16.gmra.mxu1 %v8238_v1  ;;  %v9626_v48 = vld [vmem:[#allocation38_spill] sm:$0xff] }
 0x31c   : > { %v3139_v35 = vshrl.u32 %v3039_v52, 16  ;;  %v2886_v54 = vmax.f32 %v2854_v43, 0.0  ;;  %v2669_v10 = vadd.f32 %v2668_v15, %v2579_v42  ;;  %v3142_v23 = vshll.u32 %v3039_v52, 16  ;;  %v3415_v42 = vld [vmem:[#allocation3 + $0x44] sm:$0x1]  ;;  %4832 = vmatpush.bf16.msrb.mxu1 %v6477_v51 }
 0x31d   : > { %4515 = vmatpush.bf16.msrb.mxu3 %v6504_v27  ;;  %v9628_v51 = vld [vmem:[#allocation34_spill] sm:$0xff] }
 0x31e   : > { %v3141_v26 = vrot.slane %v3139_v35, 7  ;;  %v2920_v55 = vmul.f32 %v8100_v17, %v2886_v54  ;;  %v2758_v61 = vadd.f32 %v8175_v33, %v2669_v10  ;;  %v8240_v18 = vpop.f32.mrf.mxu0  ;;  %4748 = vmatpush.bf16.msrb.mxu0 %v6464_v58  ;;  %v1277_v33 = vshll.u32 %v8197_v19, 16 }
 0x31f   : > { %v1275_v58 = vshrl.u32 %v8197_v19, 16 }
 0x320   : > { %v3144_v5 = vor.u32 %v3142_v23, %v3141_v26  ;;  %v3146_v49 = vrot.slane %v3141_v26, 4  ;;  %v2954_v29 = vadd.f32 %v8102_v62, %v2920_v55  ;;  %v2821_v40 = vadd.f32 %v2758_v61, %v2298_v14  ;;  %2710 = vmatmul.bf16.gmra.mxu3 %v9626_v48  ;;  %v2584_v27 = vpop.f32.mrf.mxu2 }
 0x321   : > { %v1279_v39 = vrot.slane %v1277_v33, 1  ;;  %v1282_v14 = vshll.u32 %v8214_v24, 16 }
 0x322   : > { %v3145_v52 = vsel %vm7288_vm4, %v3137_v16, %v3144_v5  ;;  %v3416_v9 = vsel %vm7427_vm7, %v3146_v49, %v3415_v42  ;;  %v3040_v43 = vpack.c.bf16 %v2954_v29, %v2954_v29  ;;  %v2855_v15 = vadd.f32 %v8092_v60, %v2821_v40  ;;  %v3532_v42 = vld [vmem:[#allocation3 + $0x14] sm:$0x1]  ;;  %v6574_v5 = vld [vmem:[#allocation3] sm:$0xff]   ;;  %v3418_v49 = vld [vmem:[#allocation3 + $0x48] sm:$0xf] }
 0x323   : > { %3414 = vst [vmem:[#allocation3 + $0x40] sm:$0xf] %v3145_v52  ;;  %v2671_v35 = vpop.f32.mrf.mxu3  ;;  %v1280_v24 = vor.u32 %v1279_v39, %v1275_v58  ;;  %v1284_v48 = vrot.slane %v1282_v14, 1  ;;  %v3694_v33 = vunpack.c.l.b16 %v3532_v42  ;;  %v2303_v58 = vadd.f32 %v9628_v51, %v7995_v6 }
 0x324   : > { %3417 = vst [vmem:[#allocation3 + $0x44] sm:$0x1] %v3416_v9  ;;  %v3148_v54 = vshrl.u32 %v3040_v43, 16  ;;  %v2887_v10 = vmax.f32 %v2855_v15, 0.0  ;;  %v2672_v34 = vadd.f32 %v2671_v35, %v2582_v31  ;;  %v3151_v23 = vshll.u32 %v3040_v43, 16 }
 0x325   : > { %v1285_v39 = vsel %vm1069_vm8, %v1280_v24, %v1284_v48  ;;  %v8271_v14 = vpack.c.b16 %v3694_v33, %v3694_v33  ;;  %v3742_v48 = vshrl.u32 %v8143_v41, 16 }
 0x326   : > { %v3150_v26 = vrot.slane %v3148_v54, 7  ;;  %v2921_v55 = vmul.f32 %v8100_v17, %v2887_v10  ;;  %v2761_v61 = vadd.f32 %v8190_v37, %v2672_v34  ;;  %v8255_v16 = vpop.f32.mrf.mxu0  ;;  %2626 = vmatmul.bf16.gmra.mxu2 %v8197_v19 }
 0x327   : > { %v3749_v33 = vshll.u32 %v8271_v14, 16 }
 0x328   : > { %v3153_v31 = vor.u32 %v3151_v23, %v3150_v26  ;;  %v2955_v29 = vadd.f32 %v8102_v62, %v2921_v55  ;;  %v2822_v40 = vadd.f32 %v2761_v61, %v7990_v20  ;;  %v3744_v20 = vshll.u32 %v8143_v41, 16  ;;  %v2587_v34 = vpop.f32.mrf.mxu2 }
 0x329   : > { %4749 = vmatmul.bf16.vlgmr.msrb.gmra.mxu0 %v6574_v5 }
 0x32a   : > { %v3419_v37 = vsel %vm7297_vm5, %v3153_v31, %v3418_v49  ;;  %v3041_v52 = vpack.c.bf16 %v2955_v29, %v2955_v29  ;;  %v2856_v9 = vadd.f32 %v8092_v60, %v2822_v40  ;;  %v8263_v43 = vld [vmem:[#allocation3 + $0x3c] sm:$0xff]   ;;  %v3154_v49 = vrot.slane %v3150_v26, 4  ;;  %v3422_v31 = vld [vmem:[#allocation3 + $0x50] sm:$0x1] }
 0x32b   : > { %9627 = vst [vmem:[#allocation43_spill] sm:$0xff] %v8263_v43  ;;  %v8265_v15 = vld [vmem:[#allocation3 + $0x3c] sm:$0xf0]  ;;  %v2673_v35 = vpop.f32.mrf.mxu3  ;;  %4358 = vmatmul.bf16.gmra.mxu1 %v8263_v43 }
 0x32c   : > { %3420 = vst [vmem:[#allocation3 + $0x48] sm:$0xf] %v3419_v37  ;;  %v3156_v54 = vshrl.u32 %v3041_v52, 16  ;;  %v2888_v19 = vmax.f32 %v2856_v9, 0.0  ;;  %v2674_v10 = vadd.f32 %v2673_v35, %v2584_v27  ;;  %v3159_v55 = vshll.u32 %v3041_v52, 16 }
 0x32d   : > { %v3746_v27 = vrot.slane %v3744_v20, 1  ;;  %v6837_v9 = vld [vmem:[#allocation3 + $0xc] sm:$0xe] }
 0x32e   : > { %v3158_v23 = vrot.slane %v3156_v54, 7  ;;  %v2922_v61 = vmul.f32 %v8100_v17, %v2888_v19  ;;  %v2763_v42 = vadd.f32 %v8210_v3, %v2674_v10  ;;  %v8275_v5 = vpop.f32.mrf.mxu0 }
 0x32f   : > { %v3747_v51 = vor.u32 %v3746_v27, %v3742_v48 }
 0x330   : > { %v3161_v29 = vor.u32 %v3159_v55, %v3158_v23  ;;  %v3163_v40 = vrot.slane %v3158_v23, 4  ;;  %v2956_v6 = vadd.f32 %v8102_v62, %v2922_v61  ;;  %v2823_v24 = vadd.f32 %v2763_v42, %v2303_v58  ;;  %2715 = vmatmul.bf16.gmra.mxu3 %v1285_v39  ;;  %v2589_v10 = vpop.f32.mrf.mxu2  ;;  %v3533_v58 = vld [vmem:[#allocation3 + $0x20] sm:$0x1] }
 0x331   : > { %v3751_v39 = vrot.slane %v3749_v33, 1 }
 0x332   : > { %v3162_v3 = vsel %vm7288_vm4, %v3154_v49, %v3161_v29  ;;  %v3423_v26 = vsel %vm7427_vm7, %v3163_v40, %v3422_v31  ;;  %v3042_v37 = vpack.c.bf16 %v2956_v6, %v2956_v6  ;;  %v2857_v52 = vadd.f32 %v8092_v60, %v2823_v24  ;;  %v3425_v31 = vld [vmem:[#allocation3 + $0x54] sm:$0xf] }
 0x333   : > { %3421 = vst [vmem:[#allocation3 + $0x4c] sm:$0xf] %v3162_v3  ;;  %v2676_v35 = vpop.f32.mrf.mxu3  ;;  %v6838_v29 = vor.u32 %v6837_v9, %v8145_v28  ;;  %v3695_v40 = vunpack.c.l.b16 %v3533_v58  ;;  %v8294_v27 = vsel %vm1069_vm8, %v3747_v51, %v3751_v39 }
 0x334   : > { %3424 = vst [vmem:[#allocation3 + $0x50] sm:$0x1] %v3423_v26  ;;  %v3165_v20 = vshrl.u32 %v3042_v37, 16  ;;  %v2889_v54 = vmax.f32 %v2857_v52, 0.0  ;;  %v2677_v19 = vadd.f32 %v2676_v35, %v2587_v34  ;;  %v3168_v55 = vshll.u32 %v3042_v37, 16 }
 0x335   : > { %v4020_v3 = vrot.slane %v6838_v29, 1  ;;  %v4021_v26 = vrot.slane %v8271_v14, 1  ;;  %v8302_v37 = vpack.c.b16 %v3695_v40, %v3695_v40 }
 0x336   : > { %v3167_v23 = vrot.slane %v3165_v20, 7  ;;  %v2923_v61 = vmul.f32 %v8100_v17, %v2889_v54  ;;  %v2766_v42 = vadd.f32 %v8227_v8, %v2677_v19  ;;  %v8288_v49 = vpop.f32.mrf.mxu0  ;;  %4427 = vmatmul.bf16.vlgmr.msrb.gmra.mxu2 %v8294_v27  ;;  %v3756_v20 = vshll.u32 %v8173_v44, 16 }
 0x338   : > { %v3170_v6 = vor.u32 %v3168_v55, %v3167_v23  ;;  %v2957_v24 = vadd.f32 %v8102_v62, %v2923_v61  ;;  %v2824_v34 = vadd.f32 %v2766_v42, %v8002_v0  ;;  %v2592_v35 = vpop.f32.mrf.mxu2  ;;  %v3171_v55 = vrot.slane %v3167_v23, 4  ;;  %v3429_v61 = vld [vmem:[#allocation3 + $0x5c] sm:$0x1] }
 0x339   : > { %4754 = vmatmul.bf16.gmra.mxu0 %v8143_v41  ;;  %v2308_v41 = vadd.f32 %v7999_v38, %v8007_v56  ;;  %v3761_v38 = vshll.u32 %v8302_v37, 16 }
 0x33a   : > { %v3426_v8 = vsel %vm7297_vm5, %v3170_v6, %v3425_v31  ;;  %v3043_v48 = vpack.c.bf16 %v2957_v24, %v2957_v24  ;;  %v2858_v33 = vadd.f32 %v8092_v60, %v2824_v34  ;;  %v8309_v39 = vld [vmem:[#allocation3 + $0x48] sm:$0xff]  }
 0x33b   : > { %3427 = vst [vmem:[#allocation3 + $0x54] sm:$0xf] %v3426_v8  ;;  %v2678_v28 = vpop.f32.mrf.mxu3  ;;  %4363 = vmatmul.bf16.gmra.mxu1 %v8309_v39  ;;  %v3754_v8 = vshrl.u32 %v8173_v44, 16 }
 0x33c   : > { %v3173_v0 = vshrl.u32 %v3043_v48, 16  ;;  %v2890_v52 = vmax.f32 %v2858_v33, 0.0  ;;  %v2679_v9 = vadd.f32 %v2678_v28, %v2589_v10  ;;  %v3176_v19 = vshll.u32 %v3043_v48, 16 }
 0x33d   : > { %v8315_v10 = vsel %vm1358_vm9, %v4020_v3, %v4021_v26  ;;  %v6476_v26 = vld [vmem:[#allocation9 + $0x60] sm:$0xff] }
 0x33e   : > { %v3175_v54 = vrot.slane %v3173_v0, 7  ;;  %v2924_v51 = vmul.f32 %v8100_v17, %v2890_v52  ;;  %v2768_v58 = vadd.f32 %v8240_v18, %v2679_v9  ;;  %v8311_v14 = vpop.f32.mrf.mxu0  ;;  %v3758_v18 = vrot.slane %v3756_v20, 1  ;;  %4833 = vmatpush.bf16.msrb.mxu1 %v6476_v26 }
 0x33f   : > { %v3763_v0 = vrot.slane %v3761_v38, 1 }
 0x340   : > { %v3178_v56 = vor.u32 %v3176_v19, %v3175_v54  ;;  %v3180_v42 = vrot.slane %v3175_v54, 4  ;;  %v2958_v31 = vadd.f32 %v8102_v62, %v2924_v51  ;;  %v2825_v29 = vadd.f32 %v2768_v58, %v2308_v41  ;;  %4516 = vmatmul.bf16.vlgmr.msrb.gmra.mxu3 %v8315_v10  ;;  %v2594_v3 = vpop.f32.mrf.mxu2  ;;  %v6655_v19 = vld [vmem:[#allocation3 + $0x18] sm:$0xf0]  ;;  %v3534_v58 = vld [vmem:[#allocation3 + $0x2c] sm:$0x1] }
 0x341   : > { %v3759_v52 = vor.u32 %v3758_v18, %v3754_v8 }
 0x342   : > { %v3179_v40 = vsel %vm7288_vm4, %v3171_v55, %v3178_v56  ;;  %v3430_v23 = vsel %vm7427_vm7, %v3180_v42, %v3429_v61  ;;  %v3044_v6 = vpack.c.bf16 %v2958_v31, %v2958_v31  ;;  %v2859_v24 = vadd.f32 %v8092_v60, %v2825_v29  ;;  %v3432_v55 = vld [vmem:[#allocation3 + $0x60] sm:$0xf]  ;;  %v6656_v42 = vld [vmem:[#allocation3 + $0x18] sm:$0xe] }
 0x343   : > { %3428 = vst [vmem:[#allocation3 + $0x58] sm:$0xf] %v3179_v40  ;;  %v2681_v34 = vpop.f32.mrf.mxu3  ;;  %v8333_v38 = vsel %vm1069_vm8, %v3759_v52, %v3763_v0  ;;  %v6657_v31 = vor.u32 %v6656_v42, %v6655_v19  ;;  %v3696_v29 = vunpack.c.l.b16 %v3534_v58  ;;  %v3436_v58 = vld [vmem:[#allocation3 + $0x68] sm:$0x1] }
 0x344   : > { %3431 = vst [vmem:[#allocation3 + $0x5c] sm:$0x1] %v3430_v23  ;;  %v3182_v48 = vshrl.u32 %v3044_v6, 16  ;;  %v2891_v33 = vmax.f32 %v2859_v24, 0.0  ;;  %v2682_v28 = vadd.f32 %v2681_v34, %v2592_v35  ;;  %v3185_v41 = vshll.u32 %v3044_v6, 16 }
 0x345   : > { %v4024_v24 = vrot.slane %v8302_v37, 1  ;;  %v3768_v34 = vshll.u32 %v8202_v57, 16  ;;  %v4023_v26 = vrot.slane %v6657_v31, 1  ;;  %v8348_v0 = vpack.c.b16 %v3696_v29, %v3696_v29  ;;  %v6840_v29 = vld [vmem:[#allocation3 + $0x24] sm:$0xe] }
 0x346   : > { %v3184_v9 = vrot.slane %v3182_v48, 7  ;;  %v2925_v20 = vmul.f32 %v8100_v17, %v2891_v33  ;;  %v2771_v54 = vadd.f32 %v8255_v16, %v2682_v28  ;;  %v8328_v51 = vpop.f32.mrf.mxu0  ;;  %4432 = vmatmul.bf16.gmra.mxu2 %v8333_v38  ;;  %v2313_v28 = vadd.f32 %v8010_v11, %v8018_v63 }
 0x348   : > { %v3187_v61 = vor.u32 %v3185_v41, %v3184_v9  ;;  %v2959_v56 = vadd.f32 %v8102_v62, %v2925_v20  ;;  %v2826_v35 = vadd.f32 %v2771_v54, %v8013_v2  ;;  %v3188_v37 = vrot.slane %v3184_v9, 4 }
 0x349   : > { %4759 = vmatmul.bf16.gmra.mxu0 %v8173_v44  ;;  %v2597_v44 = vpop.f32.mrf.mxu2 }
 0x34a   : > { %v3433_v16 = vsel %vm7297_vm5, %v3187_v61, %v3432_v55  ;;  %v3045_v18 = vpack.c.bf16 %v2959_v56, %v2959_v56  ;;  %v2860_v40 = vadd.f32 %v8092_v60, %v2826_v35  ;;  %v8340_v23 = vld [vmem:[#allocation3 + $0x54] sm:$0xff]   ;;  %v3770_v55 = vrot.slane %v3768_v34, 1 }
 0x34b   : > { %9629 = vst [vmem:[#allocation33_spill] sm:$0xff] %v8340_v23  ;;  %v8342_v6 = vld [vmem:[#allocation3 + $0x54] sm:$0xf0]  ;;  %v2683_v2 = vpop.f32.mrf.mxu3  ;;  %4368 = vmatmul.bf16.gmra.mxu1 %v8340_v23 }
 0x34c   : > { %3434 = vst [vmem:[#allocation3 + $0x60] sm:$0xf] %v3433_v16  ;;  %v3190_v8 = vshrl.u32 %v3045_v18, 16  ;;  %v2892_v48 = vmax.f32 %v2860_v40, 0.0  ;;  %v2684_v33 = vadd.f32 %v2683_v2, %v2594_v3  ;;  %v3193_v41 = vshll.u32 %v3045_v18, 16 }
 0x34d   : > { %v8356_v3 = vsel %vm1358_vm9, %v4023_v26, %v4024_v24  ;;  %v3535_v34 = vld [vmem:[#allocation3 + $0x38] sm:$0x1] }
 0x34e   : > { %v3192_v52 = vrot.slane %v3190_v8, 7  ;;  %v2926_v20 = vmul.f32 %v8100_v17, %v2892_v48  ;;  %v2773_v54 = vadd.f32 %v8275_v5, %v2684_v33  ;;  %v8352_v19 = vpop.f32.mrf.mxu0  ;;  %v3766_v17 = vshrl.u32 %v8202_v57, 16 }
 0x34f   : > { %v3773_v5 = vshll.u32 %v8348_v0, 16 }
 0x350   : > { %v3195_v11 = vor.u32 %v3193_v41, %v3192_v52  ;;  %v3197_v63 = vrot.slane %v3192_v52, 4  ;;  %v2960_v61 = vadd.f32 %v8102_v62, %v2926_v20  ;;  %v2827_v56 = vadd.f32 %v2773_v54, %v2313_v28  ;;  %4521 = vmatmul.bf16.gmra.mxu3 %v8356_v3  ;;  %v8367_v28 = vld [vmem:[#allocation10 + $0x1] ss:$0 sm:$0xff]  ;;  %v3439_v41 = vld [vmem:[#allocation3 + $0x6c] sm:$0xf] }
 0x351   : > { %v2599_v2 = vpop.f32.mrf.mxu2  ;;  %v3771_v24 = vor.u32 %v3770_v55, %v3766_v17  ;;  %v3775_v8 = vrot.slane %v3773_v5, 1  ;;  %v6841_v20 = vor.u32 %v6840_v29, %v8204_v12  ;;  %v3697_v54 = vunpack.c.l.b16 %v3535_v34  ;;  %v8385_v12 = vld [vmem:[#allocation10] ss:$0 sm:$0xff] }
 0x352   : > { %v3196_v9 = vsel %vm7288_vm4, %v3188_v37, %v3195_v11  ;;  %v3437_v35 = vsel %vm7427_vm7, %v3197_v63, %v3436_v58  ;;  %v3046_v42 = vpack.c.bf16 %v2960_v61, %v2960_v61  ;;  %v2861_v31 = vadd.f32 %v8092_v60, %v2827_v56 }
 0x353   : > { %3435 = vst [vmem:[#allocation3 + $0x64] sm:$0xf] %v3196_v9  ;;  %v2686_v16 = vpop.f32.mrf.mxu3  ;;  %v8379_v11 = vsel %vm1069_vm8, %v3771_v24, %v3775_v8  ;;  %v4026_v17 = vrot.slane %v6841_v20, 1  ;;  %v8389_v5 = vpack.c.b16 %v3697_v54, %v3697_v54  ;;  %v2318_v29 = vadd.f32 %v8021_v53, %v8028_v47 }
 0x354   : > { %3438 = vst [vmem:[#allocation3 + $0x68] sm:$0x1] %v3437_v35  ;;  %v3199_v62 = vshrl.u32 %v3046_v42, 16  ;;  %v2893_v18 = vmax.f32 %v2861_v31, 0.0  ;;  %v2687_v40 = vadd.f32 %v2686_v16, %v2597_v44  ;;  %v3202_v33 = vshll.u32 %v3046_v42, 16 }
 0x355   : > { %v8374_v44 = vld [vmem:[#allocation10 + $0x2] ss:$0 sm:$0xff]  ;;  %v3780_v16 = vshll.u32 %v8238_v1, 16  ;;  %v3785_v53 = vshll.u32 %v8389_v5, 16 }
 0x356   : > { %v3201_v48 = vrot.slane %v3199_v62, 7  ;;  %v2927_v26 = vmul.f32 %v8367_v28, %v2893_v18  ;;  %v2776_v52 = vadd.f32 %v8288_v49, %v2687_v40  ;;  %v8371_v60 = vpop.f32.mrf.mxu0  ;;  %4437 = vmatmul.bf16.gmra.mxu2 %v8379_v11 }
 0x358   : > { %v3204_v37 = vor.u32 %v3202_v33, %v3201_v48  ;;  %v2961_v58 = vadd.f32 %v8374_v44, %v2927_v26  ;;  %v2828_v55 = vadd.f32 %v2776_v52, %v8024_v4  ;;  %v4027_v4 = vrot.slane %v8348_v0, 1  ;;  %v3443_v33 = vld [vmem:[#allocation3 + $0x74] sm:$0x1] }
 0x359   : > { %4764 = vmatmul.bf16.gmra.mxu0 %v8202_v57  ;;  %v2602_v31 = vpop.f32.mrf.mxu2  ;;  %v3205_v8 = vrot.slane %v3201_v48, 4 }
 0x35a   : > { %v3440_v49 = vsel %vm7297_vm5, %v3204_v37, %v3439_v41  ;;  %v3047_v63 = vpack.c.bf16 %v2961_v58, %v2961_v58  ;;  %v2862_v61 = vadd.f32 %v8385_v12, %v2828_v55  ;;  %v8396_v34 = vld [vmem:[#allocation3 + $0x60] sm:$0xff]   ;;  %v3778_v55 = vshrl.u32 %v8238_v1, 16 }
 0x35b   : > { %3441 = vst [vmem:[#allocation3 + $0x6c] sm:$0xf] %v3440_v49  ;;  %v2688_v56 = vpop.f32.mrf.mxu3  ;;  %4373 = vmatmul.bf16.gmra.mxu1 %v8396_v34  ;;  %v8413_v49 = vpop.f32.mrf.mxu1 }
 0x35c   : > { %v3207_v9 = vshrl.u32 %v3047_v63, 16  ;;  %v2894_v35 = vmax.f32 %v2862_v61, 0.0  ;;  %v2689_v42 = vadd.f32 %v2688_v56, %v2599_v2  ;;  %v3210_v18 = vshll.u32 %v3047_v63, 16 }
 0x35d   : > { %v8402_v2 = vsel %vm1358_vm9, %v4026_v17, %v4027_v4  ;;  %v6475_v4 = vld [vmem:[#allocation9 + $0x58] sm:$0xff] }
 0x35e   : > { %v3209_v62 = vrot.slane %v3207_v9, 7  ;;  %v2928_v40 = vmul.f32 %v8367_v28, %v2894_v35  ;;  %v2778_v24 = vadd.f32 %v8311_v14, %v2689_v42  ;;  %v8398_v0 = vpop.f32.mrf.mxu0  ;;  %9630 = vst [vmem:[#allocation44_spill] sm:$0xff] %v8402_v2  ;;  %v3782_v14 = vrot.slane %v3780_v16, 1  ;;  %4834 = vmatpush.bf16.msrb.mxu1 %v6475_v4 }
 0x35f   : > { %v3787_v9 = vrot.slane %v3785_v53, 1  ;;  %v2323_v4 = vadd.f32 %v8031_v30, %v8039_v13 }
 0x360   : > { %v3212_v47 = vor.u32 %v3210_v18, %v3209_v62  ;;  %v3214_v26 = vrot.slane %v3209_v62, 4  ;;  %v2962_v52 = vadd.f32 %v8374_v44, %v2928_v40  ;;  %v2829_v41 = vadd.f32 %v2778_v24, %v2318_v29  ;;  %4526 = vmatmul.bf16.gmra.mxu3 %v8402_v2  ;;  %v6658_v18 = vld [vmem:[#allocation3 + $0x30] sm:$0xf0]  ;;  %v3536_v24 = vld [vmem:[#allocation3 + $0x44] sm:$0x1] }
 0x361   : > { %v2604_v17 = vpop.f32.mrf.mxu2  ;;  %v3783_v35 = vor.u32 %v3782_v14, %v3778_v55 }
 0x362   : > { %v3213_v20 = vsel %vm7288_vm4, %v3205_v8, %v3212_v47  ;;  %v3444_v48 = vsel %vm7427_vm7, %v3214_v26, %v3443_v33  ;;  %v3048_v54 = vpack.c.bf16 %v2962_v52, %v2962_v52  ;;  %v2863_v37 = vadd.f32 %v8385_v12, %v2829_v41  ;;  %v3446_v8 = vld [vmem:[#allocation3 + $0x78] sm:$0xf]  ;;  %v6659_v26 = vld [vmem:[#allocation3 + $0x30] sm:$0xe] }
 0x363   : > { %3442 = vst [vmem:[#allocation3 + $0x70] sm:$0xf] %v3213_v20  ;;  %v2691_v58 = vpop.f32.mrf.mxu3  ;;  %v8422_v53 = vsel %vm1069_vm8, %v3783_v35, %v3787_v9  ;;  %v6660_v52 = vor.u32 %v6659_v26, %v6658_v18  ;;  %v3698_v41 = vunpack.c.l.b16 %v3536_v24  ;;  %v3790_v26 = vshrl.u32 %v8263_v43, 16 }
 0x364   : > { %3445 = vst [vmem:[#allocation3 + $0x74] sm:$0x1] %v3444_v48  ;;  %v3216_v63 = vshrl.u32 %v3048_v54, 16  ;;  %v2895_v61 = vmax.f32 %v2863_v37, 0.0  ;;  %v2692_v56 = vadd.f32 %v2691_v58, %v2602_v31  ;;  %v3219_v29 = vshll.u32 %v3048_v54, 16 }
 0x365   : > { %v4030_v37 = vrot.slane %v8389_v5, 1  ;;  %v3792_v58 = vshll.u32 %v8263_v43, 16  ;;  %v4029_v9 = vrot.slane %v6660_v52, 1  ;;  %v8439_v35 = vpack.c.b16 %v3698_v41, %v3698_v41 }
 0x366   : > { %v3218_v42 = vrot.slane %v3216_v63, 7  ;;  %v2929_v16 = vmul.f32 %v8367_v28, %v2895_v61  ;;  %v2781_v62 = vadd.f32 %v8328_v51, %v2692_v56  ;;  %v8417_v40 = vpop.f32.mrf.mxu0  ;;  %4442 = vmatmul.bf16.gmra.mxu2 %v8422_v53 }
 0x368   : > { %v3221_v33 = vor.u32 %v3219_v29, %v3218_v42  ;;  %v2963_v47 = vadd.f32 %v8374_v44, %v2929_v16  ;;  %v2830_v31 = vadd.f32 %v2781_v62, %v8034_v21  ;;  %v3222_v24 = vrot.slane %v3218_v42, 4 }
 0x369   : > { %4769 = vmatmul.bf16.gmra.mxu0 %v8238_v1  ;;  %v8435_v1 = vpop.f32.mrf.mxu1  ;;  %v2607_v56 = vpop.f32.mrf.mxu2 }
 0x36a   : > { %v3447_v51 = vsel %vm7297_vm5, %v3221_v33, %v3446_v8  ;;  %v3049_v14 = vpack.c.bf16 %v2963_v47, %v2963_v47  ;;  %v2864_v20 = vadd.f32 %v8385_v12, %v2830_v31  ;;  %v8429_v48 = vld [vmem:[#allocation3 + $0x6c] sm:$0xff]   ;;  %v3450_v8 = vld [vmem:[#allocation3 + $0x80] sm:$0x1]  ;;  %v3794_v33 = vrot.slane %v3792_v58, 1 }
 0x36b   : > { %v8431_v54 = vld [vmem:[#allocation3 + $0x6c] sm:$0xf0]  ;;  %3448 = vst [vmem:[#allocation3 + $0x78] sm:$0xf] %v3447_v51  ;;  %v2693_v21 = vpop.f32.mrf.mxu3  ;;  %4378 = vmatmul.bf16.gmra.mxu1 %v8429_v48 }
 0x36c   : > { %v3224_v55 = vshrl.u32 %v3049_v14, 16  ;;  %v2896_v63 = vmax.f32 %v2864_v20, 0.0  ;;  %v2694_v61 = vadd.f32 %v2693_v21, %v2604_v17  ;;  %v3227_v16 = vshll.u32 %v3049_v14, 16  ;;  %v6843_v14 = vld [vmem:[#allocation3 + $0x3c] sm:$0xe] }
 0x36d   : > { %v8447_v17 = vsel %vm1358_vm9, %v4029_v9, %v4030_v37 }
 0x36e   : > { %v3226_v29 = vrot.slane %v3224_v55, 7  ;;  %v2930_v62 = vmul.f32 %v8367_v28, %v2896_v63  ;;  %v2783_v5 = vadd.f32 %v8352_v19, %v2694_v61  ;;  %v8443_v18 = vpop.f32.mrf.mxu0  ;;  %9631 = vst [vmem:[#allocation30_spill] sm:$0xff] %v8447_v17  ;;  %v3797_v19 = vshll.u32 %v8439_v35, 16 }
 0x36f   : > { %v3795_v61 = vor.u32 %v3794_v33, %v3790_v26 }
 0x370   : > { %v3229_v30 = vor.u32 %v3227_v16, %v3226_v29  ;;  %v3231_v13 = vrot.slane %v3226_v29, 4  ;;  %v2964_v47 = vadd.f32 %v8374_v44, %v2930_v62  ;;  %v2831_v31 = vadd.f32 %v2783_v5, %v2323_v4  ;;  %4531 = vmatmul.bf16.gmra.mxu3 %v8447_v17  ;;  %v3537_v4 = vld [vmem:[#allocation3 + $0x50] sm:$0x1] }
 0x371   : > { %v8458_v55 = vpop.f32.mrf.mxu1  ;;  %v2609_v63 = vpop.f32.mrf.mxu2  ;;  %v3799_v9 = vrot.slane %v3797_v19, 1 }
 0x372   : > { %v3230_v42 = vsel %vm7288_vm4, %v3222_v24, %v3229_v30  ;;  %v3451_v52 = vsel %vm7427_vm7, %v3231_v13, %v3450_v8  ;;  %v3050_v41 = vpack.c.bf16 %v2964_v47, %v2964_v47  ;;  %v2865_v51 = vadd.f32 %v8385_v12, %v2831_v31  ;;  %v3453_v8 = vld [vmem:[#allocation3 + $0x84] sm:$0xf]  ;;  %v9632_v31 = vld [vmem:[#allocation31_spill] sm:$0xff] }
 0x373   : > { %3449 = vst [vmem:[#allocation3 + $0x7c] sm:$0xf] %v3230_v42  ;;  %v2696_v20 = vpop.f32.mrf.mxu3  ;;  %v6844_v30 = vor.u32 %v6843_v14, %v8265_v15  ;;  %v3699_v13 = vunpack.c.l.b16 %v3537_v4  ;;  %v8468_v33 = vsel %vm1069_vm8, %v3795_v61, %v3799_v9  ;;  %v9633_v61 = vld [vmem:[#allocation39_spill] sm:$0xff]  ;;  %v9634_v4 = vld [vmem:[#allocation36_spill] sm:$0xff] }
 0x374   : > { %3452 = vst [vmem:[#allocation3 + $0x80] sm:$0x1] %v3451_v52  ;;  %v3233_v21 = vshrl.u32 %v3050_v41, 16  ;;  %v2897_v37 = vmax.f32 %v2865_v51, 0.0  ;;  %v2697_v58 = vadd.f32 %v2696_v20, %v2607_v56  ;;  %v3236_v16 = vshll.u32 %v3050_v41, 16 }
 0x375   : > { %v4032_v52 = vrot.slane %v6844_v30, 1  ;;  %v4033_v41 = vrot.slane %v8439_v35, 1  ;;  %v8476_v51 = vpack.c.b16 %v3699_v13, %v3699_v13  ;;  %v2328_v9 = vadd.f32 %v9634_v4, %v9633_v61 }
 0x376   : > { %v3235_v29 = vrot.slane %v3233_v21, 7  ;;  %v2931_v62 = vmul.f32 %v8367_v28, %v2897_v37  ;;  %v2786_v5 = vadd.f32 %v8371_v60, %v2697_v58  ;;  %v8462_v24 = vpop.f32.mrf.mxu0  ;;  %4447 = vmatmul.bf16.gmra.mxu2 %v8468_v33 }
 0x378   : > { %v3238_v47 = vor.u32 %v3236_v16, %v3235_v29  ;;  %v2965_v56 = vadd.f32 %v8374_v44, %v2931_v62  ;;  %v2832_v42 = vadd.f32 %v2786_v5, %v9632_v31  ;;  %v3804_v16 = vshll.u32 %v8309_v39, 16 }
 0x379   : > { %4774 = vmatmul.bf16.gmra.mxu0 %v8263_v43  ;;  %v8478_v37 = vpop.f32.mrf.mxu1  ;;  %v2612_v58 = vpop.f32.mrf.mxu2  ;;  %v3809_v31 = vshll.u32 %v8476_v51, 16 }
 0x37a   : > { %v3454_v60 = vsel %vm7297_vm5, %v3238_v47, %v3453_v8  ;;  %v3051_v26 = vpack.c.bf16 %v2965_v56, %v2965_v56  ;;  %v2866_v19 = vadd.f32 %v8385_v12, %v2832_v42  ;;  %v8485_v35 = vld [vmem:[#allocation3 + $0x78] sm:$0xff]   ;;  %v3239_v47 = vrot.slane %v3235_v29, 4 }
 0x37b   : > { %3455 = vst [vmem:[#allocation3 + $0x84] sm:$0xf] %v3454_v60  ;;  %v2698_v15 = vpop.f32.mrf.mxu3  ;;  %4383 = vmatmul.bf16.gmra.mxu1 %v8485_v35  ;;  %v8491_v56 = vsel %vm1358_vm9, %v4032_v52, %v4033_v41 }
 0x37c   : > { %v3241_v14 = vshrl.u32 %v3051_v26, 16  ;;  %v2898_v20 = vmax.f32 %v2866_v19, 0.0  ;;  %v2699_v21 = vadd.f32 %v2698_v15, %v2609_v63  ;;  %v3244_v5 = vshll.u32 %v3051_v26, 16  ;;  %v3457_v63 = vld [vmem:[#allocation3 + $0x8c] sm:$0x1]  ;;  %9635 = vst [vmem:[#allocation48_spill] sm:$0xff] %v8491_v56 }
 0x37e   : > { %v3243_v62 = vrot.slane %v3241_v14, 7  ;;  %v2932_v8 = vmul.f32 %v8367_v28, %v2898_v20  ;;  %v2788_v30 = vadd.f32 %v8398_v0, %v2699_v21  ;;  %v8487_v13 = vpop.f32.mrf.mxu0  ;;  %v3806_v0 = vrot.slane %v3804_v16, 1 }
 0x37f   : > { %v3802_v20 = vshrl.u32 %v8309_v39, 16 }
 0x380   : > { %v3246_v42 = vor.u32 %v3244_v5, %v3243_v62  ;;  %v3248_v60 = vrot.slane %v3243_v62, 4  ;;  %v2966_v26 = vadd.f32 %v8374_v44, %v2932_v8  ;;  %v2833_v19 = vadd.f32 %v2788_v30, %v2328_v9  ;;  %4536 = vmatmul.bf16.gmra.mxu3 %v8491_v56  ;;  %v6474_v62 = vld [vmem:[#allocation9 + $0x50] sm:$0xff] }
 0x381   : > { %v8502_v9 = vpop.f32.mrf.mxu1  ;;  %v2614_v16 = vpop.f32.mrf.mxu2  ;;  %v3811_v5 = vrot.slane %v3809_v31, 1  ;;  %v3807_v8 = vor.u32 %v3806_v0, %v3802_v20  ;;  %4835 = vmatpush.bf16.msrb.mxu1 %v6474_v62  ;;  %v6662_v0 = vld [vmem:[#allocation3 + $0x48] sm:$0xe] }
 0x382   : > { %v3247_v15 = vsel %vm7288_vm4, %v3239_v47, %v3246_v42  ;;  %v3458_v29 = vsel %vm7427_vm7, %v3248_v60, %v3457_v63  ;;  %v3052_v14 = vpack.c.bf16 %v2966_v26, %v2966_v26  ;;  %v2867_v52 = vadd.f32 %v8385_v12, %v2833_v19  ;;  %v6661_v60 = vld [vmem:[#allocation3 + $0x48] sm:$0xf0]  ;;  %v3538_v19 = vld [vmem:[#allocation3 + $0x5c] sm:$0x1] }
 0x383   : > { %3456 = vst [vmem:[#allocation3 + $0x88] sm:$0xf] %v3247_v15  ;;  %v2701_v41 = vpop.f32.mrf.mxu3  ;;  %v3460_v15 = vld [vmem:[#allocation3 + $0x90] sm:$0xf]  ;;  %v8511_v31 = vsel %vm1069_vm8, %v3807_v8, %v3811_v5  ;;  %v3700_v20 = vunpack.c.l.b16 %v3538_v19  ;;  %v4036_v8 = vrot.slane %v8476_v51, 1 }
 0x384   : > { %3459 = vst [vmem:[#allocation3 + $0x8c] sm:$0x1] %v3458_v29  ;;  %v3250_v21 = vshrl.u32 %v3052_v14, 16  ;;  %v2899_v61 = vmax.f32 %v2867_v52, 0.0  ;;  %v2702_v4 = vadd.f32 %v2701_v41, %v2612_v58  ;;  %v3253_v47 = vshll.u32 %v3052_v14, 16  ;;  %v9636_v52 = vld [vmem:[#allocation40_spill] sm:$0xff] }
 0x385   : > { %v6663_v14 = vor.u32 %v6662_v0, %v6661_v60 }
 0x386   : > { %v3252_v30 = vrot.slane %v3250_v21, 7  ;;  %v2933_v63 = vmul.f32 %v8367_v28, %v2899_v61  ;;  %v2791_v42 = vadd.f32 %v8417_v40, %v2702_v4  ;;  %v8506_v26 = vpop.f32.mrf.mxu0  ;;  %4452 = vmatmul.bf16.gmra.mxu2 %v8511_v31 }
 0x388   : > { %v3255_v29 = vor.u32 %v3253_v47, %v3252_v30  ;;  %v2967_v58 = vadd.f32 %v8374_v44, %v2933_v63  ;;  %v2834_v41 = vadd.f32 %v2791_v42, %v9636_v52  ;;  %v3816_v47 = vshll.u32 %v8340_v23, 16 }
 0x389   : > { %4779 = vmatmul.bf16.gmra.mxu0 %v8309_v39  ;;  %v8524_v39 = vpop.f32.mrf.mxu1  ;;  %v2617_v19 = vpop.f32.mrf.mxu2  ;;  %v8528_v52 = vpack.c.b16 %v3700_v20, %v3700_v20  ;;  %v3256_v17 = vrot.slane %v3252_v30, 4 }
 0x38a   : > { %v3461_v40 = vsel %vm7297_vm5, %v3255_v29, %v3460_v15  ;;  %v3053_v21 = vpack.c.bf16 %v2967_v58, %v2967_v58  ;;  %v2868_v61 = vadd.f32 %v8385_v12, %v2834_v41  ;;  %v8518_v4 = vld [vmem:[#allocation3 + $0x84] sm:$0xff]   ;;  %v9638_v15 = vld [vmem:[#allocation25_spill] sm:$0xff]  ;;  %v4035_v58 = vrot.slane %v6663_v14, 1 }
 0x38b   : > { %9637 = vst [vmem:[#allocation45_spill] sm:$0xff] %v8518_v4  ;;  %v8520_v62 = vld [vmem:[#allocation3 + $0x84] sm:$0xf0]  ;;  %v2703_v5 = vpop.f32.mrf.mxu3  ;;  %v2333_v29 = vadd.f32 %v9638_v15, %v8060_v46  ;;  %4388 = vmatmul.bf16.gmra.mxu1 %v8518_v4 }
 0x38c   : > { %3462 = vst [vmem:[#allocation3 + $0x90] sm:$0xf] %v3461_v40  ;;  %v3258_v63 = vshrl.u32 %v3053_v21, 16  ;;  %v2900_v42 = vmax.f32 %v2868_v61, 0.0  ;;  %v2704_v60 = vadd.f32 %v2703_v5, %v2614_v16  ;;  %v3261_v0 = vshll.u32 %v3053_v21, 16 }
 0x38d   : > { %v3464_v61 = vld [vmem:[#allocation3 + $0x98] sm:$0x1]  ;;  %v8536_v16 = vsel %vm1358_vm9, %v4035_v58, %v4036_v8  ;;  %v3818_v5 = vrot.slane %v3816_v47, 1  ;;  %v3814_v21 = vshrl.u32 %v8340_v23, 16 }
 0x38e   : > { %v3260_v41 = vrot.slane %v3258_v63, 7  ;;  %v2934_v40 = vmul.f32 %v8367_v28, %v2900_v42  ;;  %v2793_v51 = vadd.f32 %v8443_v18, %v2704_v60  ;;  %v8532_v56 = vpop.f32.mrf.mxu0  ;;  %9639 = vst [vmem:[#allocation35_spill] sm:$0xff] %v8536_v16  ;;  %v3821_v18 = vshll.u32 %v8528_v52, 16  ;;  %v6846_v60 = vld [vmem:[#allocation3 + $0x54] sm:$0xe] }
 0x390   : > { %v3263_v46 = vor.u32 %v3261_v0, %v3260_v41  ;;  %v3265_v14 = vrot.slane %v3260_v41, 4  ;;  %v2968_v20 = vadd.f32 %v8374_v44, %v2934_v40  ;;  %v2835_v63 = vadd.f32 %v2793_v51, %v2333_v29  ;;  %4541 = vmatmul.bf16.gmra.mxu3 %v8536_v16  ;;  %v3539_v16 = vld [vmem:[#allocation3 + $0x68] sm:$0x1] }
 0x391   : > { %v8547_v0 = vpop.f32.mrf.mxu1  ;;  %v2619_v40 = vpop.f32.mrf.mxu2  ;;  %v3819_v51 = vor.u32 %v3818_v5, %v3814_v21  ;;  %v3823_v43 = vrot.slane %v3821_v18, 1 }
 0x392   : > { %v3264_v30 = vsel %vm7288_vm4, %v3256_v17, %v3263_v46  ;;  %v3465_v42 = vsel %vm7427_vm7, %v3265_v14, %v3464_v61  ;;  %v3054_v8 = vpack.c.bf16 %v2968_v20, %v2968_v20  ;;  %v2869_v47 = vadd.f32 %v8385_v12, %v2835_v63  ;;  %v3467_v63 = vld [vmem:[#allocation3 + $0x9c] sm:$0xf] }
 0x393   : > { %3463 = vst [vmem:[#allocation3 + $0x94] sm:$0xf] %v3264_v30  ;;  %v2706_v15 = vpop.f32.mrf.mxu3  ;;  %v6847_v30 = vor.u32 %v6846_v60, %v8342_v6  ;;  %v8557_v5 = vsel %vm1069_vm8, %v3819_v51, %v3823_v43 }
 0x394   : > { %3466 = vst [vmem:[#allocation3 + $0x98] sm:$0x1] %v3465_v42  ;;  %v3267_v29 = vshrl.u32 %v3054_v8, 16  ;;  %v2901_v58 = vmax.f32 %v2869_v47, 0.0  ;;  %v2707_v41 = vadd.f32 %v2706_v15, %v2617_v19  ;;  %v3270_v46 = vshll.u32 %v3054_v8, 16  ;;  %v9640_v15 = vld [vmem:[#allocation28_spill] sm:$0xff] }
 0x395   : > { %v3701_v42 = vunpack.c.l.b16 %v3539_v16  ;;  %9641 = vst [vmem:[#allocation46_spill] sm:$0xff] %v8557_v5  ;;  %v4038_v16 = vrot.slane %v6847_v30, 1  ;;  %v4039_v8 = vrot.slane %v8528_v52, 1 }
 0x396   : > { %v3269_v17 = vrot.slane %v3267_v29, 7  ;;  %v2935_v61 = vmul.f32 %v8367_v28, %v2901_v58  ;;  %v2796_v14 = vadd.f32 %v8462_v24, %v2707_v41  ;;  %v8551_v20 = vpop.f32.mrf.mxu0  ;;  %4457 = vmatmul.bf16.gmra.mxu2 %v8557_v5 }
 0x397   : > { %v8565_v60 = vpack.c.b16 %v3701_v42, %v3701_v42 }
 0x398   : > { %v3272_v47 = vor.u32 %v3270_v46, %v3269_v17  ;;  %v2969_v19 = vadd.f32 %v8374_v44, %v2935_v61  ;;  %v2836_v2 = vadd.f32 %v2796_v14, %v9640_v15  ;;  %v9642_v46 = vld [vmem:[#allocation41_spill] sm:$0xff]  ;;  %v3828_v14 = vshll.u32 %v8396_v34, 16 }
 0x399   : > { %4784 = vmatmul.bf16.gmra.mxu0 %v8340_v23  ;;  %v8567_v41 = vpop.f32.mrf.mxu1  ;;  %v2622_v51 = vpop.f32.mrf.mxu2  ;;  %v2338_v61 = vadd.f32 %v9642_v46, %v8070_v45  ;;  %v8580_v15 = vsel %vm1358_vm9, %v4038_v16, %v4039_v8  ;;  %v3833_v45 = vshll.u32 %v8565_v60, 16 }
 0x39a   : > { %v3468_v24 = vsel %vm7297_vm5, %v3272_v47, %v3467_v63  ;;  %v3055_v21 = vpack.c.bf16 %v2969_v19, %v2969_v19  ;;  %v2870_v18 = vadd.f32 %v8385_v12, %v2836_v2  ;;  %v8574_v52 = vld [vmem:[#allocation3 + $0x90] sm:$0xff]   ;;  %v3273_v19 = vrot.slane %v3269_v17, 4  ;;  %9643 = vst [vmem:[#allocation47_spill] sm:$0xff] %v8580_v15 }
 0x39b   : > { %3469 = vst [vmem:[#allocation3 + $0x9c] sm:$0xf] %v3468_v24  ;;  %v2708_v6 = vpop.f32.mrf.mxu3  ;;  %4393 = vmatmul.bf16.gmra.mxu1 %v8574_v52 }
 0x39c   : > { %v3275_v29 = vshrl.u32 %v3055_v21, 16  ;;  %v2902_v43 = vmax.f32 %v2870_v18, 0.0  ;;  %v2709_v58 = vadd.f32 %v2708_v6, %v2619_v40  ;;  %v3278_v2 = vshll.u32 %v3055_v21, 16  ;;  %v3471_v40 = vld [vmem:[#allocation3 + $0xa4] sm:$0x1] }
 0x39e   : > { %v3277_v63 = vrot.slane %v3275_v29, 7  ;;  %v2936_v47 = vmul.f32 %v8367_v28, %v2902_v43  ;;  %v2798_v30 = vadd.f32 %v8487_v13, %v2709_v58  ;;  %v8576_v42 = vpop.f32.mrf.mxu0  ;;  %v3830_v13 = vrot.slane %v3828_v14, 1 }
 0x39f   : > { %v3826_v58 = vshrl.u32 %v8396_v34, 16 }
 0x3a0   : > { %v3280_v24 = vor.u32 %v3278_v2, %v3277_v63  ;;  %v3282_v18 = vrot.slane %v3277_v63, 4  ;;  %v2970_v21 = vadd.f32 %v8374_v44, %v2936_v47  ;;  %v2837_v6 = vadd.f32 %v2798_v30, %v2338_v61  ;;  %4546 = vmatmul.bf16.gmra.mxu3 %v8580_v15  ;;  %v6473_v47 = vld [vmem:[#allocation9 + $0x48] sm:$0xff] }
 0x3a1   : > { %v8591_v2 = vpop.f32.mrf.mxu1  ;;  %v2624_v14 = vpop.f32.mrf.mxu2  ;;  %v3835_v30 = vrot.slane %v3833_v45, 1  ;;  %4836 = vmatpush.bf16.msrb.mxu1 %v6473_v47  ;;  %v4042_v47 = vrot.slane %v8565_v60, 1 }
 0x3a2   : > { %v3281_v29 = vsel %vm7288_vm4, %v3273_v19, %v3280_v24  ;;  %v3472_v17 = vsel %vm7427_vm7, %v3282_v18, %v3471_v40  ;;  %v3056_v43 = vpack.c.bf16 %v2970_v21, %v2970_v21  ;;  %v2871_v16 = vadd.f32 %v8385_v12, %v2837_v6  ;;  %v6664_v21 = vld [vmem:[#allocation3 + $0x60] sm:$0xf0] }
 0x3a3   : > { %3470 = vst [vmem:[#allocation3 + $0xa0] sm:$0xf] %v3281_v29  ;;  %v2711_v8 = vpop.f32.mrf.mxu3  ;;  %v3831_v19 = vor.u32 %v3830_v13, %v3826_v58  ;;  %v3540_v29 = vld [vmem:[#allocation3 + $0x74] sm:$0x1]  ;;  %v6665_v13 = vld [vmem:[#allocation3 + $0x60] sm:$0xe] }
 0x3a4   : > { %3473 = vst [vmem:[#allocation3 + $0xa4] sm:$0x1] %v3472_v17  ;;  %v3284_v46 = vshrl.u32 %v3056_v43, 16  ;;  %v2903_v63 = vmax.f32 %v2871_v16, 0.0  ;;  %v2712_v61 = vadd.f32 %v2711_v8, %v2622_v51  ;;  %v3287_v15 = vshll.u32 %v3056_v43, 16 }
 0x3a5   : > { %v3474_v17 = vld [vmem:[#allocation3 + $0xa8] sm:$0xf]  ;;  %v8600_v45 = vsel %vm1069_vm8, %v3831_v19, %v3835_v30  ;;  %v6666_v43 = vor.u32 %v6665_v13, %v6664_v21  ;;  %v3702_v58 = vunpack.c.l.b16 %v3540_v29  ;;  %v3840_v30 = vshll.u32 %v8429_v48, 16 }
 0x3a6   : > { %v3286_v24 = vrot.slane %v3284_v46, 7  ;;  %v2937_v40 = vmul.f32 %v8367_v28, %v2903_v63  ;;  %v2801_v18 = vadd.f32 %v8506_v26, %v2712_v61  ;;  %v8595_v6 = vpop.f32.mrf.mxu0  ;;  %9644 = vst [vmem:[#allocation37_spill] sm:$0xff] %v8600_v45  ;;  %4462 = vmatmul.bf16.gmra.mxu2 %v8600_v45  ;;  %v2343_v29 = vadd.f32 %v8078_v7, %v8081_v32  ;;  %v6472_v45 = vld [vmem:[#allocation9 + $0x40] sm:$0xff] }
 0x3a7   : > { %4837 = vmatpush.bf16.msrb.mxu1 %v6472_v45 }
 0x3a8   : > { %v3289_v16 = vor.u32 %v3287_v15, %v3286_v24  ;;  %v2971_v51 = vadd.f32 %v8374_v44, %v2937_v40  ;;  %v2838_v8 = vadd.f32 %v2801_v18, %v8074_v22  ;;  %v3290_v23 = vrot.slane %v3286_v24, 4 }
 0x3a9   : > { %4789 = vmatmul.bf16.gmra.mxu0 %v8396_v34  ;;  %v8613_v34 = vpop.f32.mrf.mxu1  ;;  %v2627_v21 = vpop.f32.mrf.mxu2 }
 0x3aa   : > { %v3475_v26 = vsel %vm7297_vm5, %v3289_v16, %v3474_v17  ;;  %v3057_v46 = vpack.c.bf16 %v2971_v51, %v2971_v51  ;;  %v2872_v15 = vadd.f32 %v8385_v12, %v2838_v8  ;;  %v8607_v63 = vld [vmem:[#allocation3 + $0x9c] sm:$0xff]   ;;  %v4041_v17 = vrot.slane %v6666_v43, 1 }
 0x3ab   : > { %9645 = vst [vmem:[#allocation49_spill] sm:$0xff] %v8607_v63  ;;  %v8609_v61 = vld [vmem:[#allocation3 + $0x9c] sm:$0xf0]  ;;  %v2713_v22 = vpop.f32.mrf.mxu3  ;;  %v8617_v16 = vpack.c.b16 %v3702_v58, %v3702_v58  ;;  %4398 = vmatmul.bf16.gmra.mxu1 %v8607_v63 }
 0x3ac   : > { %3476 = vst [vmem:[#allocation3 + $0xa8] sm:$0xf] %v3475_v26  ;;  %v3292_v19 = vshrl.u32 %v3057_v46, 16  ;;  %v2904_v40 = vmax.f32 %v2872_v15, 0.0  ;;  %v2714_v18 = vadd.f32 %v2713_v22, %v2624_v14  ;;  %v3295_v8 = vshll.u32 %v3057_v46, 16 }
 0x3ad   : > { %v3478_v15 = vld [vmem:[#allocation3 + $0xb0] sm:$0x1]  ;;  %v8625_v14 = vsel %vm1358_vm9, %v4041_v17, %v4042_v47  ;;  %v3842_v22 = vrot.slane %v3840_v30, 1  ;;  %v3838_v46 = vshrl.u32 %v8429_v48, 16  ;;  %v3541_v17 = vld [vmem:[#allocation3 + $0x80] sm:$0x1] }
 0x3ae   : > { %v3294_v51 = vrot.slane %v3292_v19, 7  ;;  %v2938_v13 = vmul.f32 %v8367_v28, %v2904_v40  ;;  %v2803_v60 = vadd.f32 %v8532_v56, %v2714_v18  ;;  %v8621_v26 = vpop.f32.mrf.mxu0  ;;  %9646 = vst [vmem:[#allocation50_spill] sm:$0xff] %v8625_v14  ;;  %v3845_v56 = vshll.u32 %v8617_v16, 16  ;;  %v6849_v40 = vld [vmem:[#allocation3 + $0x6c] sm:$0xe] }
 0x3b0   : > { %v3297_v7 = vor.u32 %v3295_v8, %v3294_v51  ;;  %v3299_v32 = vrot.slane %v3294_v51, 4  ;;  %v2972_v43 = vadd.f32 %v8374_v44, %v2938_v13  ;;  %v2839_v58 = vadd.f32 %v2803_v60, %v2343_v29  ;;  %4551 = vmatmul.bf16.gmra.mxu3 %v8625_v14 }
 0x3b1   : > { %v8636_v13 = vpop.f32.mrf.mxu1  ;;  %v2629_v60 = vpop.f32.mrf.mxu2  ;;  %v3843_v14 = vor.u32 %v3842_v22, %v3838_v46 }
 0x3b2   : > { %v3298_v24 = vsel %vm7288_vm4, %v3290_v23, %v3297_v7  ;;  %v3479_v19 = vsel %vm7427_vm7, %v3299_v32, %v3478_v15  ;;  %v3058_v47 = vpack.c.bf16 %v2972_v43, %v2972_v43  ;;  %v2873_v30 = vadd.f32 %v8385_v12, %v2839_v58  ;;  %v3481_v58 = vld [vmem:[#allocation3 + $0xb4] sm:$0xf] }
 0x3b3   : > { %3477 = vst [vmem:[#allocation3 + $0xac] sm:$0xf] %v3298_v24  ;;  %v2716_v18 = vpop.f32.mrf.mxu3  ;;  %v3847_v23 = vrot.slane %v3845_v56, 1  ;;  %v6850_v24 = vor.u32 %v6849_v40, %v8431_v54 }
 0x3b4   : > { %3480 = vst [vmem:[#allocation3 + $0xb0] sm:$0x1] %v3479_v19  ;;  %v3301_v29 = vshrl.u32 %v3058_v47, 16  ;;  %v2905_v51 = vmax.f32 %v2873_v30, 0.0  ;;  %v2717_v8 = vadd.f32 %v2716_v18, %v2627_v21  ;;  %v3304_v5 = vshll.u32 %v3058_v47, 16 }
 0x3b5   : > { %v3703_v19 = vunpack.c.l.b16 %v3541_v17  ;;  %v8646_v46 = vsel %vm1069_vm8, %v3843_v14, %v3847_v23  ;;  %v4045_v47 = vrot.slane %v8617_v16, 1  ;;  %v3852_v23 = vshll.u32 %v8485_v35, 16 }
 0x3b6   : > { %v3303_v7 = vrot.slane %v3301_v29, 7  ;;  %v2939_v15 = vmul.f32 %v8367_v28, %v2905_v51  ;;  %v2806_v32 = vadd.f32 %v8551_v20, %v2717_v8  ;;  %v8640_v43 = vpop.f32.mrf.mxu0  ;;  %4467 = vmatmul.bf16.gmra.mxu2 %v8646_v46  ;;  %v9647_v51 = vld [vmem:[#allocation42_spill] sm:$0xff] }
 0x3b7   : > { %v8654_v40 = vpack.c.b16 %v3703_v19, %v3703_v19  ;;  %v2348_v8 = vadd.f32 %v8413_v49, %v9647_v51 }
 0x3b8   : > { %v3306_v21 = vor.u32 %v3304_v5, %v3303_v7  ;;  %v2973_v30 = vadd.f32 %v8374_v44, %v2939_v15  ;;  %v2840_v22 = vadd.f32 %v2806_v32, %v8085_v50  ;;  %v4044_v5 = vrot.slane %v6850_v24, 1 }
 0x3b9   : > { %4794 = vmatmul.bf16.gmra.mxu0 %v8429_v48  ;;  %v8656_v17 = vpop.f32.mrf.mxu1  ;;  %v4428_v29 = vpop.f32.mrf.mxu2 }
 0x3ba   : > { %v3482_v20 = vsel %vm7297_vm5, %v3306_v21, %v3481_v58  ;;  %v3059_v45 = vpack.c.bf16 %v2973_v30, %v2973_v30  ;;  %v2874_v56 = vadd.f32 %v8385_v12, %v2840_v22  ;;  %v8663_v16 = vld [vmem:[#allocation3 + $0xa8] sm:$0xff]   ;;  %v3307_v21 = vrot.slane %v3303_v7, 4 }
 0x3bb   : > { %3483 = vst [vmem:[#allocation3 + $0xb4] sm:$0xf] %v3482_v20  ;;  %v2718_v54 = vpop.f32.mrf.mxu3  ;;  %4403 = vmatmul.bf16.gmra.mxu1 %v8663_v16  ;;  %v8669_v30 = vsel %vm1358_vm9, %v4044_v5, %v4045_v47  ;;  %v4429_v49 = vadd.f32 %v4428_v29, %v8435_v1  ;;  %v3857_v22 = vshll.u32 %v8654_v40, 16 }
 0x3bc   : > { %v3309_v50 = vshrl.u32 %v3059_v45, 16  ;;  %v2906_v14 = vmax.f32 %v2874_v56, 0.0  ;;  %v2719_v18 = vadd.f32 %v2718_v54, %v2629_v60  ;;  %v3312_v32 = vshll.u32 %v3059_v45, 16  ;;  %v3485_v60 = vld [vmem:[#allocation3 + $0xbc] sm:$0x1]  ;;  %9648 = vst [vmem:[#allocation21_spill] sm:$0xff] %v8669_v30 }
 0x3bd   : > { %v3854_v54 = vrot.slane %v3852_v23, 1 }
 0x3be   : > { %v3311_v15 = vrot.slane %v3309_v50, 7  ;;  %v2940_v58 = vmul.f32 %v8367_v28, %v2906_v14  ;;  %v2808_v24 = vadd.f32 %v8576_v42, %v2719_v18  ;;  %v8665_v19 = vpop.f32.mrf.mxu0  ;;  %v3850_v14 = vshrl.u32 %v8485_v35, 16 }
 0x3c0   : > { %v3314_v20 = vor.u32 %v3312_v32, %v3311_v15  ;;  %v3316_v45 = vrot.slane %v3311_v15, 4  ;;  %v2974_v56 = vadd.f32 %v8374_v44, %v2940_v58  ;;  %v2841_v42 = vadd.f32 %v2808_v24, %v2348_v8  ;;  %4556 = vmatmul.bf16.gmra.mxu3 %v8669_v30  ;;  %v6519_v32 = vld [vmem:[#allocation9 + $0x1b8] sm:$0xff]  ;;  %v6513_v30 = vld [vmem:[#allocation9 + $0x188] sm:$0xff] }
 0x3c1   : > { %v8681_v8 = vpop.f32.mrf.mxu1  ;;  %v4430_v23 = vpop.f32.mrf.mxu2  ;;  %v3859_v15 = vrot.slane %v3857_v22, 1  ;;  %v3855_v58 = vor.u32 %v3854_v54, %v3850_v14  ;;  %v6487_v24 = vld [vmem:[#allocation9 + $0xb8] sm:$0xff]  ;;  %5201 = vmatpush.bf16.msra.mxu3 %v6519_v32 }
 0x3c2   : > { %v3315_v7 = vsel %vm7288_vm4, %v3307_v21, %v3314_v20  ;;  %v3486_v50 = vsel %vm7427_vm7, %v3316_v45, %v3485_v60  ;;  %v3060_v5 = vpack.c.bf16 %v2974_v56, %v2974_v56  ;;  %v2875_v47 = vadd.f32 %v8385_v12, %v2841_v42  ;;  %v6667_v12 = vld [vmem:[#allocation3 + $0x78] sm:$0xf0]  ;;  %v3488_v42 = vld [vmem:[#allocation3 + $0xc0] sm:$0xf]  ;;  %4919 = vmatpush.bf16.msra.mxu2 %v6487_v24  ;;  %v6527_v32 = vld [vmem:[#allocation9 + $0x1f8] sm:$0xff] }
 0x3c3   : > { %3484 = vst [vmem:[#allocation3 + $0xb8] sm:$0xf] %v3315_v7  ;;  %v4517_v1 = vpop.f32.mrf.mxu3  ;;  %v4431_v54 = vadd.f32 %v4430_v23, %v8458_v55  ;;  %5290 = vmatpush.bf16.msra.mxu0 %v6527_v32 }
 0x3c4   : > { %3487 = vst [vmem:[#allocation3 + $0xbc] sm:$0x1] %v3486_v50  ;;  %v3318_v18 = vshrl.u32 %v3060_v5, 16  ;;  %v2907_v29 = vmax.f32 %v2875_v47, 0.0  ;;  %v4518_v51 = vadd.f32 %v4517_v1, %v4429_v49  ;;  %v3321_v60 = vshll.u32 %v3060_v5, 16 }
 0x3c5   : > { %v3542_v49 = vld [vmem:[#allocation3 + $0x8c] sm:$0x1]  ;;  %v8692_v50 = vsel %vm1069_vm8, %v3855_v58, %v3859_v15  ;;  %v6668_v5 = vld [vmem:[#allocation3 + $0x78] sm:$0xe] }
 0x3c6   : > { %v3320_v21 = vrot.slane %v3318_v18, 7  ;;  %v2941_v20 = vmul.f32 %v8367_v28, %v2907_v29  ;;  %v8684_v45 = vpop.f32.mrf.mxu0  ;;  %v8687_v56 = vadd.f32 %v8595_v6, %v4518_v51  ;;  %4472 = vmatmul.bf16.gmra.mxu2 %v8692_v50  ;;  %v6669_v28 = vor.u32 %v6668_v5, %v6667_v12 }
 0x3c7   : > { %v4048_v18 = vrot.slane %v8654_v40, 1  ;;  %v3864_v29 = vshll.u32 %v8518_v4, 16 }
 0x3c8   : > { %v3323_v7 = vor.u32 %v3321_v60, %v3320_v21  ;;  %v2975_v22 = vadd.f32 %v8374_v44, %v2941_v20  ;;  %v3704_v44 = vunpack.c.l.b16 %v3542_v49  ;;  %v4047_v25 = vrot.slane %v6669_v28, 1 }
 0x3c9   : > { %4799 = vmatmul.bf16.gmra.mxu0 %v8485_v35  ;;  %v8704_v15 = vpop.f32.mrf.mxu1  ;;  %v4433_v35 = vpop.f32.mrf.mxu2  ;;  %v3866_v49 = vrot.slane %v3864_v29, 1 }
 0x3ca   : > { %v3489_v6 = vsel %vm7297_vm5, %v3323_v7, %v3488_v42  ;;  %v3061_v47 = vpack.c.bf16 %v2975_v22, %v2975_v22  ;;  %v8698_v1 = vld [vmem:[#allocation3 + $0xb4] sm:$0xff]   ;;  %v3722_v60 = vpack.c.b16 %v3704_v44, %v3704_v44  ;;  %v3492_v42 = vld [vmem:[#allocation3 + $0xc8] sm:$0x1]  ;;  %v8713_v40 = vsel %vm1358_vm9, %v4047_v25, %v4048_v18 }
 0x3cb   : > { %v8700_v14 = vld [vmem:[#allocation3 + $0xb4] sm:$0xf0]  ;;  %3490 = vst [vmem:[#allocation3 + $0xc0] sm:$0xf] %v3489_v6  ;;  %v4519_v55 = vpop.f32.mrf.mxu3  ;;  %4408 = vmatmul.bf16.gmra.mxu1 %v8698_v1  ;;  %v6535_v7 = vld [vmem:[#allocation9 + $0x238] sm:$0xff]  ;;  %v3324_v22 = vrot.slane %v3320_v21, 4  ;;  %v4434_v28 = vadd.f32 %v4433_v35, %v8478_v37 }
 0x3cc   : > { %v3326_v51 = vshrl.u32 %v3061_v47, 16  ;;  %v4520_v23 = vadd.f32 %v4519_v55, %v4431_v54  ;;  %v3329_v24 = vshll.u32 %v3061_v47, 16  ;;  %9649 = vst [vmem:[#allocation51_spill] sm:$0xff] %v8713_v40  ;;  %5379 = vmatpush.bf16.msra.mxu1 %v6535_v7  ;;  %v3862_v47 = vshrl.u32 %v8518_v4, 16  ;;  %v6852_v55 = vld [vmem:[#allocation3 + $0x84] sm:$0xe] }
 0x3cd   : > { %v3869_v44 = vshll.u32 %v3722_v60, 16  ;;  %v3543_v37 = vld [vmem:[#allocation3 + $0x98] sm:$0x1]  ;;  %v6853_v36 = vor.u32 %v6852_v55, %v8520_v62 }
 0x3ce   : > { %v3328_v58 = vrot.slane %v3326_v51, 7  ;;  %v8706_v20 = vpop.f32.mrf.mxu0  ;;  %v8709_v12 = vadd.f32 %v8621_v26, %v4520_v23  ;;  %v3867_v23 = vor.u32 %v3866_v49, %v3862_v47 }
 0x3cf   : > { %v3871_v35 = vrot.slane %v3869_v44, 1  ;;  %v4050_v7 = vrot.slane %v6853_v36, 1  ;;  %v6804_v44 = vld [vmem:[#allocation3] sm:$0xff]  }
 0x3d0   : > { %v3331_v54 = vor.u32 %v3329_v24, %v3328_v58  ;;  %v3333_v5 = vrot.slane %v3328_v58, 4  ;;  %4561 = vmatmul.bf16.gmra.mxu3 %v8713_v40  ;;  %v3705_v24 = vunpack.c.l.b16 %v3543_v37  ;;  %v3732_v55 = vshll.u32 %v6804_v44, 16 }
 0x3d1   : > { %v8722_v29 = vpop.f32.mrf.mxu1  ;;  %v4435_v51 = vpop.f32.mrf.mxu2  ;;  %v8732_v58 = vsel %vm1069_vm8, %v3867_v23, %v3871_v35  ;;  %v3730_v37 = vshrl.u32 %v6804_v44, 16 }
 0x3d2   : > { %v3332_v26 = vsel %vm7288_vm4, %v3324_v22, %v3331_v54  ;;  %v3493_v6 = vsel %vm7427_vm7, %v3333_v5, %v3492_v42  ;;  %v4436_v25 = vadd.f32 %v4435_v51, %v8502_v9  ;;  %v3531_v42 = vld [vmem:[#allocation3 + $0x8] sm:$0x1]  ;;  %v4051_v22 = vrot.slane %v3722_v60, 1 }
 0x3d3   : > { %3491 = vst [vmem:[#allocation3 + $0xc4] sm:$0xf] %v3332_v26  ;;  %v4522_v18 = vpop.f32.mrf.mxu3  ;;  %v3723_v62 = vpack.c.b16 %v3705_v24, %v3705_v24  ;;  %v3876_v9 = vshll.u32 %v8574_v52, 16  ;;  %v3734_v35 = vrot.slane %v3732_v55, 1 }
 0x3d4   : > { %3494 = vst [vmem:[#allocation3 + $0xc8] sm:$0x1] %v3493_v6  ;;  %v4523_v21 = vadd.f32 %v4522_v18, %v4434_v28  ;;  %v3693_v28 = vunpack.c.l.b16 %v3531_v42  ;;  %v8748_v60 = vsel %vm1358_vm9, %v4050_v7, %v4051_v22  ;;  %v6518_v22 = vld [vmem:[#allocation9 + $0x1b0] sm:$0xff] }
 0x3d5   : > { %9650 = vst [vmem:[#allocation19_spill] sm:$0xff] %v8748_v60  ;;  %v3881_v51 = vshll.u32 %v3723_v62, 16  ;;  %v3878_v23 = vrot.slane %v3876_v9, 1  ;;  %5202 = vmatpush.bf16.msra.mxu3 %v6518_v22  ;;  %v3544_v9 = vld [vmem:[#allocation3 + $0xa4] sm:$0x1]  ;;  %v3735_v44 = vor.u32 %v3734_v35, %v3730_v37 }
 0x3d6   : > { %v8724_v32 = vpop.f32.mrf.mxu0  ;;  %v8727_v59 = vadd.f32 %v8640_v43, %v4523_v21  ;;  %4477 = vmatmul.bf16.gmra.mxu2 %v8732_v58  ;;  %v8752_v21 = vpack.c.b16 %v3693_v28, %v3693_v28 }
 0x3d7   : > { %v3883_v7 = vrot.slane %v3881_v51, 1  ;;  %v6671_v51 = vld [vmem:[#allocation3 + $0x90] sm:$0xe] }
 0x3d8   : > { %v3737_v42 = vshll.u32 %v8752_v21, 16 }
 0x3d9   : > { %4804 = vmatmul.bf16.gmra.mxu0 %v8518_v4  ;;  %v8736_v5 = vpop.f32.mrf.mxu1  ;;  %v4438_v43 = vpop.f32.mrf.mxu2 }
 0x3da   : > { %v8738_v26 = vld [vmem:[#allocation3 + $0xc0] sm:$0xff]   ;;  %v4439_v18 = vadd.f32 %v4438_v43, %v8524_v39  ;;  %v6670_v39 = vld [vmem:[#allocation3 + $0x90] sm:$0xf0] }
 0x3db   : > { %v4524_v49 = vpop.f32.mrf.mxu3  ;;  %4413 = vmatmul.bf16.gmra.mxu1 %v8738_v26 }
 0x3dc   : > { %v4525_v54 = vadd.f32 %v4524_v49, %v4436_v25  ;;  %v3874_v49 = vshrl.u32 %v8574_v52, 16 }
 0x3de   : > { %v8741_v6 = vpop.f32.mrf.mxu0  ;;  %v8744_v47 = vadd.f32 %v8665_v19, %v4525_v54  ;;  %v6486_v54 = vld [vmem:[#allocation9 + $0xb0] sm:$0xff] }
 0x3df   : > { %4920 = vmatpush.bf16.msra.mxu2 %v6486_v54  ;;  %v4054_v54 = vrot.slane %v3723_v62, 1  ;;  %v6534_v62 = vld [vmem:[#allocation9 + $0x230] sm:$0xff] }
 0x3e0   : > { %4566 = vmatmul.bf16.gmra.mxu3 %v8748_v60  ;;  %v3879_v60 = vor.u32 %v3878_v23, %v3874_v49  ;;  %v6672_v23 = vor.u32 %v6671_v51, %v6670_v39  ;;  %v3706_v49 = vunpack.c.l.b16 %v3544_v9  ;;  %5380 = vmatpush.bf16.msra.mxu1 %v6534_v62 }
 0x3e1   : > { %v8754_v25 = vpop.f32.mrf.mxu1  ;;  %v4440_v24 = vpop.f32.mrf.mxu2 }
 0x3e2   : > { %v4441_v55 = vadd.f32 %v4440_v24, %v8547_v0  ;;  %v3888_v0 = vshll.u32 %v8607_v63, 16  ;;  %v3724_v24 = vpack.c.b16 %v3706_v49, %v3706_v49 }
 0x3e3   : > { %v4527_v36 = vpop.f32.mrf.mxu3 }
 0x3e4   : > { %v4528_v19 = vadd.f32 %v4527_v36, %v4439_v18  ;;  %v3739_v18 = vrot.slane %v3737_v42, 1  ;;  %v8765_v36 = vsel %vm1069_vm8, %v3879_v60, %v3883_v7  ;;  %v4053_v60 = vrot.slane %v6672_v23, 1 }
 0x3e5   : > { %v3890_v9 = vrot.slane %v3888_v0, 1 }
 0x3e6   : > { %v8758_v43 = vpop.f32.mrf.mxu0  ;;  %v8761_v28 = vadd.f32 %v8684_v45, %v4528_v19  ;;  %4482 = vmatmul.bf16.gmra.mxu2 %v8765_v36  ;;  %v3740_v37 = vsel %vm1069_vm8, %v3735_v44, %v3739_v18  ;;  %v6526_v19 = vld [vmem:[#allocation9 + $0x1f0] sm:$0xff]  ;;  %v3886_v44 = vshrl.u32 %v8607_v63, 16  ;;  %v6855_v18 = vld [vmem:[#allocation3 + $0x9c] sm:$0xe] }
 0x3e7   : > { %5291 = vmatpush.bf16.msra.mxu0 %v6526_v19 }
 0x3e9   : > { %4809 = vmatmul.bf16.gmra.mxu0 %v8574_v52  ;;  %v8769_v45 = vpop.f32.mrf.mxu1  ;;  %v4443_v35 = vpop.f32.mrf.mxu2  ;;  %v8779_v52 = vsel %vm1358_vm9, %v4053_v60, %v4054_v54 }
 0x3ea   : > { %9651 = vst [vmem:[#allocation26_spill] sm:$0xff] %v8779_v52  ;;  %v4444_v39 = vadd.f32 %v4443_v35, %v8567_v41  ;;  %v6856_v41 = vor.u32 %v6855_v18, %v8609_v61  ;;  %v3900_v61 = vshll.u32 %v8663_v16, 16 }
 0x3eb   : > { %v4529_v22 = vpop.f32.mrf.mxu3  ;;  %4838 = vmatmul.bf16.vlgmr.msrb.gmra.mxu1 %v3740_v37 }
 0x3ec   : > { %v4530_v40 = vadd.f32 %v4529_v22, %v4441_v55  ;;  %v3893_v55 = vshll.u32 %v3724_v24, 16  ;;  %v3545_v22 = vld [vmem:[#allocation3 + $0xb0] sm:$0x1] }
 0x3ed   : > { %v3707_v60 = vunpack.c.l.b16 %v3545_v22 }
 0x3ee   : > { %v8773_v42 = vpop.f32.mrf.mxu0  ;;  %v8776_v7 = vadd.f32 %v8706_v20, %v4530_v40  ;;  %v3891_v40 = vor.u32 %v3890_v9, %v3886_v44  ;;  %v3895_v54 = vrot.slane %v3893_v55, 1  ;;  %v4057_v9 = vrot.slane %v3724_v24, 1 }
 0x3f0   : > { %4571 = vmatmul.bf16.gmra.mxu3 %v8779_v52  ;;  %v8794_v0 = vsel %vm1069_vm8, %v3891_v40, %v3895_v54  ;;  %v3902_v40 = vrot.slane %v3900_v61, 1 }
 0x3f1   : > { %v8784_v49 = vpop.f32.mrf.mxu1  ;;  %v4445_v20 = vpop.f32.mrf.mxu2 }
 0x3f2   : > { %v4446_v35 = vadd.f32 %v4445_v20, %v8591_v2 }
 0x3f3   : > { %v4532_v51 = vpop.f32.mrf.mxu3 }
 0x3f4   : > { %v4533_v23 = vadd.f32 %v4532_v51, %v4444_v39  ;;  %v4056_v39 = vrot.slane %v6856_v41, 1  ;;  %v3725_v51 = vpack.c.b16 %v3707_v60, %v3707_v60  ;;  %v3898_v60 = vshrl.u32 %v8663_v16, 16 }
 0x3f6   : > { %v8786_v37 = vpop.f32.mrf.mxu0  ;;  %v8789_v19 = vadd.f32 %v8724_v32, %v4533_v23  ;;  %4487 = vmatmul.bf16.gmra.mxu2 %v8794_v0  ;;  %v8808_v23 = vsel %vm1358_vm9, %v4056_v39, %v4057_v9  ;;  %v3905_v20 = vshll.u32 %v3725_v51, 16  ;;  %v3903_v52 = vor.u32 %v3902_v40, %v3898_v60  ;;  %v6673_v39 = vld [vmem:[#allocation3 + $0xa8] sm:$0xf0] }
 0x3f7   : > { %9652 = vst [vmem:[#allocation18_spill] sm:$0xff] %v8808_v23 }
 0x3f9   : > { %4814 = vmatmul.bf16.gmra.mxu0 %v8607_v63  ;;  %v8798_v55 = vpop.f32.mrf.mxu1  ;;  %v4448_v32 = vpop.f32.mrf.mxu2 }
 0x3fa   : > { %v4449_v24 = vadd.f32 %v4448_v32, %v8613_v34  ;;  %v3546_v32 = vld [vmem:[#allocation3 + $0xbc] sm:$0x1] }
 0x3fb   : > { %v4534_v62 = vpop.f32.mrf.mxu3  ;;  %4843 = vmatmul.bf16.gmra.mxu1 %v8294_v27  ;;  %v6525_v27 = vld [vmem:[#allocation9 + $0x1e8] sm:$0xff]  ;;  %v3708_v40 = vunpack.c.l.b16 %v3546_v32 }
 0x3fc   : > { %v4535_v44 = vadd.f32 %v4534_v62, %v4446_v35  ;;  %v6517_v62 = vld [vmem:[#allocation9 + $0x1a8] sm:$0xff]  ;;  %5292 = vmatpush.bf16.msra.mxu0 %v6525_v27  ;;  %v6484_v27 = vld [vmem:[#allocation9 + $0xa0] sm:$0xff] }
 0x3fd   : > { %5203 = vmatpush.bf16.msra.mxu3 %v6517_v62  ;;  %v4060_v62 = vrot.slane %v3725_v51, 1 }
 0x3fe   : > { %v8801_v18 = vpop.f32.mrf.mxu0  ;;  %v8804_v2 = vadd.f32 %v8741_v6, %v4535_v44  ;;  %v3907_v6 = vrot.slane %v3905_v20, 1  ;;  %v6485_v44 = vld [vmem:[#allocation9 + $0xa8] sm:$0xff]  ;;  %v6674_v20 = vld [vmem:[#allocation3 + $0xa8] sm:$0xe] }
 0x3ff   : > { %4921 = vmatpush.bf16.msra.mxu2 %v6485_v44 }
 0x400   : > { %4576 = vmatmul.bf16.gmra.mxu3 %v8808_v23 }
 0x401   : > { %v8812_v41 = vpop.f32.mrf.mxu1  ;;  %v4450_v35 = vpop.f32.mrf.mxu2 }
 0x402   : > { %v4451_v61 = vadd.f32 %v4450_v35, %v8636_v13  ;;  %v6516_v13 = vld [vmem:[#allocation9 + $0x1a0] sm:$0xff] }
 0x403   : > { %v4537_v22 = vpop.f32.mrf.mxu3  ;;  %v6524_v35 = vld [vmem:[#allocation9 + $0x1e0] sm:$0xff]  ;;  %4922 = vmatpush.bf16.msra.mxu2 %v6484_v27  ;;  %5204 = vmatpush.bf16.msra.mxu3 %v6516_v13 }
 0x404   : > { %v4538_v54 = vadd.f32 %v4537_v22, %v4449_v24  ;;  %v8822_v24 = vsel %vm1069_vm8, %v3903_v52, %v3907_v6  ;;  %v6675_v22 = vor.u32 %v6674_v20, %v6673_v39  ;;  %v8829_v6 = vpack.c.b16 %v3708_v40, %v3708_v40  ;;  %5293 = vmatpush.bf16.msra.mxu0 %v6524_v35  ;;  %v6533_v39 = vld [vmem:[#allocation9 + $0x228] sm:$0xff]  ;;  %v6483_v20 = vld [vmem:[#allocation9 + $0x98] sm:$0xff] }
 0x405   : > { %9653 = vst [vmem:[#allocation20_spill] sm:$0xff] %v8822_v24  ;;  %v6523_v40 = vld [vmem:[#allocation9 + $0x1d8] sm:$0xff]  ;;  %5381 = vmatpush.bf16.msra.mxu1 %v6533_v39 }
 0x406   : > { %v8815_v9 = vpop.f32.mrf.mxu0  ;;  %v8818_v34 = vadd.f32 %v8758_v43, %v4538_v54  ;;  %4492 = vmatmul.bf16.gmra.mxu2 %v8822_v24  ;;  %v3912_v54 = vshll.u32 %v8698_v1, 16  ;;  %v4059_v52 = vrot.slane %v6675_v22, 1  ;;  %v6515_v22 = vld [vmem:[#allocation9 + $0x198] sm:$0xff]  ;;  %v6481_v24 = vld [vmem:[#allocation9 + $0x88] sm:$0xff] }
 0x407   : > { %4923 = vmatpush.bf16.msra.mxu2 %v6483_v20  ;;  %5205 = vmatpush.bf16.msra.mxu3 %v6515_v22  ;;  %v6521_v22 = vld [vmem:[#allocation9 + $0x1c8] sm:$0xff] }
 0x408   : > { %v8838_v51 = vsel %vm1358_vm9, %v4059_v52, %v4060_v62  ;;  %5294 = vmatpush.bf16.msra.mxu0 %v6523_v40 }
 0x409   : > { %4819 = vmatmul.bf16.gmra.mxu0 %v8663_v16  ;;  %v8826_v23 = vpop.f32.mrf.mxu1  ;;  %v4453_v43 = vpop.f32.mrf.mxu2  ;;  %9654 = vst [vmem:[#allocation52_spill] sm:$0xff] %v8838_v51 }
 0x40a   : > { %v4454_v32 = vadd.f32 %v4453_v43, %v8656_v17  ;;  %v6482_v17 = vld [vmem:[#allocation9 + $0x90] sm:$0xff] }
 0x40b   : > { %v4539_v60 = vpop.f32.mrf.mxu3  ;;  %4848 = vmatmul.bf16.gmra.mxu1 %v8333_v38  ;;  %v6514_v43 = vld [vmem:[#allocation9 + $0x190] sm:$0xff]  ;;  %4924 = vmatpush.bf16.msra.mxu2 %v6482_v17 }
 0x40c   : > { %v4540_v44 = vadd.f32 %v4539_v60, %v4451_v61  ;;  %v3914_v61 = vrot.slane %v3912_v54, 1  ;;  %v3910_v60 = vshrl.u32 %v8698_v1, 16  ;;  %v6522_v54 = vld [vmem:[#allocation9 + $0x1d0] sm:$0xff]  ;;  %5206 = vmatpush.bf16.msra.mxu3 %v6514_v43 }
 0x40d   : > { %5295 = vmatpush.bf16.msra.mxu0 %v6522_v54 }
 0x40e   : > { %v8831_v63 = vpop.f32.mrf.mxu0  ;;  %v8834_v16 = vadd.f32 %v8773_v42, %v4540_v44  ;;  %v3917_v42 = vshll.u32 %v8829_v6, 16  ;;  %v6858_v44 = vld [vmem:[#allocation3 + $0xb4] sm:$0xe]  ;;  %v3915_v52 = vor.u32 %v3914_v61, %v3910_v60 }
 0x40f   : > { %4925 = vmatpush.bf16.msra.mxu2 %v6481_v24 }
 0x410   : > { %4581 = vmatmul.bf16.gmra.mxu3 %v8838_v51  ;;  %v3547_v51 = vld [vmem:[#allocation3 + $0xc8] sm:$0x1]  ;;  %v3919_v4 = vrot.slane %v3917_v42, 1 }
 0x411   : > { %v8844_v13 = vpop.f32.mrf.mxu1  ;;  %v4455_v35 = vpop.f32.mrf.mxu2  ;;  %v3709_v60 = vunpack.c.l.b16 %v3547_v51  ;;  %5207 = vmatpush.bf16.msra.mxu3 %v6513_v30  ;;  %5296 = vmatpush.bf16.msra.mxu0 %v6521_v22  ;;  %v3924_v51 = vshll.u32 %v8738_v26, 16  ;;  %v3922_v22 = vshrl.u32 %v8738_v26, 16 }
 0x412   : > { %v4456_v61 = vadd.f32 %v4455_v35, %v8681_v8  ;;  %v8854_v40 = vsel %vm1069_vm8, %v3915_v52, %v3919_v4  ;;  %v6480_v35 = vld [vmem:[#allocation9 + $0x80] sm:$0xff] }
 0x413   : > { %v4542_v62 = vpop.f32.mrf.mxu3  ;;  %v3727_v8 = vpack.c.b16 %v3709_v60, %v3709_v60  ;;  %v6512_v4 = vld [vmem:[#allocation9 + $0x180] sm:$0xff]  ;;  %4926 = vmatpush.bf16.msra.mxu2 %v6480_v35  ;;  %v3926_v54 = vrot.slane %v3924_v51, 1  ;;  %v6676_v35 = vld [vmem:[#allocation3 + $0xc0] sm:$0xf0] }
 0x414   : > { %v4543_v27 = vadd.f32 %v4542_v62, %v4454_v32  ;;  %v6859_v32 = vor.u32 %v6858_v44, %v8700_v14  ;;  %v6520_v52 = vld [vmem:[#allocation9 + $0x1c0] sm:$0xff] }
 0x415   : > { %5208 = vmatpush.bf16.msra.mxu3 %v6512_v4  ;;  %5297 = vmatpush.bf16.msra.mxu0 %v6520_v52  ;;  %v3929_v43 = vshll.u32 %v3727_v8, 16 }
 0x416   : > { %v8846_v39 = vpop.f32.mrf.mxu0  ;;  %v8849_v20 = vadd.f32 %v8786_v37, %v4543_v27  ;;  %4497 = vmatmul.bf16.gmra.mxu2 %v8854_v40  ;;  %v4062_v62 = vrot.slane %v6859_v32, 1  ;;  %v4063_v37 = vrot.slane %v8829_v6, 1 }
 0x418   : > { %v8867_v24 = vsel %vm1358_vm9, %v4062_v62, %v4063_v37 }
 0x419   : > { %4824 = vmatmul.bf16.gmra.mxu0 %v8698_v1  ;;  %v8859_v44 = vpop.f32.mrf.mxu1  ;;  %v4458_v27 = vpop.f32.mrf.mxu2  ;;  %9655 = vst [vmem:[#allocation24_spill] sm:$0xff] %v8867_v24 }
 0x41a   : > { %v4459_v6 = vadd.f32 %v4458_v27, %v8704_v15  ;;  %v6677_v27 = vld [vmem:[#allocation3 + $0xc0] sm:$0xe] }
 0x41b   : > { %v4544_v42 = vpop.f32.mrf.mxu3  ;;  %4853 = vmatmul.bf16.gmra.mxu1 %v8379_v11  ;;  %v6678_v52 = vor.u32 %v6677_v27, %v6676_v35  ;;  %v4018_v35 = vrot.slane %v8752_v21, 1 }
 0x41c   : > { %v4545_v14 = vadd.f32 %v4544_v42, %v4456_v61  ;;  %v3931_v42 = vrot.slane %v3929_v43, 1  ;;  %v6652_v43 = vld [vmem:[#allocation3] sm:$0xf0] }
 0x41e   : > { %v4787_v17 = vpop.f32.mrf.mxu0  ;;  %v8863_v30 = vadd.f32 %v8801_v18, %v4545_v14  ;;  %v3927_v14 = vor.u32 %v3926_v54, %v3922_v22  ;;  %v6653_v54 = vld [vmem:[#allocation3] sm:$0xe] }
 0x420   : > { %4586 = vmatmul.bf16.gmra.mxu3 %v8867_v24  ;;  %v8879_v15 = vsel %vm1069_vm8, %v3927_v14, %v3931_v42  ;;  %v6654_v24 = vor.u32 %v6653_v54, %v6652_v43 }
 0x421   : > { %v8872_v60 = vpop.f32.mrf.mxu1  ;;  %v4460_v18 = vpop.f32.mrf.mxu2 }
 0x422   : > { %v4461_v37 = vadd.f32 %v4460_v18, %v8722_v29  ;;  %v4017_v14 = vrot.slane %v6654_v24, 1 }
 0x423   : > { %v4547_v32 = vpop.f32.mrf.mxu3 }
 0x424   : > { %v4548_v61 = vadd.f32 %v4547_v32, %v4459_v6  ;;  %v4066_v6 = vrot.slane %v3727_v8, 1 }
 0x426   : > { %v4790_v4 = vpop.f32.mrf.mxu0  ;;  %v8875_v62 = vadd.f32 %v8815_v9, %v4548_v61  ;;  %4502 = vmatmul.bf16.gmra.mxu2 %v8879_v15  ;;  %v4065_v61 = vrot.slane %v6678_v52, 1 }
 0x428   : > { %v8890_v42 = vsel %vm1358_vm9, %v4065_v61, %v4066_v6 }
 0x429   : > { %5298 = vmatmul.bf16.vlgmr.msra.gmra.mxu0 %v8333_v38  ;;  %v8883_v22 = vpop.f32.mrf.mxu1  ;;  %v4463_v9 = vpop.f32.mrf.mxu2  ;;  %v6532_v38 = vld [vmem:[#allocation9 + $0x220] sm:$0xff] }
 0x42a   : > { %v4464_v8 = vadd.f32 %v4463_v9, %v8736_v5  ;;  %5382 = vmatpush.bf16.msra.mxu1 %v6532_v38  ;;  %v6805_v38 = vld [vmem:[#allocation3 + $0x18] sm:$0xff]  }
 0x42b   : > { %v4549_v51 = vpop.f32.mrf.mxu3  ;;  %4858 = vmatmul.bf16.gmra.mxu1 %v8422_v53 }
 0x42c   : > { %v4550_v32 = vadd.f32 %v4549_v51, %v4461_v37  ;;  %v4019_v51 = vsel %vm1358_vm9, %v4017_v14, %v4018_v35 }
 0x42e   : > { %v4792_v29 = vpop.f32.mrf.mxu0  ;;  %v8886_v18 = vadd.f32 %v8831_v63, %v4550_v32 }
 0x430   : > { %4591 = vmatmul.bf16.gmra.mxu3 %v8890_v42 }
 0x431   : > { %v8895_v52 = vpop.f32.mrf.mxu1  ;;  %v4465_v63 = vpop.f32.mrf.mxu2 }
 0x432   : > { %v4466_v54 = vadd.f32 %v4465_v63, %v8754_v25 }
 0x433   : > { %v4552_v37 = vpop.f32.mrf.mxu3 }
 0x434   : > { %v4553_v27 = vadd.f32 %v4552_v37, %v4464_v8 }
 0x436   : > { %v4795_v43 = vpop.f32.mrf.mxu0  ;;  %v8899_v6 = vadd.f32 %v8846_v39, %v4553_v27  ;;  %4927 = vmatmul.bf16.vlgmr.msra.gmra.mxu2 %v4019_v51 }
 0x439   : > { %5303 = vmatmul.bf16.gmra.mxu0 %v8379_v11  ;;  %v8903_v32 = vpop.f32.mrf.mxu1  ;;  %v4468_v21 = vpop.f32.mrf.mxu2 }
 0x43a   : > { %v4469_v39 = vadd.f32 %v4468_v21, %v8769_v45 }
 0x43b   : > { %v4554_v5 = vpop.f32.mrf.mxu3  ;;  %4863 = vmatmul.bf16.gmra.mxu1 %v8468_v33 }
 0x43c   : > { %v4555_v24 = vadd.f32 %v4554_v5, %v4466_v54 }
 0x43e   : > { %v4797_v9 = vpop.f32.mrf.mxu0  ;;  %v8905_v61 = vadd.f32 %v4787_v17, %v4555_v24  ;;  %v6531_v24 = vld [vmem:[#allocation9 + $0x218] sm:$0xff] }
 0x43f   : > { %5383 = vmatpush.bf16.msra.mxu1 %v6531_v24 }
 0x440   : > { %5209 = vmatmul.bf16.vlgmr.msra.gmra.mxu3 %v6805_v38 }
 0x441   : > { %v8909_v25 = vpop.f32.mrf.mxu1  ;;  %v4470_v35 = vpop.f32.mrf.mxu2 }
 0x442   : > { %v4471_v27 = vadd.f32 %v4470_v35, %v8784_v49 }
 0x443   : > { %v4557_v8 = vpop.f32.mrf.mxu3 }
 0x444   : > { %v4558_v14 = vadd.f32 %v4557_v8, %v4469_v39 }
 0x446   : > { %v4800_v11 = vpop.f32.mrf.mxu0  ;;  %v8911_v37 = vadd.f32 %v4790_v4, %v4558_v14  ;;  %4932 = vmatmul.bf16.gmra.mxu2 %v8315_v10 }
 0x449   : > { %5308 = vmatmul.bf16.gmra.mxu0 %v8422_v53  ;;  %v8916_v51 = vpop.f32.mrf.mxu1  ;;  %v4473_v54 = vpop.f32.mrf.mxu2 }
 0x44a   : > { %v4474_v4 = vadd.f32 %v4473_v54, %v8798_v55 }
 0x44b   : > { %v4559_v17 = vpop.f32.mrf.mxu3  ;;  %4868 = vmatmul.bf16.gmra.mxu1 %v8511_v31 }
 0x44c   : > { %v4560_v63 = vadd.f32 %v4559_v17, %v4471_v27  ;;  %v9656_v27 = vld [vmem:[#allocation46_spill] sm:$0xff] }
 0x44e   : > { %v4802_v45 = vpop.f32.mrf.mxu0  ;;  %v8918_v5 = vadd.f32 %v4792_v29, %v4560_v63  ;;  %v6806_v63 = vld [vmem:[#allocation3 + $0x30] sm:$0xff]  }
 0x450   : > { %5214 = vmatmul.bf16.gmra.mxu3 %v8202_v57 }
 0x451   : > { %v8923_v21 = vpop.f32.mrf.mxu1  ;;  %v4475_v53 = vpop.f32.mrf.mxu2 }
 0x452   : > { %v4476_v8 = vadd.f32 %v4475_v53, %v8812_v41 }
 0x453   : > { %v4562_v49 = vpop.f32.mrf.mxu3 }
 0x454   : > { %v4563_v10 = vadd.f32 %v4562_v49, %v4474_v4 }
 0x456   : > { %v4805_v38 = vpop.f32.mrf.mxu0  ;;  %v8925_v39 = vadd.f32 %v4795_v43, %v4563_v10  ;;  %4937 = vmatmul.bf16.gmra.mxu2 %v8356_v3  ;;  %v9657_v10 = vld [vmem:[#allocation44_spill] sm:$0xff] }
 0x459   : > { %5313 = vmatmul.bf16.gmra.mxu0 %v8468_v33  ;;  %v8930_v57 = vpop.f32.mrf.mxu1  ;;  %v4478_v55 = vpop.f32.mrf.mxu2 }
 0x45a   : > { %v4479_v43 = vadd.f32 %v4478_v55, %v8826_v23 }
 0x45b   : > { %v4564_v29 = vpop.f32.mrf.mxu3  ;;  %4873 = vmatmul.bf16.gmra.mxu1 %v9656_v27 }
 0x45c   : > { %v4565_v14 = vadd.f32 %v4564_v29, %v4476_v8 }
 0x45e   : > { %v8932_v35 = vadd.f32 %v4797_v9, %v4565_v14  ;;  %v4807_v17 = vpop.f32.mrf.mxu0 }
 0x460   : > { %5219 = vmatmul.bf16.gmra.mxu3 %v6806_v63  ;;  %v9658_v63 = vld [vmem:[#allocation37_spill] sm:$0xff] }
 0x461   : > { %v8936_v24 = vpop.f32.mrf.mxu1  ;;  %v4480_v4 = vpop.f32.mrf.mxu2 }
 0x462   : > { %v4481_v49 = vadd.f32 %v4480_v4, %v8844_v13 }
 0x463   : > { %v4567_v54 = vpop.f32.mrf.mxu3 }
 0x464   : > { %v4568_v41 = vadd.f32 %v4567_v54, %v4479_v43  ;;  %v9659_v43 = vld [vmem:[#allocation43_spill] sm:$0xff] }
 0x466   : > { %v8938_v33 = vadd.f32 %v4800_v11, %v4568_v41  ;;  %4942 = vmatmul.bf16.gmra.mxu2 %v9657_v10  ;;  %v4810_v9 = vpop.f32.mrf.mxu0  ;;  %v6530_v11 = vld [vmem:[#allocation9 + $0x210] sm:$0xff] }
 0x467   : > { %5384 = vmatpush.bf16.msra.mxu1 %v6530_v11 }
 0x469   : > { %5318 = vmatmul.bf16.gmra.mxu0 %v8511_v31  ;;  %v4839_v29 = vpop.f32.mrf.mxu1  ;;  %v4483_v14 = vpop.f32.mrf.mxu2 }
 0x46a   : > { %v8944_v23 = vadd.f32 %v4839_v29, %v8687_v56  ;;  %v4484_v13 = vadd.f32 %v4483_v14, %v8859_v44 }
 0x46b   : > { %v4569_v53 = vpop.f32.mrf.mxu3  ;;  %4878 = vmatmul.bf16.gmra.mxu1 %v9658_v63 }
 0x46c   : > { %v4570_v8 = vadd.f32 %v4569_v53, %v4481_v49 }
 0x46e   : > { %v8946_v55 = vadd.f32 %v4802_v45, %v4570_v8  ;;  %v4812_v41 = vpop.f32.mrf.mxu0  ;;  %v9660_v8 = vld [vmem:[#allocation30_spill] sm:$0xff] }
 0x470   : > { %5224 = vmatmul.bf16.gmra.mxu3 %v9659_v43 }
 0x471   : > { %v4841_v4 = vpop.f32.mrf.mxu1  ;;  %v4485_v49 = vpop.f32.mrf.mxu2 }
 0x472   : > { %v8952_v53 = vadd.f32 %v4841_v4, %v8709_v12  ;;  %v4486_v45 = vadd.f32 %v4485_v49, %v8872_v60  ;;  %v6807_v12 = vld [vmem:[#allocation3 + $0x48] sm:$0xff]  }
 0x473   : > { %v4572_v54 = vpop.f32.mrf.mxu3 }
 0x474   : > { %v4573_v31 = vadd.f32 %v4572_v54, %v4484_v13 }
 0x476   : > { %v8954_v56 = vadd.f32 %v4805_v38, %v4573_v31  ;;  %4947 = vmatmul.bf16.gmra.mxu2 %v9660_v8  ;;  %v4815_v13 = vpop.f32.mrf.mxu0 }
 0x479   : > { %5323 = vmatmul.bf16.gmra.mxu0 %v9656_v27  ;;  %v4844_v44 = vpop.f32.mrf.mxu1  ;;  %v4488_v14 = vpop.f32.mrf.mxu2 }
 0x47a   : > { %v8960_v11 = vadd.f32 %v4844_v44, %v8727_v59  ;;  %v4489_v60 = vadd.f32 %v4488_v14, %v8883_v22 }
 0x47b   : > { %v4574_v29 = vpop.f32.mrf.mxu3  ;;  %4883 = vmatmul.bf16.gmra.mxu1 %v8646_v46 }
 0x47c   : > { %v4575_v43 = vadd.f32 %v4574_v29, %v4486_v45 }
 0x47e   : > { %v8962_v54 = vadd.f32 %v4807_v17, %v4575_v43  ;;  %v4817_v59 = vpop.f32.mrf.mxu0  ;;  %v9661_v17 = vld [vmem:[#allocation48_spill] sm:$0xff] }
 0x480   : > { %5229 = vmatmul.bf16.gmra.mxu3 %v6807_v12 }
 0x481   : > { %v4846_v4 = vpop.f32.mrf.mxu1  ;;  %v4490_v27 = vpop.f32.mrf.mxu2 }
 0x482   : > { %v8967_v49 = vadd.f32 %v4846_v4, %v8744_v47  ;;  %v4491_v29 = vadd.f32 %v4490_v27, %v8895_v52  ;;  %v6529_v47 = vld [vmem:[#allocation9 + $0x208] sm:$0xff] }
 0x483   : > { %v4577_v38 = vpop.f32.mrf.mxu3  ;;  %5385 = vmatpush.bf16.msra.mxu1 %v6529_v47 }
 0x484   : > { %v4578_v31 = vadd.f32 %v4577_v38, %v4489_v60 }
 0x486   : > { %v8969_v45 = vadd.f32 %v4810_v9, %v4578_v31  ;;  %4952 = vmatmul.bf16.gmra.mxu2 %v9661_v17  ;;  %v9662_v9 = vld [vmem:[#allocation33_spill] sm:$0xff]  ;;  %v4820_v38 = vpop.f32.mrf.mxu0 }
 0x489   : > { %5328 = vmatmul.bf16.gmra.mxu0 %v9658_v63  ;;  %v4849_v12 = vpop.f32.mrf.mxu1  ;;  %v4493_v22 = vpop.f32.mrf.mxu2 }
 0x48a   : > { %v8975_v14 = vadd.f32 %v4849_v12, %v8761_v28  ;;  %v4494_v52 = vadd.f32 %v4493_v22, %v8903_v32 }
 0x48b   : > { %v4579_v43 = vpop.f32.mrf.mxu3  ;;  %4888 = vmatmul.bf16.gmra.mxu1 %v8692_v50 }
 0x48c   : > { %v4580_v44 = vadd.f32 %v4579_v43, %v4491_v29  ;;  %v9663_v43 = vld [vmem:[#allocation35_spill] sm:$0xff] }
 0x48e   : > { %v8977_v60 = vadd.f32 %v4812_v41, %v4580_v44  ;;  %v4822_v12 = vpop.f32.mrf.mxu0 }
 0x490   : > { %5234 = vmatmul.bf16.gmra.mxu3 %v9662_v9 }
 0x491   : > { %v4851_v4 = vpop.f32.mrf.mxu1  ;;  %v4495_v27 = vpop.f32.mrf.mxu2 }
 0x492   : > { %v8983_v29 = vadd.f32 %v4851_v4, %v8776_v7  ;;  %v4496_v41 = vadd.f32 %v4495_v27, %v8909_v25  ;;  %v6808_v7 = vld [vmem:[#allocation3 + $0x60] sm:$0xff]  }
 0x493   : > { %v4582_v31 = vpop.f32.mrf.mxu3 }
 0x494   : > { %v4583_v63 = vadd.f32 %v4582_v31, %v4494_v52 }
 0x496   : > { %v8985_v28 = vadd.f32 %v4815_v13, %v4583_v63  ;;  %4957 = vmatmul.bf16.gmra.mxu2 %v9663_v43  ;;  %v4825_v27 = vpop.f32.mrf.mxu0 }
 0x499   : > { %5333 = vmatmul.bf16.gmra.mxu0 %v8646_v46  ;;  %v4854_v22 = vpop.f32.mrf.mxu1  ;;  %v4498_v47 = vpop.f32.mrf.mxu2 }
 0x49a   : > { %v8991_v9 = vadd.f32 %v4854_v22, %v8789_v19  ;;  %v4499_v25 = vadd.f32 %v4498_v47, %v8916_v51 }
 0x49b   : > { %v4584_v44 = vpop.f32.mrf.mxu3  ;;  %4893 = vmatmul.bf16.gmra.mxu1 %v8732_v58 }
 0x49c   : > { %v4585_v32 = vadd.f32 %v4584_v44, %v4496_v41 }
 0x49e   : > { %v8993_v52 = vadd.f32 %v4817_v59, %v4585_v32  ;;  %v9664_v59 = vld [vmem:[#allocation47_spill] sm:$0xff] }
 0x4a0   : > { %5239 = vmatmul.bf16.gmra.mxu3 %v6808_v7 }
 0x4a1   : > { %v4856_v63 = vpop.f32.mrf.mxu1  ;;  %v4500_v46 = vpop.f32.mrf.mxu2 }
 0x4a2   : > { %v8998_v4 = vadd.f32 %v4856_v63, %v8804_v2  ;;  %v4501_v19 = vadd.f32 %v4500_v46, %v8923_v21  ;;  %v4827_v2 = vpop.f32.mrf.mxu0 }
 0x4a3   : > { %v4587_v13 = vpop.f32.mrf.mxu3 }
 0x4a4   : > { %v4588_v31 = vadd.f32 %v4587_v13, %v4499_v25 }
 0x4a6   : > { %v9000_v41 = vadd.f32 %v4820_v38, %v4588_v31  ;;  %4962 = vmatmul.bf16.gmra.mxu2 %v9664_v59  ;;  %v6528_v38 = vld [vmem:[#allocation9 + $0x200] sm:$0xff] }
 0x4a7   : > { %5386 = vmatpush.bf16.msra.mxu1 %v6528_v38 }
 0x4a9   : > { %5338 = vmatmul.bf16.gmra.mxu0 %v8692_v50  ;;  %v4859_v22 = vpop.f32.mrf.mxu1  ;;  %v4503_v51 = vpop.f32.mrf.mxu2 }
 0x4aa   : > { %v9006_v47 = vadd.f32 %v4859_v22, %v8818_v34  ;;  %v4504_v21 = vadd.f32 %v4503_v51, %v8930_v57  ;;  %v5299_v46 = vpop.f32.mrf.mxu0 }
 0x4ab   : > { %v4589_v44 = vpop.f32.mrf.mxu3  ;;  %4898 = vmatmul.bf16.gmra.mxu1 %v8765_v36 }
 0x4ac   : > { %v4590_v32 = vadd.f32 %v4589_v44, %v4501_v19  ;;  %v9665_v19 = vld [vmem:[#allocation50_spill] sm:$0xff] }
 0x4ae   : > { %v9008_v7 = vadd.f32 %v4822_v12, %v4590_v32 }
 0x4b0   : > { %5244 = vmatmul.bf16.gmra.mxu3 %v8429_v48 }
 0x4b1   : > { %v4861_v13 = vpop.f32.mrf.mxu1  ;;  %v4505_v31 = vpop.f32.mrf.mxu2 }
 0x4b2   : > { %v9014_v63 = vadd.f32 %v4861_v13, %v8834_v16  ;;  %v4506_v12 = vadd.f32 %v4505_v31, %v8936_v24  ;;  %v6809_v24 = vld [vmem:[#allocation3 + $0x78] sm:$0xff]   ;;  %v5301_v38 = vpop.f32.mrf.mxu0 }
 0x4b3   : > { %v4592_v25 = vpop.f32.mrf.mxu3 }
 0x4b4   : > { %v4593_v50 = vadd.f32 %v4592_v25, %v4504_v21 }
 0x4b6   : > { %v9016_v34 = vadd.f32 %v4825_v27, %v4593_v50  ;;  %4967 = vmatmul.bf16.gmra.mxu2 %v9665_v19 }
 0x4b9   : > { %5343 = vmatmul.bf16.gmra.mxu0 %v8732_v58  ;;  %v4864_v57 = vpop.f32.mrf.mxu1  ;;  %v4928_v32 = vpop.f32.mrf.mxu2 }
 0x4ba   : > { %v9022_v22 = vadd.f32 %v4864_v57, %v8849_v20  ;;  %v9025_v51 = vadd.f32 %v4928_v32, %v8944_v23  ;;  %v9666_v23 = vld [vmem:[#allocation21_spill] sm:$0xff] }
 0x4bb   : > { %v4594_v48 = vpop.f32.mrf.mxu3  ;;  %4903 = vmatmul.bf16.gmra.mxu1 %v8794_v0 }
 0x4bc   : > { %v4595_v44 = vadd.f32 %v4594_v48, %v4506_v12  ;;  %v5304_v48 = vpop.f32.mrf.mxu0 }
 0x4be   : > { %v9027_v16 = vadd.f32 %v4827_v2, %v4595_v44 }
 0x4c0   : > { %5249 = vmatmul.bf16.gmra.mxu3 %v6809_v24 }
 0x4c1   : > { %v4866_v58 = vpop.f32.mrf.mxu1  ;;  %v4930_v25 = vpop.f32.mrf.mxu2 }
 0x4c2   : > { %v9033_v50 = vadd.f32 %v4866_v58, %v8863_v30  ;;  %v9036_v20 = vadd.f32 %v4930_v25, %v8952_v53  ;;  %v9667_v30 = vld [vmem:[#allocation20_spill] sm:$0xff]  ;;  %v9668_v53 = vld [vmem:[#allocation45_spill] sm:$0xff]  ;;  %v9669_v58 = vld [vmem:[#allocation51_spill] sm:$0xff] }
 0x4c3   : > { %v5210_v27 = vpop.f32.mrf.mxu3 }
 0x4c4   : > { %v9030_v21 = vadd.f32 %v5299_v46, %v5210_v27 }
 0x4c6   : > { %4972 = vmatmul.bf16.gmra.mxu2 %v9666_v23 }
 0x4c9   : > { %5348 = vmatmul.bf16.gmra.mxu0 %v8765_v36  ;;  %v4869_v31 = vpop.f32.mrf.mxu1  ;;  %v4933_v12 = vpop.f32.mrf.mxu2 }
 0x4ca   : > { %v9043_v46 = vadd.f32 %v4869_v31, %v8875_v62  ;;  %v9046_v44 = vadd.f32 %v4933_v12, %v8960_v11  ;;  %v5306_v62 = vpop.f32.mrf.mxu0 }
 0x4cb   : > { %v5212_v2 = vpop.f32.mrf.mxu3  ;;  %4908 = vmatmul.bf16.gmra.mxu1 %v9667_v30 }
 0x4cc   : > { %v9040_v13 = vadd.f32 %v5301_v38, %v5212_v2 }
 0x4d0   : > { %5254 = vmatmul.bf16.gmra.mxu3 %v9668_v53 }
 0x4d1   : > { %v4871_v36 = vpop.f32.mrf.mxu1  ;;  %v4935_v24 = vpop.f32.mrf.mxu2 }
 0x4d2   : > { %v9053_v27 = vadd.f32 %v4871_v36, %v8886_v18  ;;  %v9056_v38 = vadd.f32 %v4935_v24, %v8967_v49  ;;  %v6810_v18 = vld [vmem:[#allocation3 + $0x90] sm:$0xff]   ;;  %v5309_v49 = vpop.f32.mrf.mxu0 }
 0x4d3   : > { %v5215_v57 = vpop.f32.mrf.mxu3 }
 0x4d4   : > { %v9050_v32 = vadd.f32 %v5304_v48, %v5215_v57 }
 0x4d6   : > { %4977 = vmatmul.bf16.gmra.mxu2 %v9669_v58 }
 0x4d9   : > { %5353 = vmatmul.bf16.gmra.mxu0 %v8794_v0  ;;  %v4874_v2 = vpop.f32.mrf.mxu1  ;;  %v4938_v31 = vpop.f32.mrf.mxu2 }
 0x4da   : > { %v9063_v12 = vadd.f32 %v4874_v2, %v8899_v6  ;;  %v9066_v48 = vadd.f32 %v4938_v31, %v8975_v14  ;;  %v9670_v6 = vld [vmem:[#allocation19_spill] sm:$0xff]  ;;  %v5311_v14 = vpop.f32.mrf.mxu0 }
 0x4db   : > { %v5217_v11 = vpop.f32.mrf.mxu3  ;;  %4913 = vmatmul.bf16.gmra.mxu1 %v8854_v40 }
 0x4dc   : > { %v9060_v25 = vadd.f32 %v5306_v62, %v5217_v11 }
 0x4e0   : > { %5259 = vmatmul.bf16.gmra.mxu3 %v6810_v18 }
 0x4e1   : > { %v4876_v0 = vpop.f32.mrf.mxu1  ;;  %v4940_v36 = vpop.f32.mrf.mxu2 }
 0x4e2   : > { %v9072_v24 = vadd.f32 %v4876_v0, %v8905_v61  ;;  %v9075_v62 = vadd.f32 %v4940_v36, %v8983_v29  ;;  %v9671_v61 = vld [vmem:[#allocation49_spill] sm:$0xff] }
 0x4e3   : > { %v5220_v53 = vpop.f32.mrf.mxu3 }
 0x4e4   : > { %v9069_v57 = vadd.f32 %v5309_v49, %v5220_v53 }
 0x4e6   : > { %4982 = vmatmul.bf16.gmra.mxu2 %v9670_v6 }
 0x4e9   : > { %5358 = vmatmul.bf16.gmra.mxu0 %v9667_v30  ;;  %v4879_v31 = vpop.f32.mrf.mxu1  ;;  %v4943_v18 = vpop.f32.mrf.mxu2 }
 0x4ea   : > { %v9082_v49 = vadd.f32 %v4879_v31, %v8911_v37  ;;  %v9085_v53 = vadd.f32 %v4943_v18, %v8991_v9 }
 0x4eb   : > { %v5222_v11 = vpop.f32.mrf.mxu3  ;;  %5387 = vmatmul.bf16.vlgmr.msra.gmra.mxu1 %v8356_v3  ;;  %v6811_v3 = vld [vmem:[#allocation3 + $0xa8] sm:$0xff]  }
 0x4ec   : > { %v9079_v2 = vadd.f32 %v5311_v14, %v5222_v11  ;;  %v9672_v14 = vld [vmem:[#allocation26_spill] sm:$0xff] }
 0x4f0   : > { %5264 = vmatmul.bf16.gmra.mxu3 %v9671_v61 }
 0x4f1   : > { %v4881_v29 = vpop.f32.mrf.mxu1  ;;  %v4945_v0 = vpop.f32.mrf.mxu2 }
 0x4f2   : > { %v9090_v30 = vadd.f32 %v4881_v29, %v8918_v5  ;;  %v9093_v36 = vadd.f32 %v4945_v0, %v8998_v4  ;;  %v9673_v5 = vld [vmem:[#allocation18_spill] sm:$0xff] }
 0x4f6   : > { %4987 = vmatmul.bf16.gmra.mxu2 %v9672_v14 }
 0x4f9   : > { %5363 = vmatmul.bf16.gmra.mxu0 %v8854_v40  ;;  %v4884_v37 = vpop.f32.mrf.mxu1 }
 0x4fa   : > { %v9098_v9 = vadd.f32 %v4884_v37, %v8925_v39 }
 0x4fb   : > { %5392 = vmatmul.bf16.gmra.mxu1 %v9657_v10  ;;  %v9674_v10 = vld [vmem:[#allocation52_spill] sm:$0xff] }
 0x500   : > { %5269 = vmatmul.bf16.gmra.mxu3 %v6811_v3 }
 0x501   : > { %v4886_v11 = vpop.f32.mrf.mxu1 }
 0x502   : > { %v9102_v31 = vadd.f32 %v4886_v11, %v8932_v35  ;;  %v9152_v11 = vpop.f32.mrf.mxu0 }
 0x506   : > { %4992 = vmatmul.bf16.gmra.mxu2 %v9673_v5 }
 0x509   : > { %5368 = vmatmul.bf16.gmra.mxu0 %v8879_v15  ;;  %v4889_v4 = vpop.f32.mrf.mxu1 }
 0x50a   : > { %v9107_v18 = vadd.f32 %v4889_v4, %v8938_v33 }
 0x50b   : > { %5397 = vmatmul.bf16.gmra.mxu1 %v9660_v8  ;;  %v9675_v8 = vld [vmem:[#allocation24_spill] sm:$0xff] }
 0x510   : > { %5274 = vmatmul.bf16.gmra.mxu3 %v8698_v1 }
 0x511   : > { %v4891_v40 = vpop.f32.mrf.mxu1 }
 0x512   : > { %v9112_v39 = vadd.f32 %v4891_v40, %v8946_v55 }
 0x516   : > { %4997 = vmatmul.bf16.gmra.mxu2 %v9674_v10 }
 0x519   : > { %v4894_v35 = vpop.f32.mrf.mxu1 }
 0x51a   : > { %v9116_v61 = vadd.f32 %v4894_v35, %v8954_v56  ;;  %v9164_v35 = vld [vmem:[#allocation12 + $0x1] ss:$0 sm:$0xff] }
 0x51b   : > { %5402 = vmatmul.bf16.gmra.mxu1 %v9661_v17 }
 0x520   : > { %5279 = vmatmul.bf16.gmra.mxu3 %v8738_v26 }
 0x521   : > { %v4896_v15 = vpop.f32.mrf.mxu1 }
 0x522   : > { %v9121_v33 = vadd.f32 %v4896_v15, %v8962_v54 }
 0x526   : > { %5002 = vmatmul.bf16.gmra.mxu2 %v9675_v8 }
 0x529   : > { %v4899_v1 = vpop.f32.mrf.mxu1 }
 0x52a   : > { %v9125_v55 = vadd.f32 %v4899_v1, %v8969_v45  ;;  %v9169_v1 = vld [vmem:[#allocation12 + $0x2] ss:$0 sm:$0xff] }
 0x52b   : > { %5407 = vmatmul.bf16.gmra.mxu1 %v9663_v43 }
 0x531   : > { %v4901_v29 = vpop.f32.mrf.mxu1 }
 0x532   : > { %v9129_v56 = vadd.f32 %v4901_v29, %v8977_v60 }
 0x539   : > { %v4904_v0 = vpop.f32.mrf.mxu1 }
 0x53a   : > { %v9132_v17 = vadd.f32 %v4904_v0, %v8985_v28 }
 0x53b   : > { %5412 = vmatmul.bf16.gmra.mxu1 %v9664_v59 }
 0x541   : > { %v4906_v26 = vpop.f32.mrf.mxu1 }
 0x542   : > { %v9136_v54 = vadd.f32 %v4906_v26, %v8993_v52 }
 0x549   : > { %v4909_v37 = vpop.f32.mrf.mxu1 }
 0x54a   : > { %v9139_v45 = vadd.f32 %v4909_v37, %v9000_v41  ;;  %v9154_v41 = vpop.f32.mrf.mxu3 }
 0x54b   : > { %5417 = vmatmul.bf16.gmra.mxu1 %v9665_v19 }
 0x551   : > { %v4911_v43 = vpop.f32.mrf.mxu1 }
 0x552   : > { %v9143_v60 = vadd.f32 %v4911_v43, %v9008_v7  ;;  %v9157_v7 = vld [vmem:[#allocation12] ss:$0 sm:$0xff]  ;;  %v9181_v43 = vpop.f32.mrf.mxu2 }
 0x559   : > { %v4914_v3 = vpop.f32.mrf.mxu1 }
 0x55a   : > { %v9146_v28 = vadd.f32 %v4914_v3, %v9016_v34  ;;  %v9161_v34 = vpop.f32.mrf.mxu0 }
 0x55b   : > { %5422 = vmatmul.bf16.gmra.mxu1 %v9666_v23 }
 0x561   : > { %v4916_v59 = vpop.f32.mrf.mxu1 }
 0x562   : > { %v9150_v52 = vadd.f32 %v4916_v59, %v9027_v16  ;;  %v9166_v16 = vpop.f32.mrf.mxu3  ;;  %v9179_v37 = vpop.f32.mrf.mxu0 }
 0x569   : > { %v5388_v19 = vpop.f32.mrf.mxu1 }
 0x56a   : > { %v5389_v4 = vadd.f32 %v5388_v19, %v9030_v21  ;;  %v9183_v59 = vpop.f32.mrf.mxu3 }
 0x56b   : > { %5427 = vmatmul.bf16.gmra.mxu1 %v9669_v58 }
 0x56c   : > { %v5468_v40 = vadd.f32 %v5389_v4, %v9025_v51 }
 0x56e   : > { %v5502_v23 = vadd.f32 %v9157_v7, %v5468_v40 }
 0x570   : > { %v5534_v15 = vmax.f32 %v5502_v23, 0.0 }
 0x571   : > { %v5390_v29 = vpop.f32.mrf.mxu1 }
 0x572   : > { %v5568_v21 = vmul.f32 %v9164_v35, %v5534_v15  ;;  %v5391_v0 = vadd.f32 %v5390_v29, %v9040_v13 }
 0x574   : > { %v5602_v51 = vadd.f32 %v9169_v1, %v5568_v21  ;;  %v5469_v58 = vadd.f32 %v5391_v0, %v9036_v20  ;;  %v9192_v21 = vpop.f32.mrf.mxu0  ;;  %v9194_v0 = vpop.f32.mrf.mxu2 }
 0x576   : > { %5634 = vst [vmem:[%s9175_s29] sm:$0xff] %v5602_v51  ;;  %v5503_v26 = vadd.f32 %v9157_v7, %v5469_v58 }
 0x578   : > { %v5535_v3 = vmax.f32 %v5503_v26, 0.0 }
 0x579   : > { %v5393_v19 = vpop.f32.mrf.mxu1 }
 0x57a   : > { %v5569_v13 = vmul.f32 %v9164_v35, %v5535_v3  ;;  %v5394_v20 = vadd.f32 %v5393_v19, %v9050_v32  ;;  %v9198_v32 = vpop.f32.mrf.mxu3 }
 0x57b   : > { %5432 = vmatmul.bf16.gmra.mxu1 %v9670_v6 }
 0x57c   : > { %v5603_v4 = vadd.f32 %v9169_v1, %v5569_v13  ;;  %v5470_v40 = vadd.f32 %v5394_v20, %v9046_v44 }
 0x57e   : > { %5635 = vst [vmem:[%s9175_s29 + $0x8] sm:$0xff] %v5603_v4  ;;  %v5504_v23 = vadd.f32 %v9157_v7, %v5470_v40  ;;  %v9206_v4 = vpop.f32.mrf.mxu0 }
 0x580   : > { %v5536_v15 = vmax.f32 %v5504_v23, 0.0 }
 0x581   : > { %v5395_v29 = vpop.f32.mrf.mxu1 }
 0x582   : > { %v5570_v51 = vmul.f32 %v9164_v35, %v5536_v15  ;;  %v5396_v58 = vadd.f32 %v5395_v29, %v9060_v25  ;;  %v9208_v25 = vpop.f32.mrf.mxu2 }
 0x584   : > { %v5604_v44 = vadd.f32 %v9169_v1, %v5570_v51  ;;  %v5471_v6 = vadd.f32 %v5396_v58, %v9056_v38  ;;  %v9213_v38 = vpop.f32.mrf.mxu3 }
 0x586   : > { %5636 = vst [vmem:[%s9175_s29 + $0x10] sm:$0xff] %v5604_v44  ;;  %v5505_v26 = vadd.f32 %v9157_v7, %v5471_v6 }
 0x588   : > { %v5537_v3 = vmax.f32 %v5505_v26, 0.0  ;;  %v9221_v26 = vpop.f32.mrf.mxu0 }
 0x589   : > { %v5398_v19 = vpop.f32.mrf.mxu1 }
 0x58a   : > { %v5571_v13 = vmul.f32 %v9164_v35, %v5537_v3  ;;  %v5399_v20 = vadd.f32 %v5398_v19, %v9069_v57  ;;  %v5315_v19 = vadd.f32 %v9152_v11, %v9154_v41 }
 0x58b   : > { %5437 = vmatmul.bf16.gmra.mxu1 %v9672_v14 }
 0x58c   : > { %v5605_v40 = vadd.f32 %v9169_v1, %v5571_v13  ;;  %v5472_v23 = vadd.f32 %v5399_v20, %v9066_v48  ;;  %v9223_v48 = vpop.f32.mrf.mxu2  ;;  %v9227_v3 = vpop.f32.mrf.mxu3 }
 0x58e   : > { %5637 = vst [vmem:[%s9175_s29 + $0x18] sm:$0xff] %v5605_v40  ;;  %v5506_v15 = vadd.f32 %v9157_v7, %v5472_v23 }
 0x590   : > { %v5538_v29 = vmax.f32 %v5506_v15, 0.0 }
 0x591   : > { %v5400_v51 = vpop.f32.mrf.mxu1 }
 0x592   : > { %v5572_v57 = vmul.f32 %v9164_v35, %v5538_v29  ;;  %v5401_v58 = vadd.f32 %v5400_v51, %v9079_v2  ;;  %v5317_v29 = vadd.f32 %v9161_v34, %v9166_v16  ;;  %v9239_v51 = vpop.f32.mrf.mxu0  ;;  %v5320_v34 = vadd.f32 %v9179_v37, %v9183_v59  ;;  %v3529_v37 = vld [vmem:[#allocation3 + $0xcc] sm:$0xff]  }
 0x593   : > { %v9263_v59 = vld [vmem:[#allocation3 + $0xcc] sm:$0xf0]  ;;  %5284 = vmatmul.bf16.gmra.mxu3 %v3529_v37 }
 0x594   : > { %v5606_v44 = vadd.f32 %v9169_v1, %v5572_v57  ;;  %v5473_v6 = vadd.f32 %v5401_v58, %v9075_v62  ;;  %v9241_v11 = vpop.f32.mrf.mxu2  ;;  %v9243_v57 = vpop.f32.mrf.mxu3 }
 0x596   : > { %5638 = vst [vmem:[%s9175_s29 + $0x20] sm:$0xff] %v5606_v44  ;;  %v5507_v14 = vadd.f32 %v9157_v7, %v5473_v6 }
 0x598   : > { %v5539_v13 = vmax.f32 %v5507_v14, 0.0 }
 0x599   : > { %v5403_v20 = vpop.f32.mrf.mxu1 }
 0x59a   : > { %v5573_v2 = vmul.f32 %v9164_v35, %v5539_v13  ;;  %v5404_v40 = vadd.f32 %v5403_v20, %v5315_v19  ;;  %v4949_v13 = vadd.f32 %v9181_v43, %v9006_v47  ;;  %v9254_v20 = vpop.f32.mrf.mxu0  ;;  %v3548_v43 = vld [vmem:[#allocation3 + $0xd4] sm:$0x1] }
 0x59b   : > { %5442 = vmatmul.bf16.gmra.mxu1 %v9673_v5 }
 0x59c   : > { %v5607_v62 = vadd.f32 %v9169_v1, %v5573_v2  ;;  %v5474_v23 = vadd.f32 %v5404_v40, %v9085_v53  ;;  %v9256_v2 = vpop.f32.mrf.mxu2 }
 0x59e   : > { %5639 = vst [vmem:[%s9175_s29 + $0x28] sm:$0xff] %v5607_v62  ;;  %v5508_v15 = vadd.f32 %v9157_v7, %v5474_v23 }
 0x5a0   : > { %v5540_v41 = vmax.f32 %v5508_v15, 0.0 }
 0x5a1   : > { %v5405_v58 = vpop.f32.mrf.mxu1 }
 0x5a2   : > { %v5574_v44 = vmul.f32 %v9164_v35, %v5540_v41  ;;  %v5406_v6 = vadd.f32 %v5405_v58, %v5317_v29  ;;  %v3710_v29 = vunpack.c.l.b16 %v3548_v43  ;;  %v5322_v41 = vadd.f32 %v9192_v21, %v9198_v32 }
 0x5a4   : > { %v5608_v53 = vadd.f32 %v9169_v1, %v5574_v44  ;;  %v5475_v5 = vadd.f32 %v5406_v6, %v9093_v36  ;;  %v9259_v36 = vpop.f32.mrf.mxu3  ;;  %v3936_v6 = vshll.u32 %v3529_v37, 16  ;;  %v9277_v21 = vpop.f32.mrf.mxu2 }
 0x5a6   : > { %5640 = vst [vmem:[%s9175_s29 + $0x30] sm:$0xff] %v5608_v53  ;;  %v5509_v14 = vadd.f32 %v9157_v7, %v5475_v5  ;;  %v9269_v53 = vpack.c.b16 %v3710_v29, %v3710_v29  ;;  %v4954_v29 = vadd.f32 %v9208_v25, %v9022_v22 }
 0x5a8   : > { %v5541_v16 = vmax.f32 %v5509_v14, 0.0 }
 0x5a9   : > { %v5408_v19 = vpop.f32.mrf.mxu1 }
 0x5aa   : > { %v5575_v40 = vmul.f32 %v9164_v35, %v5541_v16  ;;  %v5409_v62 = vadd.f32 %v5408_v19, %v5320_v34  ;;  %v3934_v34 = vshrl.u32 %v3529_v37, 16  ;;  %v3938_v16 = vrot.slane %v3936_v6, 1 }
 0x5ab   : > { %5447 = vmatmul.bf16.gmra.mxu1 %v9674_v10  ;;  %v4951_v10 = vadd.f32 %v9194_v0, %v9014_v63  ;;  %v3941_v19 = vshll.u32 %v9269_v53, 16  ;;  %v5325_v37 = vadd.f32 %v9206_v4, %v9213_v38 }
 0x5ac   : > { %v5609_v23 = vadd.f32 %v9169_v1, %v5575_v40  ;;  %v5476_v15 = vadd.f32 %v5409_v62, %v4949_v13  ;;  %v9275_v13 = vpop.f32.mrf.mxu0  ;;  %v5245_v62 = vpop.f32.mrf.mxu3 }
 0x5ae   : > { %5641 = vst [vmem:[%s9175_s29 + $0x38] sm:$0xff] %v5609_v23  ;;  %v5510_v47 = vadd.f32 %v9157_v7, %v5476_v15  ;;  %v3939_v23 = vor.u32 %v3938_v16, %v3934_v34  ;;  %v3943_v15 = vrot.slane %v3941_v19, 1  ;;  %v4956_v34 = vadd.f32 %v9223_v48, %v9033_v50 }
 0x5af   : > { %v4959_v50 = vadd.f32 %v9241_v11, %v9043_v46  ;;  %v4961_v11 = vadd.f32 %v9256_v2, %v9053_v27 }
 0x5b0   : > { %v5542_v58 = vmax.f32 %v5510_v47, 0.0  ;;  %v3944_v0 = vsel %vm1069_vm8, %v3939_v23, %v3943_v15  ;;  %v5330_v23 = vadd.f32 %v9239_v51, %v9243_v57  ;;  %v5332_v57 = vadd.f32 %v9254_v20, %v9259_v36 }
 0x5b1   : > { %v5410_v44 = vpop.f32.mrf.mxu1  ;;  %5373 = vmatmul.bf16.gmra.mxu0 %v3944_v0  ;;  %v5335_v36 = vadd.f32 %v9275_v13, %v5245_v62 }
 0x5b2   : > { %v5576_v5 = vmul.f32 %v9164_v35, %v5542_v58  ;;  %v5411_v14 = vadd.f32 %v5410_v44, %v5322_v41 }
 0x5b4   : > { %v5610_v32 = vadd.f32 %v9169_v1, %v5576_v5  ;;  %v5477_v40 = vadd.f32 %v5411_v14, %v4951_v10  ;;  %v5336_v10 = vpop.f32.mrf.mxu0  ;;  %v9290_v5 = vpop.f32.mrf.mxu2  ;;  %v5327_v14 = vadd.f32 %v9221_v26, %v9227_v3 }
 0x5b5   : > { %v5247_v38 = vpop.f32.mrf.mxu3 }
 0x5b6   : > { %5642 = vst [vmem:[%s9175_s29 + $0x40] sm:$0xff] %v5610_v32  ;;  %v5511_v63 = vadd.f32 %v9157_v7, %v5477_v40  ;;  %v5337_v62 = vadd.f32 %v5336_v10, %v5247_v38 }
 0x5b8   : > { %v5543_v47 = vmax.f32 %v5511_v63, 0.0 }
 0x5b9   : > { %v5413_v43 = vpop.f32.mrf.mxu1 }
 0x5ba   : > { %v5577_v41 = vmul.f32 %v9164_v35, %v5543_v47  ;;  %v5414_v58 = vadd.f32 %v5413_v43, %v5325_v37  ;;  %v6861_v47 = vld [vmem:[#allocation3 + $0xcc] sm:$0xe] }
 0x5bb   : > { %5452 = vmatmul.bf16.gmra.mxu1 %v9675_v8  ;;  %v6862_v46 = vor.u32 %v6861_v47, %v9263_v59 }
 0x5bc   : > { %v5611_v44 = vadd.f32 %v9169_v1, %v5577_v41  ;;  %v5478_v6 = vadd.f32 %v5414_v58, %v4954_v29  ;;  %v5339_v15 = vpop.f32.mrf.mxu0  ;;  %v4968_v26 = vpop.f32.mrf.mxu2 }
 0x5bd   : > { %v5250_v63 = vpop.f32.mrf.mxu3 }
 0x5be   : > { %5643 = vst [vmem:[%s9175_s29 + $0x48] sm:$0xff] %v5611_v44  ;;  %v5512_v4 = vadd.f32 %v9157_v7, %v5478_v6 }
 0x5c0   : > { %v5544_v22 = vmax.f32 %v5512_v4, 0.0 }
 0x5c1   : > { %v5415_v25 = vpop.f32.mrf.mxu1 }
 0x5c2   : > { %v5578_v16 = vmul.f32 %v9164_v35, %v5544_v22  ;;  %v5416_v19 = vadd.f32 %v5415_v25, %v5327_v14 }
 0x5c4   : > { %v5612_v8 = vadd.f32 %v9169_v1, %v5578_v16  ;;  %v5479_v32 = vadd.f32 %v5416_v19, %v4956_v34  ;;  %v5341_v44 = vpop.f32.mrf.mxu0  ;;  %v4970_v6 = vpop.f32.mrf.mxu2  ;;  %v4068_v34 = vrot.slane %v6862_v46, 1  ;;  %v4069_v16 = vrot.slane %v9269_v53, 1 }
 0x5c5   : > { %v4964_v19 = vadd.f32 %v9277_v21, %v9063_v12  ;;  %v4966_v12 = vadd.f32 %v9290_v5, %v9072_v24  ;;  %v4969_v46 = vadd.f32 %v4968_v26, %v9082_v49 }
 0x5c6   : > { %5644 = vst [vmem:[%s9175_s29 + $0x50] sm:$0xff] %v5612_v8  ;;  %v5513_v40 = vadd.f32 %v9157_v7, %v5479_v32  ;;  %v4070_v2 = vsel %vm1358_vm9, %v4068_v34, %v4069_v16 }
 0x5c8   : > { %v5545_v3 = vmax.f32 %v5513_v40, 0.0 }
 0x5c9   : > { %v5418_v0 = vpop.f32.mrf.mxu1 }
 0x5ca   : > { %v5579_v48 = vmul.f32 %v9164_v35, %v5545_v3  ;;  %v5419_v37 = vadd.f32 %v5418_v0, %v5330_v23 }
 0x5cb   : > { %5457 = vmatmul.bf16.gmra.mxu1 %v8890_v42  ;;  %v5252_v42 = vpop.f32.mrf.mxu3 }
 0x5cc   : > { %v5613_v43 = vadd.f32 %v9169_v1, %v5579_v48  ;;  %v5480_v29 = vadd.f32 %v5419_v37, %v4959_v50  ;;  %v5344_v40 = vpop.f32.mrf.mxu0  ;;  %v4973_v23 = vpop.f32.mrf.mxu2 }
 0x5ce   : > { %5645 = vst [vmem:[%s9175_s29 + $0x58] sm:$0xff] %v5613_v43  ;;  %v5514_v51 = vadd.f32 %v9157_v7, %v5480_v29 }
 0x5d0   : > { %v5546_v41 = vmax.f32 %v5514_v51, 0.0 }
 0x5d1   : > { %v5420_v58 = vpop.f32.mrf.mxu1 }
 0x5d2   : > { %v5580_v4 = vmul.f32 %v9164_v35, %v5546_v41  ;;  %v5421_v14 = vadd.f32 %v5420_v58, %v5332_v57  ;;  %v5340_v58 = vadd.f32 %v5339_v15, %v5250_v63  ;;  %v4971_v63 = vadd.f32 %v4970_v6, %v9090_v30 }
 0x5d3   : > { %v5255_v0 = vpop.f32.mrf.mxu3 }
 0x5d4   : > { %v5614_v22 = vadd.f32 %v9169_v1, %v5580_v4  ;;  %v5481_v25 = vadd.f32 %v5421_v14, %v4961_v11  ;;  %v5346_v29 = vpop.f32.mrf.mxu0  ;;  %v4975_v51 = vpop.f32.mrf.mxu2 }
 0x5d6   : > { %5646 = vst [vmem:[%s9175_s29 + $0x60] sm:$0xff] %v5614_v22  ;;  %v5515_v20 = vadd.f32 %v9157_v7, %v5481_v25  ;;  %v5342_v22 = vadd.f32 %v5341_v44, %v5252_v42  ;;  %v4974_v42 = vadd.f32 %v4973_v23, %v9098_v9 }
 0x5d8   : > { %v5547_v59 = vmax.f32 %v5515_v20, 0.0 }
 0x5d9   : > { %v5423_v27 = vpop.f32.mrf.mxu1 }
 0x5da   : > { %v5581_v8 = vmul.f32 %v9164_v35, %v5547_v59  ;;  %v5424_v32 = vadd.f32 %v5423_v27, %v5335_v36 }
 0x5db   : > { %5462 = vmatmul.bf16.gmra.mxu1 %v4070_v2  ;;  %v5257_v41 = vpop.f32.mrf.mxu3  ;;  %v5345_v2 = vadd.f32 %v5344_v40, %v5255_v0  ;;  %v4976_v0 = vadd.f32 %v4975_v51, %v9102_v31 }
 0x5dc   : > { %v5615_v53 = vadd.f32 %v9169_v1, %v5581_v8  ;;  %v5482_v3 = vadd.f32 %v5424_v32, %v4964_v19  ;;  %v5349_v25 = vpop.f32.mrf.mxu0  ;;  %v4978_v34 = vpop.f32.mrf.mxu2 }
 0x5de   : > { %5647 = vst [vmem:[%s9175_s29 + $0x68] sm:$0xff] %v5615_v53  ;;  %v5516_v13 = vadd.f32 %v9157_v7, %v5482_v3 }
 0x5e0   : > { %v5548_v50 = vmax.f32 %v5516_v13, 0.0 }
 0x5e1   : > { %v5425_v48 = vpop.f32.mrf.mxu1 }
 0x5e2   : > { %v5582_v21 = vmul.f32 %v9164_v35, %v5548_v50  ;;  %v5426_v37 = vadd.f32 %v5425_v48, %v5337_v62  ;;  %v5347_v50 = vadd.f32 %v5346_v29, %v5257_v41  ;;  %v4979_v41 = vadd.f32 %v4978_v34, %v9107_v18 }
 0x5e3   : > { %v5260_v20 = vpop.f32.mrf.mxu3 }
 0x5e4   : > { %v5616_v47 = vadd.f32 %v9169_v1, %v5582_v21  ;;  %v5483_v43 = vadd.f32 %v5426_v37, %v4966_v12  ;;  %v5351_v8 = vpop.f32.mrf.mxu0  ;;  %v4980_v32 = vpop.f32.mrf.mxu2 }
 0x5e6   : > { %5648 = vst [vmem:[%s9175_s29 + $0x70] sm:$0xff] %v5616_v47  ;;  %v5517_v57 = vadd.f32 %v9157_v7, %v5483_v43 }
 0x5e8   : > { %v5549_v10 = vmax.f32 %v5517_v57, 0.0 }
 0x5e9   : > { %v5428_v38 = vpop.f32.mrf.mxu1 }
 0x5ea   : > { %v5583_v24 = vmul.f32 %v9164_v35, %v5549_v10  ;;  %v5429_v5 = vadd.f32 %v5428_v38, %v5340_v58  ;;  %v5350_v58 = vadd.f32 %v5349_v25, %v5260_v20 }
 0x5eb   : > { %v5262_v6 = vpop.f32.mrf.mxu3 }
 0x5ec   : > { %v5617_v11 = vadd.f32 %v9169_v1, %v5583_v24  ;;  %v5484_v4 = vadd.f32 %v5429_v5, %v4969_v46  ;;  %v5354_v12 = vpop.f32.mrf.mxu0  ;;  %v4983_v21 = vpop.f32.mrf.mxu2 }
 0x5ee   : > { %5649 = vst [vmem:[%s9175_s29 + $0x78] sm:$0xff] %v5617_v11  ;;  %v5518_v14 = vadd.f32 %v9157_v7, %v5484_v4 }
 0x5f0   : > { %v5550_v16 = vmax.f32 %v5518_v14, 0.0  ;;  %v5352_v14 = vadd.f32 %v5351_v8, %v5262_v6 }
 0x5f1   : > { %v5430_v15 = vpop.f32.mrf.mxu1 }
 0x5f2   : > { %v5584_v49 = vmul.f32 %v9164_v35, %v5550_v16  ;;  %v5431_v26 = vadd.f32 %v5430_v15, %v5342_v22  ;;  %v4981_v16 = vadd.f32 %v4980_v32, %v9112_v39 }
 0x5f3   : > { %v5265_v43 = vpop.f32.mrf.mxu3 }
 0x5f4   : > { %v5618_v36 = vadd.f32 %v9169_v1, %v5584_v49  ;;  %v5485_v59 = vadd.f32 %v5431_v26, %v4971_v63  ;;  %v5356_v24 = vpop.f32.mrf.mxu0  ;;  %v4985_v5 = vpop.f32.mrf.mxu2  ;;  %v5355_v49 = vadd.f32 %v5354_v12, %v5265_v43 }
 0x5f6   : > { %5650 = vst [vmem:[%s9175_s29 + $0x80] sm:$0xff] %v5618_v36  ;;  %v5519_v27 = vadd.f32 %v9157_v7, %v5485_v59 }
 0x5f8   : > { %v5551_v19 = vmax.f32 %v5519_v27, 0.0 }
 0x5f9   : > { %v5433_v44 = vpop.f32.mrf.mxu1 }
 0x5fa   : > { %v5585_v53 = vmul.f32 %v9164_v35, %v5551_v19  ;;  %v5434_v30 = vadd.f32 %v5433_v44, %v5345_v2  ;;  %v4984_v19 = vadd.f32 %v4983_v21, %v9116_v61 }
 0x5fb   : > { %v5267_v4 = vpop.f32.mrf.mxu3 }
 0x5fc   : > { %v5619_v3 = vadd.f32 %v9169_v1, %v5585_v53  ;;  %v5486_v13 = vadd.f32 %v5434_v30, %v4974_v42  ;;  %v5359_v26 = vpop.f32.mrf.mxu0  ;;  %v4988_v36 = vpop.f32.mrf.mxu2  ;;  %v5357_v53 = vadd.f32 %v5356_v24, %v5267_v4 }
 0x5fe   : > { %5651 = vst [vmem:[%s9175_s29 + $0x88] sm:$0xff] %v5619_v3  ;;  %v5520_v62 = vadd.f32 %v9157_v7, %v5486_v13  ;;  %v4986_v3 = vadd.f32 %v4985_v5, %v9121_v33 }
 0x600   : > { %v5552_v48 = vmax.f32 %v5520_v62, 0.0 }
 0x601   : > { %v5435_v40 = vpop.f32.mrf.mxu1 }
 0x602   : > { %v5586_v9 = vmul.f32 %v9164_v35, %v5552_v48  ;;  %v5436_v23 = vadd.f32 %v5435_v40, %v5347_v50 }
 0x603   : > { %v5270_v27 = vpop.f32.mrf.mxu3 }
 0x604   : > { %v5620_v37 = vadd.f32 %v9169_v1, %v5586_v9  ;;  %v5487_v47 = vadd.f32 %v5436_v23, %v4976_v0  ;;  %v5361_v13 = vpop.f32.mrf.mxu0  ;;  %v4990_v62 = vpop.f32.mrf.mxu2  ;;  %v5360_v23 = vadd.f32 %v5359_v26, %v5270_v27 }
 0x606   : > { %5652 = vst [vmem:[%s9175_s29 + $0x90] sm:$0xff] %v5620_v37  ;;  %v5521_v57 = vadd.f32 %v9157_v7, %v5487_v47  ;;  %v4989_v37 = vadd.f32 %v4988_v36, %v9125_v55 }
 0x608   : > { %v5553_v10 = vmax.f32 %v5521_v57, 0.0 }
 0x609   : > { %v5438_v29 = vpop.f32.mrf.mxu1 }
 0x60a   : > { %v5587_v31 = vmul.f32 %v9164_v35, %v5553_v10  ;;  %v5439_v51 = vadd.f32 %v5438_v29, %v5350_v58 }
 0x60b   : > { %v5272_v48 = vpop.f32.mrf.mxu3 }
 0x60c   : > { %v5621_v38 = vadd.f32 %v9169_v1, %v5587_v31  ;;  %v5488_v46 = vadd.f32 %v5439_v51, %v4979_v41  ;;  %v5364_v43 = vpop.f32.mrf.mxu0  ;;  %v4993_v57 = vpop.f32.mrf.mxu2  ;;  %v5362_v31 = vadd.f32 %v5361_v13, %v5272_v48 }
 0x60e   : > { %5653 = vst [vmem:[%s9175_s29 + $0x98] sm:$0xff] %v5621_v38  ;;  %v5522_v11 = vadd.f32 %v9157_v7, %v5488_v46  ;;  %v4991_v46 = vadd.f32 %v4990_v62, %v9129_v56 }
 0x610   : > { %v5554_v22 = vmax.f32 %v5522_v11, 0.0 }
 0x611   : > { %v5440_v25 = vpop.f32.mrf.mxu1 }
 0x612   : > { %v5588_v18 = vmul.f32 %v9164_v35, %v5554_v22  ;;  %v5441_v34 = vadd.f32 %v5440_v25, %v5352_v14 }
 0x613   : > { %v5275_v29 = vpop.f32.mrf.mxu3 }
 0x614   : > { %v5622_v20 = vadd.f32 %v9169_v1, %v5588_v18  ;;  %v5489_v15 = vadd.f32 %v5441_v34, %v4981_v16  ;;  %v5366_v4 = vpop.f32.mrf.mxu0  ;;  %v4995_v14 = vpop.f32.mrf.mxu2  ;;  %v5365_v16 = vadd.f32 %v5364_v43, %v5275_v29 }
 0x616   : > { %5654 = vst [vmem:[%s9175_s29 + $0xa0] sm:$0xff] %v5622_v20  ;;  %v5523_v63 = vadd.f32 %v9157_v7, %v5489_v15  ;;  %v4994_v20 = vadd.f32 %v4993_v57, %v9132_v17 }
 0x618   : > { %v5555_v59 = vmax.f32 %v5523_v63, 0.0 }
 0x619   : > { %v5443_v2 = vpop.f32.mrf.mxu1 }
 0x61a   : > { %v5589_v39 = vmul.f32 %v9164_v35, %v5555_v59  ;;  %v5444_v44 = vadd.f32 %v5443_v2, %v5355_v49 }
 0x61b   : > { %v5277_v25 = vpop.f32.mrf.mxu3 }
 0x61c   : > { %v5623_v42 = vadd.f32 %v9169_v1, %v5589_v39  ;;  %v5490_v8 = vadd.f32 %v5444_v44, %v4984_v19  ;;  %v5367_v36 = vadd.f32 %v5366_v4, %v5277_v25  ;;  %v5369_v59 = vpop.f32.mrf.mxu0  ;;  %v4998_v27 = vpop.f32.mrf.mxu2  ;;  %v4996_v44 = vadd.f32 %v4995_v14, %v9136_v54 }
 0x61d   : > { %v4999_v13 = vadd.f32 %v4998_v27, %v9139_v45 }
 0x61e   : > { %5655 = vst [vmem:[%s9175_s29 + $0xa8] sm:$0xff] %v5623_v42  ;;  %v5524_v32 = vadd.f32 %v9157_v7, %v5490_v8 }
 0x620   : > { %v5556_v30 = vmax.f32 %v5524_v32, 0.0 }
 0x621   : > { %v5445_v6 = vpop.f32.mrf.mxu1 }
 0x622   : > { %v5590_v50 = vmul.f32 %v9164_v35, %v5556_v30  ;;  %v5446_v61 = vadd.f32 %v5445_v6, %v5357_v53 }
 0x623   : > { %v5280_v19 = vpop.f32.mrf.mxu3 }
 0x624   : > { %v5624_v40 = vadd.f32 %v9169_v1, %v5590_v50  ;;  %v5491_v0 = vadd.f32 %v5446_v61, %v4986_v3  ;;  %v5370_v30 = vadd.f32 %v5369_v59, %v5280_v19  ;;  %v5371_v62 = vpop.f32.mrf.mxu0  ;;  %v5000_v54 = vpop.f32.mrf.mxu2 }
 0x626   : > { %5656 = vst [vmem:[%s9175_s29 + $0xb0] sm:$0xff] %v5624_v40  ;;  %v5525_v9 = vadd.f32 %v9157_v7, %v5491_v0 }
 0x628   : > { %v5557_v12 = vmax.f32 %v5525_v9, 0.0 }
 0x629   : > { %v5448_v21 = vpop.f32.mrf.mxu1 }
 0x62a   : > { %v5591_v33 = vmul.f32 %v9164_v35, %v5557_v12  ;;  %v5449_v47 = vadd.f32 %v5448_v21, %v5360_v23 }
 0x62b   : > { %v5282_v48 = vpop.f32.mrf.mxu3 }
 0x62c   : > { %v5625_v58 = vadd.f32 %v9169_v1, %v5591_v33  ;;  %v5492_v10 = vadd.f32 %v5449_v47, %v4989_v37  ;;  %v5372_v23 = vadd.f32 %v5371_v62, %v5282_v48  ;;  %v5001_v37 = vadd.f32 %v5000_v54, %v9143_v60 }
 0x62e   : > { %5657 = vst [vmem:[%s9175_s29 + $0xb8] sm:$0xff] %v5625_v58  ;;  %v5526_v41 = vadd.f32 %v9157_v7, %v5492_v10  ;;  %v5374_v43 = vpop.f32.mrf.mxu0  ;;  %v5003_v10 = vpop.f32.mrf.mxu2 }
 0x630   : > { %v5558_v51 = vmax.f32 %v5526_v41, 0.0 }
 0x631   : > { %v5450_v38 = vpop.f32.mrf.mxu1 }
 0x632   : > { %v5592_v55 = vmul.f32 %v9164_v35, %v5558_v51  ;;  %v5451_v24 = vadd.f32 %v5450_v38, %v5362_v31  ;;  %v5004_v38 = vadd.f32 %v5003_v10, %v9146_v28 }
 0x633   : > { %v5285_v47 = vpop.f32.mrf.mxu3 }
 0x634   : > { %v5626_v5 = vadd.f32 %v9169_v1, %v5592_v55  ;;  %v5493_v11 = vadd.f32 %v5451_v24, %v4991_v46  ;;  %v5375_v29 = vadd.f32 %v5374_v43, %v5285_v47 }
 0x636   : > { %5658 = vst [vmem:[%s9175_s29 + $0xc0] sm:$0xff] %v5626_v5  ;;  %v5527_v22 = vadd.f32 %v9157_v7, %v5493_v11  ;;  %v5376_v11 = vpop.f32.mrf.mxu0  ;;  %v5005_v14 = vpop.f32.mrf.mxu2 }
 0x637   : > { %v5006_v28 = vadd.f32 %v5005_v14, %v9150_v52 }
 0x638   : > { %v5559_v18 = vmax.f32 %v5527_v22, 0.0 }
 0x639   : > { %v5453_v34 = vpop.f32.mrf.mxu1 }
 0x63a   : > { %v5593_v56 = vmul.f32 %v9164_v35, %v5559_v18  ;;  %v5454_v15 = vadd.f32 %v5453_v34, %v5365_v16 }
 0x63b   : > { %v5287_v5 = vpop.f32.mrf.mxu3 }
 0x63c   : > { %v5627_v63 = vadd.f32 %v9169_v1, %v5593_v56  ;;  %v5494_v49 = vadd.f32 %v5454_v15, %v4994_v20  ;;  %v5377_v22 = vadd.f32 %v5376_v11, %v5287_v5 }
 0x63e   : > { %5659 = vst [vmem:[%s9175_s29 + $0xc8] sm:$0xff] %v5627_v63  ;;  %v5528_v26 = vadd.f32 %v9157_v7, %v5494_v49 }
 0x640   : > { %v5560_v2 = vmax.f32 %v5528_v26, 0.0 }
 0x641   : > { %v5455_v39 = vpop.f32.mrf.mxu1 }
 0x642   : > { %v5594_v17 = vmul.f32 %v9164_v35, %v5560_v2  ;;  %v5456_v42 = vadd.f32 %v5455_v39, %v5367_v36 }
 0x644   : > { %v5628_v8 = vadd.f32 %v9169_v1, %v5594_v17  ;;  %v5495_v32 = vadd.f32 %v5456_v42, %v4996_v44 }
 0x646   : > { %5660 = vst [vmem:[%s9175_s29 + $0xd0] sm:$0xff] %v5628_v8  ;;  %v5529_v53 = vadd.f32 %v9157_v7, %v5495_v32 }
 0x648   : > { %v5561_v6 = vmax.f32 %v5529_v53, 0.0 }
 0x649   : > { %v5458_v3 = vpop.f32.mrf.mxu1 }
 0x64a   : > { %v5595_v50 = vmul.f32 %v9164_v35, %v5561_v6  ;;  %v5459_v61 = vadd.f32 %v5458_v3, %v5370_v30 }
 0x64c   : > { %v5629_v40 = vadd.f32 %v9169_v1, %v5595_v50  ;;  %v5496_v0 = vadd.f32 %v5459_v61, %v4999_v13 }
 0x64e   : > { %5661 = vst [vmem:[%s9175_s29 + $0xd8] sm:$0xff] %v5629_v40  ;;  %v5530_v9 = vadd.f32 %v9157_v7, %v5496_v0 }
 0x650   : > { %v5562_v12 = vmax.f32 %v5530_v9, 0.0 }
 0x651   : > { %v5460_v21 = vpop.f32.mrf.mxu1 }
 0x652   : > { %v5596_v45 = vmul.f32 %v9164_v35, %v5562_v12  ;;  %v5461_v33 = vadd.f32 %v5460_v21, %v5372_v23 }
 0x654   : > { %v5630_v57 = vadd.f32 %v9169_v1, %v5596_v45  ;;  %v5497_v58 = vadd.f32 %v5461_v33, %v5001_v37 }
 0x656   : > { %5662 = vst [vmem:[%s9175_s29 + $0xe0] sm:$0xff] %v5630_v57  ;;  %v5531_v41 = vadd.f32 %v9157_v7, %v5497_v58 }
 0x658   : > { %v5563_v31 = vmax.f32 %v5531_v41, 0.0 }
 0x659   : > { %v5463_v51 = vpop.f32.mrf.mxu1 }
 0x65a   : > { %v5597_v60 = vmul.f32 %v9164_v35, %v5563_v31  ;;  %v5464_v46 = vadd.f32 %v5463_v51, %v5375_v29 }
 0x65c   : > { %v5631_v55 = vadd.f32 %v9169_v1, %v5597_v60  ;;  %v5498_v24 = vadd.f32 %v5464_v46, %v5004_v38 }
 0x65e   : > { %5663 = vst [vmem:[%s9175_s29 + $0xe8] sm:$0xff] %v5631_v55  ;;  %v5532_v4 = vadd.f32 %v9157_v7, %v5498_v24 }
 0x660   : > { %v5564_v25 = vmax.f32 %v5532_v4, 0.0 }
 0x661   : > { %v5465_v16 = vpop.f32.mrf.mxu1 }
 0x662   : > { %v5598_v18 = vmul.f32 %v9164_v35, %v5564_v25  ;;  %v5466_v34 = vadd.f32 %v5465_v16, %v5377_v22 }
 0x664   : > { %v5632_v20 = vadd.f32 %v9169_v1, %v5598_v18  ;;  %v5499_v56 = vadd.f32 %v5466_v34, %v5006_v28 }
 0x666   : > { %5664 = vst [vmem:[%s9175_s29 + $0xf0] sm:$0xff] %v5632_v20  ;;  %v5533_v15 = vadd.f32 %v9157_v7, %v5499_v56 }
 0x668   : > { %v5565_v63 = vmax.f32 %v5533_v15, 0.0 }
 0x66a   : > { %v5599_v52 = vmul.f32 %v9164_v35, %v5565_v63 }
 0x66c   : > { %v5633_v49 = vadd.f32 %v9169_v1, %v5599_v52 }
 0x66e   : > { %5665 = vst [vmem:[%s9175_s29 + $0xf8] sm:$0xff] %v5633_v49 }
 0x66f   : > { %7040 = shalt.err (!%p7037_p10)
}
 0x670   : > { %s7099_s28 = smov 128   ;;  %s7100_s24 = smov 8  }
 0x671   : > { %6713 = dma.vmem_to_hbm [thread:$0]  (%p7221_p3), %s5680_s10, 4096, %s5682_s7, %s5667_s22, %s7099_s28, %s7099_s28, %s7100_s24  }
 0x672 PF: > { %s5696_s29 = sand.u32 1, %s7078_s18   ;;  %p9676_p12 = scmp.ge.s32.totalorder %s7090_s21, 2 }
 0x673   : > { %s5697_s12 = scalar_lea.sflag [#allocation6], %s5696_s29 }
 0x674   : > { %p6733_p13 = pnand %p9676_p12, %p7166_p6 }
 0x676   : > { %p6734_p0 = pneg %p6733_p13 }
 0x678   : > { %7070 = dma.done.wait (%p6734_p0), %s5697_s12, 4096  }
 0x679   : > { %7072 = vsyncadd (%p6734_p0), %s5697_s12, 4294963200  ;;  %p20_p5 = scmp.ge.s32.totalorder %s7211_s9, 4   ;;  %s9677_s18 = smov %s7082_s19 }
 0x67a   : > { %s9678_s19 = smov %s7086_s20  ;;  %s9679_s20 = smov %s7227_s15 }
 0x67b   : > { %s9680_s21 = smov %s7211_s9  ;;  %22 = sbr.rel (!%p20_p5) target bundleno = 7 (0x7), region = 107 }
 0x680   :  { %5703 = vsyncpa [#allocation5], 1 }
 0x681   :  { %5705 = vsyncpa [#allocation5 + $0x1], 1 }
 0x682   :  { %5706 = vsyncpa [#allocation8], 1 }
 0x683   :  { %5707 = vsyncpa [#allocation11], 1 }
 0x684   :  { %5708 = vsyncpa [#allocation6], 1 }
 0x685   :  { %5710 = vsyncpa [#allocation6 + $0x1], 1 }

</bundles_post_ra>
